<compile_context>
chip_gen: v7x
topology: tpu7x:2x2x1
jax: 0.10.0
libtpu: 0.0.40
codegen_flags: <defaults>
</compile_context>

<pallas_src>
import functools

import jax
import jax.numpy as jnp
from jax.experimental import pallas as pl
from jax.experimental.pallas import tpu as pltpu


def _basic_block_kernel(x_ref, w1_ref, w2_ref, s1_ref, b1_ref, s2_ref, b2_ref,
                        out_ref, pad_ref,
                        *, H, W, C, compute_dtype):
    """Fused conv3x3+BN+ReLU -> conv3x3+BN+residual+ReLU for one image (NHWC)."""
    # Zero the padded scratch: provides the 1-pixel zero halo for BOTH convs.
    # Interior is fully overwritten below; halo is never written, stays zero.
    pad_ref[...] = jnp.zeros_like(pad_ref)

    def im2col():
        # (H*W, 9*C) patch matrix from the padded scratch; a single dot lets
        # the MXU accumulate over K = 9*C internally (one result drain, not 9).
        cols = [pad_ref[dh:dh + H, dw:dw + W, :].reshape(H * W, C)
                for dh in range(3) for dw in range(3)]
        return jnp.concatenate(cols, axis=-1).astype(compute_dtype)

    # ---- conv1 + bn1 + relu --------------------------------------------------
    pad_ref[1:H + 1, 1:W + 1, :] = x_ref[0]                     # (H, W, C)
    h = jnp.dot(im2col(), w1_ref[...].astype(compute_dtype),
                preferred_element_type=jnp.float32)              # (H*W, C) f32
    h = jnp.maximum(h * s1_ref[...] + b1_ref[...], 0.0)          # folded BN + ReLU

    # ---- conv2 + bn2 + residual + relu ---------------------------------------
    # Reuse the same scratch: interior fully overwritten with h, halo still 0.
    pad_ref[1:H + 1, 1:W + 1, :] = h.reshape(H, W, C)
    y = jnp.dot(im2col(), w2_ref[...].astype(compute_dtype),
                preferred_element_type=jnp.float32)              # (H*W, C) f32
    y = y * s2_ref[...] + b2_ref[...]
    # Identity add: the input block is still resident in VMEM -> plain reload.
    y = y + x_ref[0].reshape(H * W, C).astype(jnp.float32)
    out_ref[0] = jnp.maximum(y, 0.0).reshape(H, W, C).astype(out_ref.dtype)


def _fold_bn(gamma, beta, mean, var, eps=1e-5):
    scale = gamma / jnp.sqrt(var + eps)
    bias = beta - mean * scale
    return scale.astype(jnp.float32), bias.astype(jnp.float32)


def basic_block_forward(x_nchw, params, *, compute_dtype=jnp.float32):
    """BasicBlock forward.  Input/output in NCHW (PyTorch convention).

    compute_dtype: dtype of the MXU matmul operands.  jnp.bfloat16 is
    recommended on v6e/v7x (f32 accumulation and f32 epilogue are kept);
    the default f32 matches PyTorch numerics.
    """
    N, C, H, W = x_nchw.shape
    x = jnp.transpose(x_nchw, (0, 2, 3, 1))        # -> NHWC (channels in lanes)

    s1, b1 = _fold_bn(params["bn1_gamma"], params["bn1_beta"],
                      params["bn1_mean"], params["bn1_var"])
    s2, b2 = _fold_bn(params["bn2_gamma"], params["bn2_beta"],
                      params["bn2_mean"], params["bn2_var"])

    # (3, 3, Cin, Cout) HWIO -> (9*Cin, Cout); row order (kh, kw, cin) matches
    # the in-kernel im2col column order (dh, dw, cin).
    w1 = params["w1"].reshape(9 * C, C)
    w2 = params["w2"].reshape(9 * C, C)

    kernel = functools.partial(_basic_block_kernel,
                               H=H, W=W, C=C, compute_dtype=compute_dtype)

    out = pl.pallas_call(
        kernel,
        out_shape=jax.ShapeDtypeStruct((N, H, W, C), x.dtype),
        grid_spec=pltpu.PrefetchScalarGridSpec(
            num_scalar_prefetch=0,
            grid=(N,),
            in_specs=[
                pl.BlockSpec((1, H, W, C), lambda n: (n, 0, 0, 0)),   # x
                pl.BlockSpec((9 * C, C), lambda n: (0, 0)),           # w1 (resident)
                pl.BlockSpec((9 * C, C), lambda n: (0, 0)),           # w2 (resident)
                pl.BlockSpec((1, C), lambda n: (0, 0)),               # scale1
                pl.BlockSpec((1, C), lambda n: (0, 0)),               # bias1
                pl.BlockSpec((1, C), lambda n: (0, 0)),               # scale2
                pl.BlockSpec((1, C), lambda n: (0, 0)),               # bias2
            ],
            out_specs=pl.BlockSpec((1, H, W, C), lambda n: (n, 0, 0, 0)),
            scratch_shapes=[
                pltpu.VMEM((H + 2, W + 2, C), jnp.float32),   # shared padded scratch
            ],
        ),
        compiler_params=pltpu.CompilerParams(
            dimension_semantics=("parallel",)),
    )(x, w1, w2,
      s1.reshape(1, C), b1.reshape(1, C), s2.reshape(1, C), b2.reshape(1, C))

    return jnp.transpose(out, (0, 3, 1, 2))        # back to NCHW


def init_params(key, inplanes, planes):
    k1, k2, k3, k4 = jax.random.split(key, 4)
    # PyTorch conv weight layout is (out, in, kh, kw); stored here as HWIO
    # (kh, kw, in, out).  Real PyTorch weights need w.transpose(2, 3, 1, 0).
    w1 = 0.1 * jax.random.normal(k1, (3, 3, inplanes, planes), jnp.float32)
    w2 = 0.1 * jax.random.normal(k2, (3, 3, planes, planes), jnp.float32)
    return {
        "w1": w1,
        "w2": w2,
        "bn1_gamma": 1.0 + 0.1 * jax.random.normal(k3, (planes,), jnp.float32),
        "bn1_beta": jnp.full((planes,), 0.05, jnp.float32),
        "bn1_mean": jnp.zeros((planes,), jnp.float32),
        "bn1_var": jnp.ones((planes,), jnp.float32),
        "bn2_gamma": 1.0 + 0.1 * jax.random.normal(k4, (planes,), jnp.float32),
        "bn2_beta": jnp.full((planes,), -0.05, jnp.float32),
        "bn2_mean": jnp.zeros((planes,), jnp.float32),
        "bn2_var": jnp.ones((planes,), jnp.float32),
    }


def _reference_forward(x_nchw, params, eps=1e-5):
    """Pure-JAX reference (lax conv + BN) for correctness checking."""
    def conv(x, w_hwio):
        return jax.lax.conv_general_dilated(
            x, w_hwio, window_strides=(1, 1), padding=((1, 1), (1, 1)),
            dimension_numbers=("NCHW", "HWIO", "NCHW"),
            precision=jax.lax.Precision.HIGHEST)

    def bn(x, g, b, m, v):
        g = g.reshape(1, -1, 1, 1)
        b = b.reshape(1, -1, 1, 1)
        m = m.reshape(1, -1, 1, 1)
        v = v.reshape(1, -1, 1, 1)
        return (x - m) / jnp.sqrt(v + eps) * g + b

    h = jax.nn.relu(bn(conv(x_nchw, params["w1"]),
                       params["bn1_gamma"], params["bn1_beta"],
                       params["bn1_mean"], params["bn1_var"]))
    y = bn(conv(h, params["w2"]),
           params["bn2_gamma"], params["bn2_beta"],
           params["bn2_mean"], params["bn2_var"]) + x_nchw
    return jax.nn.relu(y)


if __name__ == "__main__":
    key = jax.random.PRNGKey(0)
    kx, kp = jax.random.split(key)

    N, C, Hs, Ws = 2, 4, 16, 16          # inplanes = planes = 4, stride = 1
    x = jax.random.normal(kx, (N, C, Hs, Ws), jnp.float32)
    params = init_params(kp, C, C)

    out = jax.block_until_ready(basic_block_forward(x, params))
    assert out.shape == (N, C, Hs, Ws)

    ref = jax.block_until_ready(_reference_forward(x, params))
    err = float(jnp.max(jnp.abs(out - ref)))
    assert err < 1e-2, f"max abs error vs reference too large: {err}"

    print("KERNEL_OK")
</pallas_src>

<mosaic_0001>
module attributes {stable_mosaic.version = 11 : i64} {
  func.func @_basic_block_kernel(%arg0: i32, %arg1: memref<1x16x16x4xf32, #tpu.memory_space<vmem>>, %arg2: memref<36x4xf32, #tpu.memory_space<vmem>>, %arg3: memref<36x4xf32, #tpu.memory_space<vmem>>, %arg4: memref<1x4xf32, #tpu.memory_space<vmem>>, %arg5: memref<1x4xf32, #tpu.memory_space<vmem>>, %arg6: memref<1x4xf32, #tpu.memory_space<vmem>>, %arg7: memref<1x4xf32, #tpu.memory_space<vmem>>, %arg8: memref<1x16x16x4xf32, #tpu.memory_space<vmem>>, %arg9: memref<18x18x4xf32, #tpu.memory_space<vmem>>) attributes {dimension_semantics = [#tpu.dimension_semantics<parallel>], iteration_bounds = array<i64: 2>, scalar_prefetch = 0 : i64, scratch_operands = 1 : i64, tpu.core_type = #tpu.core_type<tc>, window_params = [{transform_indices = @transform_0, window_bounds = array<i64: 1, 16, 16, 4>}, {pipeline_mode = #tpu.pipeline_mode<synchronous>, transform_indices = @transform_1, window_bounds = array<i64: 36, 4>}, {pipeline_mode = #tpu.pipeline_mode<synchronous>, transform_indices = @transform_2, window_bounds = array<i64: 36, 4>}, {pipeline_mode = #tpu.pipeline_mode<synchronous>, transform_indices = @transform_3, window_bounds = array<i64: 1, 4>}, {pipeline_mode = #tpu.pipeline_mode<synchronous>, transform_indices = @transform_4, window_bounds = array<i64: 1, 4>}, {pipeline_mode = #tpu.pipeline_mode<synchronous>, transform_indices = @transform_5, window_bounds = array<i64: 1, 4>}, {pipeline_mode = #tpu.pipeline_mode<synchronous>, transform_indices = @transform_6, window_bounds = array<i64: 1, 4>}, {transform_indices = @transform_7, window_bounds = array<i64: 1, 16, 16, 4>}]} {
    %cst = arith.constant 0.000000e+00 : f32
    %0 = vector.broadcast %cst : f32 to vector<18x18x4xf32>
    %c0 = arith.constant 0 : index
    %c0_0 = arith.constant 0 : index
    %c0_1 = arith.constant 0 : index
    %1 = vector.load %arg9[%c0, %c0_0, %c0_1] : memref<18x18x4xf32, #tpu.memory_space<vmem>>, vector<18x18x4xf32>
    tpu.vector_store %arg9[%c0, %c0_0, %c0_1], %0 {strides = array<i32>} : memref<18x18x4xf32, #tpu.memory_space<vmem>>, vector<18x18x4xf32>,
    %c0_2 = arith.constant 0 : index
    %c0_3 = arith.constant 0 : index
    %c0_4 = arith.constant 0 : index
    %c0_5 = arith.constant 0 : index
    %2 = vector.load %arg1[%c0_2, %c0_3, %c0_4, %c0_5] : memref<1x16x16x4xf32, #tpu.memory_space<vmem>>, vector<1x16x16x4xf32>
    %3 = vector.shape_cast %2 : vector<1x16x16x4xf32> to vector<16x16x4xf32>
    %c1 = arith.constant 1 : index
    %c1_6 = arith.constant 1 : index
    %c0_7 = arith.constant 0 : index
    %4 = vector.load %arg9[%c1, %c1_6, %c0_7] : memref<18x18x4xf32, #tpu.memory_space<vmem>>, vector<16x16x4xf32>
    tpu.vector_store %arg9[%c1, %c1_6, %c0_7], %3 {strides = array<i32>} : memref<18x18x4xf32, #tpu.memory_space<vmem>>, vector<16x16x4xf32>,
    %c0_8 = arith.constant 0 : index
    %c0_9 = arith.constant 0 : index
    %c0_10 = arith.constant 0 : index
    %5 = vector.load %arg9[%c0_8, %c0_9, %c0_10] : memref<18x18x4xf32, #tpu.memory_space<vmem>>, vector<16x16x4xf32>
    %6 = vector.shape_cast %5 : vector<16x16x4xf32> to vector<256x4xf32>
    %c0_11 = arith.constant 0 : index
    %c1_12 = arith.constant 1 : index
    %c0_13 = arith.constant 0 : index
    %7 = vector.load %arg9[%c0_11, %c1_12, %c0_13] : memref<18x18x4xf32, #tpu.memory_space<vmem>>, vector<16x16x4xf32>
    %8 = vector.shape_cast %7 : vector<16x16x4xf32> to vector<256x4xf32>
    %c0_14 = arith.constant 0 : index
    %c2 = arith.constant 2 : index
    %c0_15 = arith.constant 0 : index
    %9 = vector.load %arg9[%c0_14, %c2, %c0_15] : memref<18x18x4xf32, #tpu.memory_space<vmem>>, vector<16x16x4xf32>
    %10 = vector.shape_cast %9 : vector<16x16x4xf32> to vector<256x4xf32>
    %c1_16 = arith.constant 1 : index
    %c0_17 = arith.constant 0 : index
    %c0_18 = arith.constant 0 : index
    %11 = vector.load %arg9[%c1_16, %c0_17, %c0_18] : memref<18x18x4xf32, #tpu.memory_space<vmem>>, vector<16x16x4xf32>
    %12 = vector.shape_cast %11 : vector<16x16x4xf32> to vector<256x4xf32>
    %c1_19 = arith.constant 1 : index
    %c1_20 = arith.constant 1 : index
    %c0_21 = arith.constant 0 : index
    %13 = vector.load %arg9[%c1_19, %c1_20, %c0_21] : memref<18x18x4xf32, #tpu.memory_space<vmem>>, vector<16x16x4xf32>
    %14 = vector.shape_cast %13 : vector<16x16x4xf32> to vector<256x4xf32>
    %c1_22 = arith.constant 1 : index
    %c2_23 = arith.constant 2 : index
    %c0_24 = arith.constant 0 : index
    %15 = vector.load %arg9[%c1_22, %c2_23, %c0_24] : memref<18x18x4xf32, #tpu.memory_space<vmem>>, vector<16x16x4xf32>
    %16 = vector.shape_cast %15 : vector<16x16x4xf32> to vector<256x4xf32>
    %c2_25 = arith.constant 2 : index
    %c0_26 = arith.constant 0 : index
    %c0_27 = arith.constant 0 : index
    %17 = vector.load %arg9[%c2_25, %c0_26, %c0_27] : memref<18x18x4xf32, #tpu.memory_space<vmem>>, vector<16x16x4xf32>
    %18 = vector.shape_cast %17 : vector<16x16x4xf32> to vector<256x4xf32>
    %c2_28 = arith.constant 2 : index
    %c1_29 = arith.constant 1 : index
    %c0_30 = arith.constant 0 : index
    %19 = vector.load %arg9[%c2_28, %c1_29, %c0_30] : memref<18x18x4xf32, #tpu.memory_space<vmem>>, vector<16x16x4xf32>
    %20 = vector.shape_cast %19 : vector<16x16x4xf32> to vector<256x4xf32>
    %c2_31 = arith.constant 2 : index
    %c2_32 = arith.constant 2 : index
    %c0_33 = arith.constant 0 : index
    %21 = vector.load %arg9[%c2_31, %c2_32, %c0_33] : memref<18x18x4xf32, #tpu.memory_space<vmem>>, vector<16x16x4xf32>
    %22 = vector.shape_cast %21 : vector<16x16x4xf32> to vector<256x4xf32>
    %23 = tpu.concatenate %6, %8, %10, %12, %14, %16, %18, %20, %22 in 1 : vector<256x4xf32>, vector<256x4xf32>, vector<256x4xf32>, vector<256x4xf32>, vector<256x4xf32>, vector<256x4xf32>, vector<256x4xf32>, vector<256x4xf32>, vector<256x4xf32> -> vector<256x36xf32>
    %c0_34 = arith.constant 0 : index
    %c0_35 = arith.constant 0 : index
    %24 = vector.load %arg2[%c0_34, %c0_35] : memref<36x4xf32, #tpu.memory_space<vmem>>, vector<36x4xf32>
    %cst_36 = arith.constant dense<0.000000e+00> : vector<256x4xf32>
    %25 = tpu.matmul %23, %24, %cst_36 {dimension_numbers = #tpu.dot_dimension_numbers<[1], [0], [0], [1], [0, 0, 1, 1], [], []>} : vector<256x36xf32>, vector<36x4xf32>, vector<256x4xf32> -> vector<256x4xf32>
    %c0_37 = arith.constant 0 : index
    %c0_38 = arith.constant 0 : index
    %26 = vector.load %arg4[%c0_37, %c0_38] : memref<1x4xf32, #tpu.memory_space<vmem>>, vector<1x4xf32>
    %27 = vector.broadcast %26 : vector<1x4xf32> to vector<256x4xf32>
    %28 = arith.mulf %25, %27 : vector<256x4xf32>
    %c0_39 = arith.constant 0 : index
    %c0_40 = arith.constant 0 : index
    %29 = vector.load %arg5[%c0_39, %c0_40] : memref<1x4xf32, #tpu.memory_space<vmem>>, vector<1x4xf32>
    %30 = vector.broadcast %29 : vector<1x4xf32> to vector<256x4xf32>
    %31 = arith.addf %28, %30 : vector<256x4xf32>
    %cst_41 = arith.constant 0.000000e+00 : f32
    %32 = vector.broadcast %cst_41 : f32 to vector<256x4xf32>
    %33 = arith.maximumf %31, %32 : vector<256x4xf32>
    %34 = vector.shape_cast %33 : vector<256x4xf32> to vector<16x16x4xf32>
    %c1_42 = arith.constant 1 : index
    %c1_43 = arith.constant 1 : index
    %c0_44 = arith.constant 0 : index
    %35 = vector.load %arg9[%c1_42, %c1_43, %c0_44] : memref<18x18x4xf32, #tpu.memory_space<vmem>>, vector<16x16x4xf32>
    tpu.vector_store %arg9[%c1_42, %c1_43, %c0_44], %34 {strides = array<i32>} : memref<18x18x4xf32, #tpu.memory_space<vmem>>, vector<16x16x4xf32>,
    %c0_45 = arith.constant 0 : index
    %c0_46 = arith.constant 0 : index
    %c0_47 = arith.constant 0 : index
    %36 = vector.load %arg9[%c0_45, %c0_46, %c0_47] : memref<18x18x4xf32, #tpu.memory_space<vmem>>, vector<16x16x4xf32>
    %37 = vector.shape_cast %36 : vector<16x16x4xf32> to vector<256x4xf32>
    %c0_48 = arith.constant 0 : index
    %c1_49 = arith.constant 1 : index
    %c0_50 = arith.constant 0 : index
    %38 = vector.load %arg9[%c0_48, %c1_49, %c0_50] : memref<18x18x4xf32, #tpu.memory_space<vmem>>, vector<16x16x4xf32>
    %39 = vector.shape_cast %38 : vector<16x16x4xf32> to vector<256x4xf32>
    %c0_51 = arith.constant 0 : index
    %c2_52 = arith.constant 2 : index
    %c0_53 = arith.constant 0 : index
    %40 = vector.load %arg9[%c0_51, %c2_52, %c0_53] : memref<18x18x4xf32, #tpu.memory_space<vmem>>, vector<16x16x4xf32>
    %41 = vector.shape_cast %40 : vector<16x16x4xf32> to vector<256x4xf32>
    %c1_54 = arith.constant 1 : index
    %c0_55 = arith.constant 0 : index
    %c0_56 = arith.constant 0 : index
    %42 = vector.load %arg9[%c1_54, %c0_55, %c0_56] : memref<18x18x4xf32, #tpu.memory_space<vmem>>, vector<16x16x4xf32>
    %43 = vector.shape_cast %42 : vector<16x16x4xf32> to vector<256x4xf32>
    %c1_57 = arith.constant 1 : index
    %c1_58 = arith.constant 1 : index
    %c0_59 = arith.constant 0 : index
    %44 = vector.load %arg9[%c1_57, %c1_58, %c0_59] : memref<18x18x4xf32, #tpu.memory_space<vmem>>, vector<16x16x4xf32>
    %45 = vector.shape_cast %44 : vector<16x16x4xf32> to vector<256x4xf32>
    %c1_60 = arith.constant 1 : index
    %c2_61 = arith.constant 2 : index
    %c0_62 = arith.constant 0 : index
    %46 = vector.load %arg9[%c1_60, %c2_61, %c0_62] : memref<18x18x4xf32, #tpu.memory_space<vmem>>, vector<16x16x4xf32>
    %47 = vector.shape_cast %46 : vector<16x16x4xf32> to vector<256x4xf32>
    %c2_63 = arith.constant 2 : index
    %c0_64 = arith.constant 0 : index
    %c0_65 = arith.constant 0 : index
    %48 = vector.load %arg9[%c2_63, %c0_64, %c0_65] : memref<18x18x4xf32, #tpu.memory_space<vmem>>, vector<16x16x4xf32>
    %49 = vector.shape_cast %48 : vector<16x16x4xf32> to vector<256x4xf32>
    %c2_66 = arith.constant 2 : index
    %c1_67 = arith.constant 1 : index
    %c0_68 = arith.constant 0 : index
    %50 = vector.load %arg9[%c2_66, %c1_67, %c0_68] : memref<18x18x4xf32, #tpu.memory_space<vmem>>, vector<16x16x4xf32>
    %51 = vector.shape_cast %50 : vector<16x16x4xf32> to vector<256x4xf32>
    %c2_69 = arith.constant 2 : index
    %c2_70 = arith.constant 2 : index
    %c0_71 = arith.constant 0 : index
    %52 = vector.load %arg9[%c2_69, %c2_70, %c0_71] : memref<18x18x4xf32, #tpu.memory_space<vmem>>, vector<16x16x4xf32>
    %53 = vector.shape_cast %52 : vector<16x16x4xf32> to vector<256x4xf32>
    %54 = tpu.concatenate %37, %39, %41, %43, %45, %47, %49, %51, %53 in 1 : vector<256x4xf32>, vector<256x4xf32>, vector<256x4xf32>, vector<256x4xf32>, vector<256x4xf32>, vector<256x4xf32>, vector<256x4xf32>, vector<256x4xf32>, vector<256x4xf32> -> vector<256x36xf32>
    %c0_72 = arith.constant 0 : index
    %c0_73 = arith.constant 0 : index
    %55 = vector.load %arg3[%c0_72, %c0_73] : memref<36x4xf32, #tpu.memory_space<vmem>>, vector<36x4xf32>
    %cst_74 = arith.constant dense<0.000000e+00> : vector<256x4xf32>
    %56 = tpu.matmul %54, %55, %cst_74 {dimension_numbers = #tpu.dot_dimension_numbers<[1], [0], [0], [1], [0, 0, 1, 1], [], []>} : vector<256x36xf32>, vector<36x4xf32>, vector<256x4xf32> -> vector<256x4xf32>
    %c0_75 = arith.constant 0 : index
    %c0_76 = arith.constant 0 : index
    %57 = vector.load %arg6[%c0_75, %c0_76] : memref<1x4xf32, #tpu.memory_space<vmem>>, vector<1x4xf32>
    %58 = vector.broadcast %57 : vector<1x4xf32> to vector<256x4xf32>
    %59 = arith.mulf %56, %58 : vector<256x4xf32>
    %c0_77 = arith.constant 0 : index
    %c0_78 = arith.constant 0 : index
    %60 = vector.load %arg7[%c0_77, %c0_78] : memref<1x4xf32, #tpu.memory_space<vmem>>, vector<1x4xf32>
    %61 = vector.broadcast %60 : vector<1x4xf32> to vector<256x4xf32>
    %62 = arith.addf %59, %61 : vector<256x4xf32>
    %c0_79 = arith.constant 0 : index
    %c0_80 = arith.constant 0 : index
    %c0_81 = arith.constant 0 : index
    %c0_82 = arith.constant 0 : index
    %63 = vector.load %arg1[%c0_79, %c0_80, %c0_81, %c0_82] : memref<1x16x16x4xf32, #tpu.memory_space<vmem>>, vector<1x16x16x4xf32>
    %64 = vector.shape_cast %63 : vector<1x16x16x4xf32> to vector<16x16x4xf32>
    %65 = vector.shape_cast %64 : vector<16x16x4xf32> to vector<256x4xf32>
    %66 = arith.addf %62, %65 : vector<256x4xf32>
    %cst_83 = arith.constant 0.000000e+00 : f32
    %67 = vector.broadcast %cst_83 : f32 to vector<256x4xf32>
    %68 = arith.maximumf %66, %67 : vector<256x4xf32>
    %69 = vector.shape_cast %68 : vector<256x4xf32> to vector<16x16x4xf32>
    %c0_84 = arith.constant 0 : index
    %c0_85 = arith.constant 0 : index
    %c0_86 = arith.constant 0 : index
    %c0_87 = arith.constant 0 : index
    %70 = vector.load %arg8[%c0_84, %c0_85, %c0_86, %c0_87] : memref<1x16x16x4xf32, #tpu.memory_space<vmem>>, vector<1x16x16x4xf32>
    %71 = vector.shape_cast %70 : vector<1x16x16x4xf32> to vector<16x16x4xf32>
    %72 = vector.shape_cast %69 : vector<16x16x4xf32> to vector<1x16x16x4xf32>
    tpu.vector_store %arg8[%c0_84, %c0_85, %c0_86, %c0_87], %72 {strides = array<i32>} : memref<1x16x16x4xf32, #tpu.memory_space<vmem>>, vector<1x16x16x4xf32>,
    return
  }
  func.func @transform_0(%arg0: i32) -> (i32, i32, i32, i32) {
    %c0_i32 = arith.constant 0 : i32
    %c0_i32_0 = arith.constant 0 : i32
    %c0_i32_1 = arith.constant 0 : i32
    %c0_i32_2 = arith.constant 0 : i32
    return %arg0, %c0_i32, %c0_i32_0, %c0_i32_1 : i32, i32, i32, i32
  }
  func.func @transform_1(%arg0: i32) -> (i32, i32) {
    %c0_i32 = arith.constant 0 : i32
    %c0_i32_0 = arith.constant 0 : i32
    %c0_i32_1 = arith.constant 0 : i32
    return %c0_i32, %c0_i32_0 : i32, i32
  }
  func.func @transform_2(%arg0: i32) -> (i32, i32) {
    %c0_i32 = arith.constant 0 : i32
    %c0_i32_0 = arith.constant 0 : i32
    %c0_i32_1 = arith.constant 0 : i32
    return %c0_i32, %c0_i32_0 : i32, i32
  }
  func.func @transform_3(%arg0: i32) -> (i32, i32) {
    %c0_i32 = arith.constant 0 : i32
    %c0_i32_0 = arith.constant 0 : i32
    %c0_i32_1 = arith.constant 0 : i32
    return %c0_i32, %c0_i32_0 : i32, i32
  }
  func.func @transform_4(%arg0: i32) -> (i32, i32) {
    %c0_i32 = arith.constant 0 : i32
    %c0_i32_0 = arith.constant 0 : i32
    %c0_i32_1 = arith.constant 0 : i32
    return %c0_i32, %c0_i32_0 : i32, i32
  }
  func.func @transform_5(%arg0: i32) -> (i32, i32) {
    %c0_i32 = arith.constant 0 : i32
    %c0_i32_0 = arith.constant 0 : i32
    %c0_i32_1 = arith.constant 0 : i32
    return %c0_i32, %c0_i32_0 : i32, i32
  }
  func.func @transform_6(%arg0: i32) -> (i32, i32) {
    %c0_i32 = arith.constant 0 : i32
    %c0_i32_0 = arith.constant 0 : i32
    %c0_i32_1 = arith.constant 0 : i32
    return %c0_i32, %c0_i32_0 : i32, i32
  }
  func.func @transform_7(%arg0: i32) -> (i32, i32, i32, i32) {
    %c0_i32 = arith.constant 0 : i32
    %c0_i32_0 = arith.constant 0 : i32
    %c0_i32_1 = arith.constant 0 : i32
    %c0_i32_2 = arith.constant 0 : i32
    return %arg0, %c0_i32, %c0_i32_0, %c0_i32_1 : i32, i32, i32, i32
  }
}

</mosaic_0001>

<bundles_post_ra>
// kernel: tpu_custom_call.1
= control target key start
LH: loop header
LB: loop body
LE: loop exit
PB: predicated region body
PF: predicated region fallthrough
CT: control target
= control target key end

     0   :  { %s5004_s24 = smov 0   ;;  %s8050_s0 = inlined_call_operand.vmem [shape: f32[2,16,16,4], index: 0, kind: input, shape index: {}]   ;;  %s8051_s1 = inlined_call_operand.vmem [shape: f32[36,4], index: 1, kind: input, shape index: {}]   ;;  %s8052_s2 = inlined_call_operand.vmem [shape: f32[36,4], index: 2, kind: input, shape index: {}]   ;;  %s8053_s3 = inlined_call_operand.vmem [shape: f32[1,4], index: 3, kind: input, shape index: {}]   ;;  %s8054_s4 = inlined_call_operand.vmem [shape: f32[1,4], index: 4, kind: input, shape index: {}]   ;;  %s8055_s5 = inlined_call_operand.vmem [shape: f32[1,4], index: 5, kind: input, shape index: {}]   ;;  %s8056_s6 = inlined_call_operand.vmem [shape: f32[1,4], index: 6, kind: input, shape index: {}]   ;;  %s8057_s7 = inlined_call_operand.vmem [shape: f32[2,16,16,4], index: 7, kind: output, shape index: {}]  }
   0x1 LB: > { %s4607_s25 = sadd.s32 4294967295, %s4953_s24   ;;  %p4611_p0 = scmp.ge.s32.totalorder %s4953_s24, 1  ;;  %s4953_s24 = sphi %s5004_s24, %s17_s24  }
   0x2   : > { %p237_p1 = scmp.lt.s32.totalorder %s4953_s24, 3 }
   0x4   : > { %p238_p2 = pnand %p4611_p0, %p237_p1 }
   0x6   : > { %241 = sbr.rel (%p238_p2) target bundleno = 1679 (0x68f), region = 48 }
   0xd   : > { %vm279_vm0 = vcmask 31744   ;;  %vm282_vm1 = vcmask 25600   ;;  %p5014_p3 = scmp.lt.s32.totalorder %s4607_s25, 1  ;;  %v4955_v0 = vmov 0.0   ;;  %s4956_s8 = smov 4   ;;  %vm2078_vm2 = vcmask 1043456  }
   0xe   : > { %280 = vst.msk [vmem:[#allocation2] sm:$0xff] %vm279_vm0, %v4955_v0  ;;  %281 = vst.msk [vmem:[#allocation2 + $0x8] sm:$0xff] %vm279_vm0, %v4955_v0  ;;  %s4957_s9 = smov 8   ;;  %s4958_s10 = smov 12   ;;  %vm1745_vm3 = vcmask 64512   ;;  %vm1778_vm4 = vcmask 97280  }
   0xf   : > { %284 = vst.msk [vmem:[#allocation2 + $0x18] sm:$0xff] %vm279_vm0, %v4955_v0  ;;  %285 = vst.msk [vmem:[#allocation2 + $0x20] sm:$0xff] %vm279_vm0, %v4955_v0  ;;  %s8570_s25 = smov (!%p5014_p3, %s4607_s25), 1  ;;  %s4959_s11 = smov 16   ;;  %vm1811_vm5 = vcmask 130048   ;;  %vm1844_vm6 = vcmask 162816  }
  0x10   : > { %287 = vst.msk [vmem:[#allocation2 + $0x30] sm:$0xff] %vm279_vm0, %v4955_v0  ;;  %288 = vst.msk [vmem:[#allocation2 + $0x38] sm:$0xff] %vm279_vm0, %v4955_v0  ;;  %s4688_s27 = sshll.u32 %s8570_s25, 8  ;;  %s4960_s12 = smov 20   ;;  %vm1877_vm7 = vcmask 195584   ;;  %vm1910_vm8 = vcmask 228352  }
  0x11   : > { %290 = vst.msk [vmem:[#allocation2 + $0x48] sm:$0xff] %vm279_vm0, %v4955_v0  ;;  %291 = vst.msk [vmem:[#allocation2 + $0x50] sm:$0xff] %vm279_vm0, %v4955_v0  ;;  %s5084_s30 = scalar_lea.vmem %s8050_s0, %s4688_s27  ;;  %s4961_s13 = smov 24   ;;  %vm1943_vm9 = vcmask 261120   ;;  %vm1981_vm10 = vcmask 293888  }
  0x12   : > { %293 = vst.msk [vmem:[#allocation2 + $0x60] sm:$0xff] %vm279_vm0, %v4955_v0  ;;  %294 = vst.msk [vmem:[#allocation2 + $0x68] sm:$0xff] %vm279_vm0, %v4955_v0  ;;  %v335_v1 = vld [vmem:[%s5084_s30] sm:$0xff]  ;;  %v337_v2 = vld [vmem:[%s5084_s30 + $0x10] sm:$0xff]  ;;  %s4962_s26 = smov 28   ;;  %s4963_s28 = smov 32  }
  0x13   : > { %296 = vst.msk [vmem:[#allocation2 + $0x78] sm:$0xff] %vm279_vm0, %v4955_v0  ;;  %297 = vst.msk [vmem:[#allocation2 + $0x80] sm:$0xff] %vm279_vm0, %v4955_v0  ;;  %v336_v3 = vld [vmem:[%s5084_s30 + $0x8] sm:$0xff]  ;;  %v339_v4 = vld [vmem:[%s5084_s30 + $0x20] sm:$0xff]  ;;  %s7777_s14 = scalar_lea.vmem %s8057_s7, %s4688_s27 }
  0x14   : > { %299 = vst.msk [vmem:[#allocation2 + $0x90] sm:$0xff] %vm279_vm0, %v4955_v0  ;;  %300 = vst.msk [vmem:[#allocation2 + $0x98] sm:$0xff] %vm279_vm0, %v4955_v0  ;;  %v338_v5 = vld [vmem:[%s5084_s30 + $0x18] sm:$0xff]  ;;  %v341_v6 = vld [vmem:[%s5084_s30 + $0x30] sm:$0xff] }
  0x15   : > { %302 = vst.msk [vmem:[#allocation2 + $0xa8] sm:$0xff] %vm279_vm0, %v4955_v0  ;;  %303 = vst.msk [vmem:[#allocation2 + $0xb0] sm:$0xff] %vm279_vm0, %v4955_v0  ;;  %v432_v7 = vld [vmem:[#allocation2 + $0x1] sm:$0xff]  ;;  %v342_v11 = vld [vmem:[%s5084_s30 + $0x38] sm:$0xff] }
  0x16   : > { %305 = vst.msk [vmem:[#allocation2 + $0xc0] sm:$0xff] %vm279_vm0, %v4955_v0  ;;  %306 = vst.msk [vmem:[#allocation2 + $0xc8] sm:$0xff] %vm279_vm0, %v4955_v0  ;;  %v340_v9 = vld [vmem:[%s5084_s30 + $0x28] sm:$0xff]  ;;  %721 = vrot.lane.b32.xlu0 %v432_v7, %s4956_s8  ;;  %v343_v10 = vld [vmem:[%s5084_s30 + $0x40] sm:$0xff] }
  0x17   : > { %308 = vst.msk [vmem:[#allocation2 + $0xd8] sm:$0xff] %vm279_vm0, %v4955_v0  ;;  %309 = vst.msk [vmem:[#allocation2 + $0xe0] sm:$0xff] %vm279_vm0, %v4955_v0  ;;  %v345_v12 = vld [vmem:[%s5084_s30 + $0x50] sm:$0xff]  ;;  %v344_v13 = vld [vmem:[%s5084_s30 + $0x48] sm:$0xff] }
  0x18   : > { %311 = vst.msk [vmem:[#allocation2 + $0xf0] sm:$0xff] %vm279_vm0, %v4955_v0  ;;  %312 = vst.msk [vmem:[#allocation2 + $0xf8] sm:$0xff] %vm279_vm0, %v4955_v0  ;;  %v347_v14 = vld [vmem:[%s5084_s30 + $0x60] sm:$0xff]  ;;  %v346_v15 = vld [vmem:[%s5084_s30 + $0x58] sm:$0xff] }
  0x19   : > { %314 = vst.msk [vmem:[#allocation2 + $0x108] sm:$0xff] %vm279_vm0, %v4955_v0  ;;  %315 = vst.msk [vmem:[#allocation2 + $0x110] sm:$0xff] %vm279_vm0, %v4955_v0  ;;  %v349_v16 = vld [vmem:[%s5084_s30 + $0x70] sm:$0xff]  ;;  %v348_v17 = vld [vmem:[%s5084_s30 + $0x68] sm:$0xff] }
  0x1a   : > { %317 = vst.msk [vmem:[#allocation2 + $0x120] sm:$0xff] %vm279_vm0, %v4955_v0  ;;  %318 = vst.msk [vmem:[#allocation2 + $0x128] sm:$0xff] %vm279_vm0, %v4955_v0  ;;  %v351_v18 = vld [vmem:[%s5084_s30 + $0x80] sm:$0xff]  ;;  %v350_v19 = vld [vmem:[%s5084_s30 + $0x78] sm:$0xff] }
  0x1b   : > { %320 = vst.msk [vmem:[#allocation2 + $0x138] sm:$0xff] %vm279_vm0, %v4955_v0  ;;  %321 = vst.msk [vmem:[#allocation2 + $0x140] sm:$0xff] %vm279_vm0, %v4955_v0  ;;  %v353_v20 = vld [vmem:[%s5084_s30 + $0x90] sm:$0xff]  ;;  %v352_v21 = vld [vmem:[%s5084_s30 + $0x88] sm:$0xff] }
  0x1c   : > { %323 = vst.msk [vmem:[#allocation2 + $0x150] sm:$0xff] %vm279_vm0, %v4955_v0  ;;  %324 = vst.msk [vmem:[#allocation2 + $0x158] sm:$0xff] %vm279_vm0, %v4955_v0  ;;  %v355_v22 = vld [vmem:[%s5084_s30 + $0xa0] sm:$0xff]  ;;  %v354_v23 = vld [vmem:[%s5084_s30 + $0x98] sm:$0xff] }
  0x1d   : > { %326 = vst.msk [vmem:[#allocation2 + $0x168] sm:$0xff] %vm279_vm0, %v4955_v0  ;;  %327 = vst.msk [vmem:[#allocation2 + $0x170] sm:$0xff] %vm279_vm0, %v4955_v0  ;;  %v357_v24 = vld [vmem:[%s5084_s30 + $0xb0] sm:$0xff]  ;;  %v356_v28 = vld [vmem:[%s5084_s30 + $0xa8] sm:$0xff] }
  0x1e   : > { %329 = vst.msk [vmem:[#allocation2 + $0x180] sm:$0xff] %vm279_vm0, %v4955_v0  ;;  %330 = vst.msk [vmem:[#allocation2 + $0x188] sm:$0xff] %vm279_vm0, %v4955_v0  ;;  %v359_v29 = vld [vmem:[%s5084_s30 + $0xc0] sm:$0xff]  ;;  %v358_v33 = vld [vmem:[%s5084_s30 + $0xb8] sm:$0xff] }
  0x1f   : > { %332 = vst.msk [vmem:[#allocation2 + $0x198] sm:$0xff] %vm279_vm0, %v4955_v0  ;;  %333 = vst.msk [vmem:[#allocation2 + $0x1a0] sm:$0xff] %vm279_vm0, %v4955_v0  ;;  %v361_v34 = vld [vmem:[%s5084_s30 + $0xd0] sm:$0xff]  ;;  %v360_v35 = vld [vmem:[%s5084_s30 + $0xc8] sm:$0xff] }
  0x20   : > { %283 = vst.msk [vmem:[#allocation2 + $0x10] sm:$0x3] %vm282_vm1, %v4955_v0  ;;  %286 = vst.msk [vmem:[#allocation2 + $0x28] sm:$0x3] %vm282_vm1, %v4955_v0  ;;  %v363_v36 = vld [vmem:[%s5084_s30 + $0xe0] sm:$0xff]  ;;  %v362_v37 = vld [vmem:[%s5084_s30 + $0xd8] sm:$0xff] }
  0x21   : > { %289 = vst.msk [vmem:[#allocation2 + $0x40] sm:$0x3] %vm282_vm1, %v4955_v0  ;;  %292 = vst.msk [vmem:[#allocation2 + $0x58] sm:$0x3] %vm282_vm1, %v4955_v0  ;;  %v364_v39 = vld [vmem:[%s5084_s30 + $0xe8] sm:$0xff]  ;;  %v365_v58 = vld [vmem:[%s5084_s30 + $0xf0] sm:$0xff] }
  0x22   : > { %295 = vst.msk [vmem:[#allocation2 + $0x70] sm:$0x3] %vm282_vm1, %v4955_v0  ;;  %298 = vst.msk [vmem:[#allocation2 + $0x88] sm:$0x3] %vm282_vm1, %v4955_v0  ;;  %v366_v62 = vld [vmem:[%s5084_s30 + $0xf8] sm:$0xff] }
  0x23   : > { %301 = vst.msk [vmem:[#allocation2 + $0xa0] sm:$0x3] %vm282_vm1, %v4955_v0  ;;  %304 = vst.msk [vmem:[#allocation2 + $0xb8] sm:$0x3] %vm282_vm1, %v4955_v0 }
  0x24   : > { %307 = vst.msk [vmem:[#allocation2 + $0xd0] sm:$0x3] %vm282_vm1, %v4955_v0  ;;  %310 = vst.msk [vmem:[#allocation2 + $0xe8] sm:$0x3] %vm282_vm1, %v4955_v0 }
  0x25   : > { %313 = vst.msk [vmem:[#allocation2 + $0x100] sm:$0x3] %vm282_vm1, %v4955_v0  ;;  %316 = vst.msk [vmem:[#allocation2 + $0x118] sm:$0x3] %vm282_vm1, %v4955_v0 }
  0x26   : > { %319 = vst.msk [vmem:[#allocation2 + $0x130] sm:$0x3] %vm282_vm1, %v4955_v0  ;;  %322 = vst.msk [vmem:[#allocation2 + $0x148] sm:$0x3] %vm282_vm1, %v4955_v0 }
  0x27   : > { %325 = vst.msk [vmem:[#allocation2 + $0x160] sm:$0x3] %vm282_vm1, %v4955_v0  ;;  %328 = vst.msk [vmem:[#allocation2 + $0x178] sm:$0x3] %vm282_vm1, %v4955_v0  ;;  %v433_v8 = vld [vmem:[#allocation2 + $0x9] sm:$0xff] }
  0x28   : > { %331 = vst.msk [vmem:[#allocation2 + $0x190] sm:$0x3] %vm282_vm1, %v4955_v0  ;;  %334 = vst.msk [vmem:[#allocation2 + $0x1a8] sm:$0x3] %vm282_vm1, %v4955_v0  ;;  %723 = vrot.lane.b32.xlu0 %v433_v8, %s4956_s8  ;;  %v464_v0 = vld [vmem:[#allocation2 + $0x2] sm:$0xff] }
  0x29   : > { %368 = vst.msk [vmem:[#allocation2 + $0x19] sm:$0xff] %vm279_vm0, %v335_v1  ;;  %370 = vst.msk [vmem:[#allocation2 + $0x31] sm:$0xff] %vm279_vm0, %v337_v2 }
  0x2a   : > { %369 = vst.msk [vmem:[#allocation2 + $0x21] sm:$0xff] %vm279_vm0, %v336_v3  ;;  %372 = vst.msk [vmem:[#allocation2 + $0x49] sm:$0xff] %vm279_vm0, %v339_v4  ;;  %v465_v3 = vld [vmem:[#allocation2 + $0xa] sm:$0xff] }
  0x2b   : > { %371 = vst.msk [vmem:[#allocation2 + $0x39] sm:$0xff] %vm279_vm0, %v338_v5  ;;  %374 = vst.msk [vmem:[#allocation2 + $0x61] sm:$0xff] %vm279_vm0, %v341_v6 }
  0x2c   : > { %373 = vst.msk [vmem:[#allocation2 + $0x51] sm:$0xff] %vm279_vm0, %v340_v9  ;;  %376 = vst.msk [vmem:[#allocation2 + $0x79] sm:$0xff] %vm279_vm0, %v343_v10 }
  0x2d   : > { %375 = vst.msk [vmem:[#allocation2 + $0x69] sm:$0xff] %vm279_vm0, %v342_v11  ;;  %378 = vst.msk [vmem:[#allocation2 + $0x91] sm:$0xff] %vm279_vm0, %v345_v12 }
  0x2e   : > { %377 = vst.msk [vmem:[#allocation2 + $0x81] sm:$0xff] %vm279_vm0, %v344_v13  ;;  %380 = vst.msk [vmem:[#allocation2 + $0xa9] sm:$0xff] %vm279_vm0, %v347_v14 }
  0x2f   : > { %379 = vst.msk [vmem:[#allocation2 + $0x99] sm:$0xff] %vm279_vm0, %v346_v15  ;;  %382 = vst.msk [vmem:[#allocation2 + $0xc1] sm:$0xff] %vm279_vm0, %v349_v16 }
  0x30   : > { %381 = vst.msk [vmem:[#allocation2 + $0xb1] sm:$0xff] %vm279_vm0, %v348_v17  ;;  %384 = vst.msk [vmem:[#allocation2 + $0xd9] sm:$0xff] %vm279_vm0, %v351_v18  ;;  %v5129_v25 = vld [vmem:[#allocation2 + $0x19] sm:$0xff]  ;;  %v5131_v26 = vld [vmem:[#allocation2 + $0x31] sm:$0xff] }
  0x31   : > { %383 = vst.msk [vmem:[#allocation2 + $0xc9] sm:$0xff] %vm279_vm0, %v350_v19  ;;  %386 = vst.msk [vmem:[#allocation2 + $0xf1] sm:$0xff] %vm279_vm0, %v353_v20  ;;  %725 = vrot.lane.b32.xlu1 %v5129_v25, %s4956_s8  ;;  %v5138_v27 = vld [vmem:[#allocation2 + $0x21] sm:$0xff]  ;;  %729 = vrot.lane.b32.xlu0 %v5131_v26, %s4956_s8  ;;  %v5146_v30 = vld [vmem:[#allocation2 + $0x49] sm:$0xff] }
  0x32   : > { %385 = vst.msk [vmem:[#allocation2 + $0xe1] sm:$0xff] %vm279_vm0, %v352_v21  ;;  %388 = vst.msk [vmem:[#allocation2 + $0x109] sm:$0xff] %vm279_vm0, %v355_v22  ;;  %v5150_v31 = vld [vmem:[#allocation2 + $0x39] sm:$0xff]  ;;  %v5154_v32 = vld [vmem:[#allocation2 + $0x61] sm:$0xff] }
  0x33   : > { %387 = vst.msk [vmem:[#allocation2 + $0xf9] sm:$0xff] %vm279_vm0, %v354_v23  ;;  %390 = vst.msk [vmem:[#allocation2 + $0x121] sm:$0xff] %vm279_vm0, %v357_v24  ;;  %v5166_v38 = vld [vmem:[#allocation2 + $0x51] sm:$0xff]  ;;  %v5174_v40 = vld [vmem:[#allocation2 + $0x79] sm:$0xff] }
  0x34   : > { %389 = vst.msk [vmem:[#allocation2 + $0x111] sm:$0xff] %vm279_vm0, %v356_v28  ;;  %392 = vst.msk [vmem:[#allocation2 + $0x139] sm:$0xff] %vm279_vm0, %v359_v29  ;;  %v5178_v41 = vld [vmem:[#allocation2 + $0x69] sm:$0xff]  ;;  %v5182_v42 = vld [vmem:[#allocation2 + $0x91] sm:$0xff] }
  0x35   : > { %727 = vrot.lane.b32.xlu1 %v5138_v27, %s4956_s8  ;;  %733 = vrot.lane.b32.xlu0 %v5146_v30, %s4956_s8  ;;  %391 = vst.msk [vmem:[#allocation2 + $0x129] sm:$0xff] %vm279_vm0, %v358_v33  ;;  %394 = vst.msk [vmem:[#allocation2 + $0x151] sm:$0xff] %vm279_vm0, %v361_v34  ;;  %v5186_v43 = vld [vmem:[#allocation2 + $0x81] sm:$0xff]  ;;  %v5190_v44 = vld [vmem:[#allocation2 + $0xa9] sm:$0xff] }
  0x36   : > { %393 = vst.msk [vmem:[#allocation2 + $0x141] sm:$0xff] %vm279_vm0, %v360_v35  ;;  %396 = vst.msk [vmem:[#allocation2 + $0x169] sm:$0xff] %vm279_vm0, %v363_v36  ;;  %v5194_v45 = vld [vmem:[#allocation2 + $0x99] sm:$0xff]  ;;  %v5198_v46 = vld [vmem:[#allocation2 + $0xc1] sm:$0xff] }
  0x37   : > { %395 = vst.msk [vmem:[#allocation2 + $0x159] sm:$0xff] %vm279_vm0, %v362_v37  ;;  %397 = vst.msk [vmem:[#allocation2 + $0x171] sm:$0xff] %vm279_vm0, %v364_v39  ;;  %v5202_v47 = vld [vmem:[#allocation2 + $0xb1] sm:$0xff]  ;;  %v5206_v48 = vld [vmem:[#allocation2 + $0xd9] sm:$0xff] }
  0x38   : > { %v5210_v49 = vld [vmem:[#allocation2 + $0xc9] sm:$0xff]  ;;  %v5214_v50 = vld [vmem:[#allocation2 + $0xf1] sm:$0xff]  ;;  %398 = vst.msk [vmem:[#allocation2 + $0x181] sm:$0xff] %vm279_vm0, %v365_v58  ;;  %399 = vst.msk [vmem:[#allocation2 + $0x189] sm:$0xff] %vm279_vm0, %v366_v62 }
  0x39   : > { %731 = vrot.lane.b32.xlu1 %v5150_v31, %s4956_s8  ;;  %737 = vrot.lane.b32.xlu0 %v5154_v32, %s4956_s8  ;;  %v5218_v51 = vld [vmem:[#allocation2 + $0xe1] sm:$0xff]  ;;  %v5222_v52 = vld [vmem:[#allocation2 + $0x109] sm:$0xff]  ;;  %v5277_v4 = vld [vmem:[#allocation2 + $0x32] sm:$0xff] }
  0x3a   : > { %v5226_v53 = vld [vmem:[#allocation2 + $0xf9] sm:$0xff]  ;;  %v5230_v54 = vld [vmem:[#allocation2 + $0x121] sm:$0xff]  ;;  %v5284_v6 = vld [vmem:[#allocation2 + $0x4a] sm:$0xff] }
  0x3b   : > { %v5234_v55 = vld [vmem:[#allocation2 + $0x111] sm:$0xff]  ;;  %v5238_v56 = vld [vmem:[#allocation2 + $0x139] sm:$0xff]  ;;  %v5280_v5 = vld [vmem:[#allocation2 + $0x22] sm:$0xff] }
  0x3c   : > { %v5242_v57 = vld [vmem:[#allocation2 + $0x129] sm:$0xff]  ;;  %v5248_v59 = vld [vmem:[#allocation2 + $0x151] sm:$0xff]  ;;  %v5271_v2 = vld [vmem:[#allocation2 + $0x1a] sm:$0xff] }
  0x3d   : > { %735 = vrot.lane.b32.xlu1 %v5166_v38, %s4956_s8  ;;  %741 = vrot.lane.b32.xlu0 %v5174_v40, %s4956_s8  ;;  %v5252_v60 = vld [vmem:[#allocation2 + $0x141] sm:$0xff]  ;;  %v5256_v61 = vld [vmem:[#allocation2 + $0x169] sm:$0xff]  ;;  %v5296_v9 = vld [vmem:[#allocation2 + $0x52] sm:$0xff] }
  0x3e   : > { %v5262_v63 = vld [vmem:[#allocation2 + $0x159] sm:$0xff]  ;;  %v5268_v1 = vld [vmem:[#allocation2 + $0x171] sm:$0xff]  ;;  %v5292_v8 = vld [vmem:[#allocation2 + $0x62] sm:$0xff] }
  0x3f   : > { %v5288_v7 = vld [vmem:[#allocation2 + $0x3a] sm:$0xff]  ;;  %v5304_v11 = vld [vmem:[#allocation2 + $0x6a] sm:$0xff]  ;;  %v5308_v12 = vld [vmem:[#allocation2 + $0x92] sm:$0xff] }
  0x40   : > { %v5300_v10 = vld [vmem:[#allocation2 + $0x7a] sm:$0xff]  ;;  %v5312_v13 = vld [vmem:[#allocation2 + $0x82] sm:$0xff]  ;;  %v5316_v14 = vld [vmem:[#allocation2 + $0xaa] sm:$0xff] }
  0x41   : > { %739 = vrot.lane.b32.xlu1 %v5178_v41, %s4956_s8  ;;  %745 = vrot.lane.b32.xlu0 %v5182_v42, %s4956_s8  ;;  %v5320_v15 = vld [vmem:[#allocation2 + $0x9a] sm:$0xff]  ;;  %v5324_v16 = vld [vmem:[#allocation2 + $0xc2] sm:$0xff]  ;;  %v5328_v17 = vld [vmem:[#allocation2 + $0xb2] sm:$0xff] }
  0x42   : > { %v5332_v18 = vld [vmem:[#allocation2 + $0xda] sm:$0xff]  ;;  %v5336_v19 = vld [vmem:[#allocation2 + $0xca] sm:$0xff]  ;;  %v5340_v20 = vld [vmem:[#allocation2 + $0xf2] sm:$0xff] }
  0x43   : > { %v5344_v21 = vld [vmem:[#allocation2 + $0xe2] sm:$0xff]  ;;  %v5348_v22 = vld [vmem:[#allocation2 + $0x10a] sm:$0xff]  ;;  %v5352_v23 = vld [vmem:[#allocation2 + $0xfa] sm:$0xff] }
  0x44   : > { %v5356_v24 = vld [vmem:[#allocation2 + $0x122] sm:$0xff]  ;;  %v5360_v28 = vld [vmem:[#allocation2 + $0x112] sm:$0xff]  ;;  %v5364_v29 = vld [vmem:[#allocation2 + $0x13a] sm:$0xff] }
  0x45   : > { %743 = vrot.lane.b32.xlu1 %v5186_v43, %s4956_s8  ;;  %749 = vrot.lane.b32.xlu0 %v5190_v44, %s4956_s8  ;;  %v5370_v34 = vld [vmem:[#allocation2 + $0x12a] sm:$0xff]  ;;  %v5374_v35 = vld [vmem:[#allocation2 + $0x152] sm:$0xff]  ;;  %v5380_v37 = vld [vmem:[#allocation2 + $0x142] sm:$0xff] }
  0x46   : > { %8097 = vst [vmem:[#allocation5_spill] sm:$0xff] %v5380_v37  ;;  %v5386_v58 = vld [vmem:[#allocation2 + $0x16a] sm:$0xff] }
  0x47   : > { %8099 = vst [vmem:[#allocation7_spill] sm:$0xff] %v5386_v58 }
  0x49   : > { %747 = vrot.lane.b32.xlu1 %v5194_v45, %s4956_s8  ;;  %753 = vrot.lane.b32.xlu0 %v5198_v46, %s4956_s8 }
  0x4d   : > { %751 = vrot.lane.b32.xlu1 %v5202_v47, %s4956_s8  ;;  %757 = vrot.lane.b32.xlu0 %v5206_v48, %s4956_s8 }
  0x51   : > { %755 = vrot.lane.b32.xlu1 %v5210_v49, %s4956_s8  ;;  %761 = vrot.lane.b32.xlu0 %v5214_v50, %s4956_s8 }
  0x55   : > { %759 = vrot.lane.b32.xlu1 %v5218_v51, %s4956_s8  ;;  %765 = vrot.lane.b32.xlu0 %v5222_v52, %s4956_s8 }
  0x59   : > { %763 = vrot.lane.b32.xlu1 %v5226_v53, %s4956_s8  ;;  %769 = vrot.lane.b32.xlu0 %v5230_v54, %s4956_s8 }
  0x5d   : > { %767 = vrot.lane.b32.xlu1 %v5234_v55, %s4956_s8  ;;  %773 = vrot.lane.b32.xlu0 %v5238_v56, %s4956_s8 }
  0x61   : > { %771 = vrot.lane.b32.xlu1 %v5242_v57, %s4956_s8  ;;  %777 = vrot.lane.b32.xlu0 %v5248_v59, %s4956_s8 }
  0x65   : > { %775 = vrot.lane.b32.xlu1 %v5252_v60, %s4956_s8  ;;  %781 = vrot.lane.b32.xlu0 %v5256_v61, %s4956_s8 }
  0x69   : > { %779 = vrot.lane.b32.xlu1 %v5262_v63, %s4956_s8  ;;  %849 = vrot.lane.b32.xlu0 %v464_v0, %s4957_s9  ;;  %v5392_v0 = vld [vmem:[#allocation2 + $0x15a] sm:$0xff] }
  0x6a   : > { %8101 = vst [vmem:[#allocation9_spill] sm:$0xff] %v5392_v0 }
  0x6d   : > { %783 = vrot.lane.b32.xlu1 %v5268_v1, %s4956_s8  ;;  %853 = vrot.lane.b32.xlu0 %v5271_v2, %s4957_s9 }
  0x71   : > { %851 = vrot.lane.b32.xlu1 %v465_v3, %s4957_s9  ;;  %857 = vrot.lane.b32.xlu0 %v5277_v4, %s4957_s9 }
  0x75   : > { %855 = vrot.lane.b32.xlu1 %v5280_v5, %s4957_s9  ;;  %861 = vrot.lane.b32.xlu0 %v5284_v6, %s4957_s9 }
  0x79   : > { %859 = vrot.lane.b32.xlu1 %v5288_v7, %s4957_s9  ;;  %865 = vrot.lane.b32.xlu0 %v5292_v8, %s4957_s9 }
  0x7d   : > { %863 = vrot.lane.b32.xlu1 %v5296_v9, %s4957_s9  ;;  %869 = vrot.lane.b32.xlu0 %v5300_v10, %s4957_s9 }
  0x81   : > { %867 = vrot.lane.b32.xlu1 %v5304_v11, %s4957_s9  ;;  %873 = vrot.lane.b32.xlu0 %v5308_v12, %s4957_s9 }
  0x85   : > { %871 = vrot.lane.b32.xlu1 %v5312_v13, %s4957_s9  ;;  %877 = vrot.lane.b32.xlu0 %v5316_v14, %s4957_s9 }
  0x88   : > { %v5366_v33 = vpop.permute.xlu0 %721 }
  0x89   : > { %875 = vrot.lane.b32.xlu1 %v5320_v15, %s4957_s9  ;;  %881 = vrot.lane.b32.xlu0 %v5324_v16, %s4957_s9  ;;  %8095 = vst [vmem:[#allocation3_spill] sm:$0xff] %v5366_v33 }
  0x8d   : > { %879 = vrot.lane.b32.xlu1 %v5328_v17, %s4957_s9  ;;  %885 = vrot.lane.b32.xlu0 %v5332_v18, %s4957_s9 }
  0x91   : > { %883 = vrot.lane.b32.xlu1 %v5336_v19, %s4957_s9  ;;  %889 = vrot.lane.b32.xlu0 %v5340_v20, %s4957_s9 }
  0x95   : > { %887 = vrot.lane.b32.xlu1 %v5344_v21, %s4957_s9  ;;  %893 = vrot.lane.b32.xlu0 %v5348_v22, %s4957_s9 }
  0x99   : > { %891 = vrot.lane.b32.xlu1 %v5352_v23, %s4957_s9  ;;  %897 = vrot.lane.b32.xlu0 %v5356_v24, %s4957_s9 }
  0x9a   : > { %v5376_v36 = vpop.permute.xlu0 %723 }
  0x9b   : > { %8096 = vst [vmem:[#allocation4_spill] sm:$0xff] %v5376_v36  ;;  %v5404_v36 = vld [vmem:[#allocation2 + $0x172] sm:$0xff] }
  0x9c   : > { %8105 = vst [vmem:[#allocation13_spill] sm:$0xff] %v5404_v36 }
  0x9d   : > { %895 = vrot.lane.b32.xlu1 %v5360_v28, %s4957_s9  ;;  %901 = vrot.lane.b32.xlu0 %v5364_v29, %s4957_s9 }
  0xa1   : > { %899 = vrot.lane.b32.xlu1 %v5370_v34, %s4957_s9  ;;  %905 = vrot.lane.b32.xlu0 %v5374_v35, %s4957_s9 }
  0xa3   : > { %v5384_v39 = vpop.permute.xlu1 %725  ;;  %v5388_v62 = vpop.permute.xlu0 %729 }
  0xa4   : > { %8098 = vst [vmem:[#allocation6_spill] sm:$0xff] %v5384_v39  ;;  %8100 = vst [vmem:[#allocation8_spill] sm:$0xff] %v5388_v62  ;;  %v5402_v39 = vld [vmem:[#allocation2 + $0x18] sm:$0xff] }
  0xa5   : > { %903 = vrot.lane.b32.xlu1 %v5380_v37, %s4957_s9  ;;  %909 = vrot.lane.b32.xlu0 %v5386_v58, %s4957_s9  ;;  %8104 = vst [vmem:[#allocation12_spill] sm:$0xff] %v5402_v39 }
  0xa7   : > { %v5396_v3 = vpop.permute.xlu1 %727  ;;  %v5398_v33 = vpop.permute.xlu0 %733 }
  0xa8   : > { %8102 = vst [vmem:[#allocation10_spill] sm:$0xff] %v5396_v3  ;;  %8103 = vst [vmem:[#allocation11_spill] sm:$0xff] %v5398_v33  ;;  %v5414_v3 = vld [vmem:[#allocation2 + $0x30] sm:$0xff] }
  0xa9   : > { %907 = vrot.lane.b32.xlu1 %v5392_v0, %s4957_s9  ;;  %977 = vrot.lane.b32.xlu0 %v5402_v39, %s4958_s10  ;;  %8108 = vst [vmem:[#allocation16_spill] sm:$0xff] %v5414_v3  ;;  %v403_v0 = vld [vmem:[#allocation2 + $0x20] sm:$0xff]  ;;  %v5423_v39 = vld [vmem:[#allocation2 + $0x48] sm:$0xff] }
  0xaa   : > { %8111 = vst [vmem:[#allocation19_spill] sm:$0xff] %v5423_v39 }
  0xab   : > { %v5408_v62 = vpop.permute.xlu1 %731  ;;  %v5410_v37 = vpop.permute.xlu0 %737 }
  0xac   : > { %8106 = vst [vmem:[#allocation14_spill] sm:$0xff] %v5408_v62  ;;  %8107 = vst [vmem:[#allocation15_spill] sm:$0xff] %v5410_v37  ;;  %v5429_v62 = vld [vmem:[#allocation2 + $0x38] sm:$0xff] }
  0xad   : > { %911 = vrot.lane.b32.xlu1 %v5404_v36, %s4957_s9  ;;  %981 = vrot.lane.b32.xlu0 %v5414_v3, %s4958_s10  ;;  %8113 = vst [vmem:[#allocation21_spill] sm:$0xff] %v5429_v62 }
  0xaf   : > { %v5418_v33 = vpop.permute.xlu1 %735  ;;  %v5420_v58 = vpop.permute.xlu0 %741 }
  0xb0   : > { %8109 = vst [vmem:[#allocation17_spill] sm:$0xff] %v5418_v33  ;;  %8110 = vst [vmem:[#allocation18_spill] sm:$0xff] %v5420_v58  ;;  %v5435_v33 = vld [vmem:[#allocation2 + $0x60] sm:$0xff]  ;;  %v5441_v58 = vld [vmem:[#allocation2 + $0x50] sm:$0xff] }
  0xb1   : > { %979 = vrot.lane.b32.xlu1 %v403_v0, %s4958_s10  ;;  %985 = vrot.lane.b32.xlu0 %v5423_v39, %s4958_s10  ;;  %8115 = vst [vmem:[#allocation23_spill] sm:$0xff] %v5435_v33  ;;  %8117 = vst [vmem:[#allocation25_spill] sm:$0xff] %v5441_v58 }
  0xb3   : > { %v5427_v37 = vpop.permute.xlu1 %739  ;;  %v5431_v36 = vpop.permute.xlu0 %745 }
  0xb4   : > { %8112 = vst [vmem:[#allocation20_spill] sm:$0xff] %v5427_v37  ;;  %8114 = vst [vmem:[#allocation22_spill] sm:$0xff] %v5431_v36  ;;  %v5447_v37 = vld [vmem:[#allocation2 + $0x78] sm:$0xff] }
  0xb5   : > { %983 = vrot.lane.b32.xlu1 %v5429_v62, %s4958_s10  ;;  %989 = vrot.lane.b32.xlu0 %v5435_v33, %s4958_s10  ;;  %8119 = vst [vmem:[#allocation27_spill] sm:$0xff] %v5447_v37  ;;  %v5453_v62 = vld [vmem:[#allocation2 + $0x68] sm:$0xff] }
  0xb6   : > { %8121 = vst [vmem:[#allocation29_spill] sm:$0xff] %v5453_v62 }
  0xb7   : > { %v5439_v0 = vpop.permute.xlu1 %743  ;;  %v5443_v3 = vpop.permute.xlu0 %749 }
  0xb8   : > { %8116 = vst [vmem:[#allocation24_spill] sm:$0xff] %v5439_v0  ;;  %8118 = vst [vmem:[#allocation26_spill] sm:$0xff] %v5443_v3  ;;  %v5459_v0 = vld [vmem:[#allocation2 + $0x90] sm:$0xff] }
  0xb9   : > { %987 = vrot.lane.b32.xlu1 %v5441_v58, %s4958_s10  ;;  %993 = vrot.lane.b32.xlu0 %v5447_v37, %s4958_s10  ;;  %8123 = vst [vmem:[#allocation31_spill] sm:$0xff] %v5459_v0  ;;  %v5465_v58 = vld [vmem:[#allocation2 + $0x80] sm:$0xff] }
  0xba   : > { %8125 = vst [vmem:[#allocation33_spill] sm:$0xff] %v5465_v58 }
  0xbb   : > { %v5451_v36 = vpop.permute.xlu1 %747  ;;  %v5455_v39 = vpop.permute.xlu0 %753 }
  0xbc   : > { %8120 = vst [vmem:[#allocation28_spill] sm:$0xff] %v5451_v36  ;;  %8122 = vst [vmem:[#allocation30_spill] sm:$0xff] %v5455_v39  ;;  %v5471_v36 = vld [vmem:[#allocation2 + $0xa8] sm:$0xff] }
  0xbd   : > { %991 = vrot.lane.b32.xlu1 %v5453_v62, %s4958_s10  ;;  %997 = vrot.lane.b32.xlu0 %v5459_v0, %s4958_s10  ;;  %8127 = vst [vmem:[#allocation35_spill] sm:$0xff] %v5471_v36  ;;  %v5477_v62 = vld [vmem:[#allocation2 + $0x98] sm:$0xff] }
  0xbe   : > { %8129 = vst [vmem:[#allocation37_spill] sm:$0xff] %v5477_v62 }
  0xbf   : > { %v5463_v3 = vpop.permute.xlu1 %751  ;;  %v5467_v33 = vpop.permute.xlu0 %757 }
  0xc0   : > { %8124 = vst [vmem:[#allocation32_spill] sm:$0xff] %v5463_v3  ;;  %8126 = vst [vmem:[#allocation34_spill] sm:$0xff] %v5467_v33  ;;  %v5483_v3 = vld [vmem:[#allocation2 + $0xc0] sm:$0xff] }
  0xc1   : > { %995 = vrot.lane.b32.xlu1 %v5465_v58, %s4958_s10  ;;  %1001 = vrot.lane.b32.xlu0 %v5471_v36, %s4958_s10  ;;  %8131 = vst [vmem:[#allocation39_spill] sm:$0xff] %v5483_v3  ;;  %v5489_v58 = vld [vmem:[#allocation2 + $0xb0] sm:$0xff] }
  0xc2   : > { %8133 = vst [vmem:[#allocation41_spill] sm:$0xff] %v5489_v58 }
  0xc3   : > { %v5475_v39 = vpop.permute.xlu1 %755  ;;  %v5479_v37 = vpop.permute.xlu0 %761 }
  0xc4   : > { %8128 = vst [vmem:[#allocation36_spill] sm:$0xff] %v5475_v39  ;;  %8130 = vst [vmem:[#allocation38_spill] sm:$0xff] %v5479_v37  ;;  %v5495_v39 = vld [vmem:[#allocation2 + $0xd8] sm:$0xff] }
  0xc5   : > { %999 = vrot.lane.b32.xlu1 %v5477_v62, %s4958_s10  ;;  %1005 = vrot.lane.b32.xlu0 %v5483_v3, %s4958_s10  ;;  %8135 = vst [vmem:[#allocation43_spill] sm:$0xff] %v5495_v39  ;;  %v5501_v62 = vld [vmem:[#allocation2 + $0xc8] sm:$0xff] }
  0xc6   : > { %8137 = vst [vmem:[#allocation45_spill] sm:$0xff] %v5501_v62 }
  0xc7   : > { %v5487_v33 = vpop.permute.xlu1 %759  ;;  %v5491_v0 = vpop.permute.xlu0 %765 }
  0xc8   : > { %8132 = vst [vmem:[#allocation40_spill] sm:$0xff] %v5487_v33  ;;  %8134 = vst [vmem:[#allocation42_spill] sm:$0xff] %v5491_v0  ;;  %v5507_v33 = vld [vmem:[#allocation2 + $0xf0] sm:$0xff] }
  0xc9   : > { %1003 = vrot.lane.b32.xlu1 %v5489_v58, %s4958_s10  ;;  %1009 = vrot.lane.b32.xlu0 %v5495_v39, %s4958_s10  ;;  %8139 = vst [vmem:[#allocation47_spill] sm:$0xff] %v5507_v33  ;;  %v5513_v58 = vld [vmem:[#allocation2 + $0xe0] sm:$0xff] }
  0xca   : > { %8141 = vst [vmem:[#allocation49_spill] sm:$0xff] %v5513_v58 }
  0xcb   : > { %v5499_v37 = vpop.permute.xlu1 %763  ;;  %v5503_v36 = vpop.permute.xlu0 %769 }
  0xcc   : > { %8136 = vst [vmem:[#allocation44_spill] sm:$0xff] %v5499_v37  ;;  %8138 = vst [vmem:[#allocation46_spill] sm:$0xff] %v5503_v36  ;;  %v5519_v37 = vld [vmem:[#allocation2 + $0x108] sm:$0xff] }
  0xcd   : > { %1007 = vrot.lane.b32.xlu1 %v5501_v62, %s4958_s10  ;;  %1013 = vrot.lane.b32.xlu0 %v5507_v33, %s4958_s10  ;;  %8143 = vst [vmem:[#allocation51_spill] sm:$0xff] %v5519_v37  ;;  %v5525_v62 = vld [vmem:[#allocation2 + $0xf8] sm:$0xff] }
  0xce   : > { %8145 = vst [vmem:[#allocation53_spill] sm:$0xff] %v5525_v62 }
  0xcf   : > { %v5511_v0 = vpop.permute.xlu1 %767  ;;  %v5515_v3 = vpop.permute.xlu0 %773 }
  0xd0   : > { %8140 = vst [vmem:[#allocation48_spill] sm:$0xff] %v5511_v0  ;;  %8142 = vst [vmem:[#allocation50_spill] sm:$0xff] %v5515_v3  ;;  %v5531_v0 = vld [vmem:[#allocation2 + $0x120] sm:$0xff] }
  0xd1   : > { %1011 = vrot.lane.b32.xlu1 %v5513_v58, %s4958_s10  ;;  %1017 = vrot.lane.b32.xlu0 %v5519_v37, %s4958_s10  ;;  %8147 = vst [vmem:[#allocation55_spill] sm:$0xff] %v5531_v0  ;;  %v5537_v58 = vld [vmem:[#allocation2 + $0x110] sm:$0xff] }
  0xd2   : > { %8149 = vst [vmem:[#allocation57_spill] sm:$0xff] %v5537_v58 }
  0xd3   : > { %v5523_v36 = vpop.permute.xlu1 %771  ;;  %v5527_v39 = vpop.permute.xlu0 %777 }
  0xd4   : > { %8144 = vst [vmem:[#allocation52_spill] sm:$0xff] %v5523_v36  ;;  %8146 = vst [vmem:[#allocation54_spill] sm:$0xff] %v5527_v39  ;;  %v5543_v36 = vld [vmem:[#allocation2 + $0x138] sm:$0xff] }
  0xd5   : > { %1015 = vrot.lane.b32.xlu1 %v5525_v62, %s4958_s10  ;;  %1021 = vrot.lane.b32.xlu0 %v5531_v0, %s4958_s10  ;;  %8151 = vst [vmem:[#allocation59_spill] sm:$0xff] %v5543_v36  ;;  %v5549_v62 = vld [vmem:[#allocation2 + $0x128] sm:$0xff] }
  0xd6   : > { %8153 = vst [vmem:[#allocation61_spill] sm:$0xff] %v5549_v62 }
  0xd7   : > { %v5535_v3 = vpop.permute.xlu1 %775  ;;  %v5539_v33 = vpop.permute.xlu0 %781 }
  0xd8   : > { %8148 = vst [vmem:[#allocation56_spill] sm:$0xff] %v5535_v3  ;;  %8150 = vst [vmem:[#allocation58_spill] sm:$0xff] %v5539_v33  ;;  %v5555_v3 = vld [vmem:[#allocation2 + $0x150] sm:$0xff] }
  0xd9   : > { %1019 = vrot.lane.b32.xlu1 %v5537_v58, %s4958_s10  ;;  %1025 = vrot.lane.b32.xlu0 %v5543_v36, %s4958_s10  ;;  %8155 = vst [vmem:[#allocation63_spill] sm:$0xff] %v5555_v3  ;;  %v5561_v58 = vld [vmem:[#allocation2 + $0x140] sm:$0xff] }
  0xda   : > { %8157 = vst [vmem:[#allocation65_spill] sm:$0xff] %v5561_v58  ;;  %v5575_v36 = vld [vmem:[#allocation2 + $0x180] sm:$0xff] }
  0xdb   : > { %v5547_v39 = vpop.permute.xlu1 %779  ;;  %v5551_v37 = vpop.permute.xlu0 %849 }
  0xdc   : > { %8152 = vst [vmem:[#allocation60_spill] sm:$0xff] %v5547_v39  ;;  %8154 = vst [vmem:[#allocation62_spill] sm:$0xff] %v5551_v37  ;;  %v5567_v39 = vld [vmem:[#allocation2 + $0x168] sm:$0xff] }
  0xdd   : > { %1023 = vrot.lane.b32.xlu1 %v5549_v62, %s4958_s10  ;;  %1029 = vrot.lane.b32.xlu0 %v5555_v3, %s4958_s10  ;;  %v5573_v62 = vld [vmem:[#allocation2 + $0x158] sm:$0xff] }
  0xde   : > { %8160 = vst [vmem:[#allocation68_spill] sm:$0xff] %v5573_v62 }
  0xdf   : > { %v5559_v33 = vpop.permute.xlu1 %783  ;;  %v5563_v0 = vpop.permute.xlu0 %853 }
  0xe0   : > { %8156 = vst [vmem:[#allocation64_spill] sm:$0xff] %v5559_v33  ;;  %8158 = vst [vmem:[#allocation66_spill] sm:$0xff] %v5563_v0  ;;  %v5585_v0 = vld [vmem:[#allocation2 + $0x170] sm:$0xff] }
  0xe1   : > { %1027 = vrot.lane.b32.xlu1 %v5561_v58, %s4958_s10  ;;  %1033 = vrot.lane.b32.xlu0 %v5567_v39, %s4958_s10 }
  0xe3   : > { %v5571_v37 = vpop.permute.xlu1 %851  ;;  %v5577_v3 = vpop.permute.xlu0 %857 }
  0xe4   : > { %8159 = vst [vmem:[#allocation67_spill] sm:$0xff] %v5571_v37  ;;  %8161 = vst [vmem:[#allocation69_spill] sm:$0xff] %v5577_v3  ;;  %v5591_v37 = vld [vmem:[#allocation2 + $0x188] sm:$0xff] }
  0xe5   : > { %1031 = vrot.lane.b32.xlu1 %v5573_v62, %s4958_s10  ;;  %1037 = vrot.lane.b32.xlu0 %v5575_v36, %s4958_s10 }
  0xe7   : > { %v5583_v33 = vpop.permute.xlu1 %855  ;;  %v5587_v58 = vpop.permute.xlu0 %861 }
  0xe8   : > { %8162 = vst [vmem:[#allocation70_spill] sm:$0xff] %v5583_v33  ;;  %8163 = vst [vmem:[#allocation71_spill] sm:$0xff] %v5587_v58 }
  0xe9   : > { %1035 = vrot.lane.b32.xlu1 %v5585_v0, %s4958_s10  ;;  %1105 = vrot.lane.b32.xlu0 %v5129_v25, %s4959_s11 }
  0xeb   : > { %v5595_v3 = vpop.permute.xlu1 %859  ;;  %v5597_v62 = vpop.permute.xlu0 %865 }
  0xec   : > { %8164 = vst [vmem:[#allocation72_spill] sm:$0xff] %v5595_v3  ;;  %8165 = vst [vmem:[#allocation73_spill] sm:$0xff] %v5597_v62 }
  0xed   : > { %1039 = vrot.lane.b32.xlu1 %v5591_v37, %s4958_s10  ;;  %1109 = vrot.lane.b32.xlu0 %v5131_v26, %s4959_s11 }
  0xef   : > { %v5603_v58 = vpop.permute.xlu1 %863  ;;  %v5605_v33 = vpop.permute.xlu0 %869 }
  0xf1   : > { %1107 = vrot.lane.b32.xlu1 %v5138_v27, %s4959_s11  ;;  %1113 = vrot.lane.b32.xlu0 %v5146_v30, %s4959_s11 }
  0xf3   : > { %v5611_v25 = vpop.permute.xlu1 %867  ;;  %v5613_v3 = vpop.permute.xlu0 %873 }
  0xf4   : > { %8166 = vst [vmem:[#allocation74_spill] sm:$0xff] %v5613_v3 }
  0xf5   : > { %1111 = vrot.lane.b32.xlu1 %v5150_v31, %s4959_s11  ;;  %1117 = vrot.lane.b32.xlu0 %v5154_v32, %s4959_s11 }
  0xf7   : > { %v5619_v26 = vpop.permute.xlu1 %871  ;;  %v5621_v62 = vpop.permute.xlu0 %877 }
  0xf8   : > { %8167 = vst [vmem:[#allocation75_spill] sm:$0xff] %v5619_v26  ;;  %8168 = vst [vmem:[#allocation76_spill] sm:$0xff] %v5621_v62  ;;  %v8306_v26 = vld [vmem:[#allocation62_spill] sm:$0xff] }
  0xf9   : > { %1115 = vrot.lane.b32.xlu1 %v5166_v38, %s4959_s11  ;;  %1121 = vrot.lane.b32.xlu0 %v5174_v40, %s4959_s11 }
  0xfb   : > { %v5627_v27 = vpop.permute.xlu1 %875  ;;  %v5629_v30 = vpop.permute.xlu0 %881 }
  0xfc   : > { %8169 = vst [vmem:[#allocation77_spill] sm:$0xff] %v5627_v27  ;;  %8170 = vst [vmem:[#allocation78_spill] sm:$0xff] %v5629_v30  ;;  %v661_v30 = vld [vmem:[#allocation2 + $0x62] sm:$0xff] }
  0xfd   : > { %1119 = vrot.lane.b32.xlu1 %v5178_v41, %s4959_s11  ;;  %1125 = vrot.lane.b32.xlu0 %v5182_v42, %s4959_s11 }
  0xff   : > { %v5635_v31 = vpop.permute.xlu1 %879  ;;  %v5637_v32 = vpop.permute.xlu0 %885 }
 0x100   : > { %8171 = vst [vmem:[#allocation79_spill] sm:$0xff] %v5635_v31  ;;  %8172 = vst [vmem:[#allocation80_spill] sm:$0xff] %v5637_v32  ;;  %v631_v31 = vld [vmem:[#allocation2 + $0x79] sm:$0xff] }
 0x101   : > { %1123 = vrot.lane.b32.xlu1 %v5186_v43, %s4959_s11  ;;  %1129 = vrot.lane.b32.xlu0 %v5190_v44, %s4959_s11 }
 0x103   : > { %v5643_v38 = vpop.permute.xlu1 %883  ;;  %v5645_v40 = vpop.permute.xlu0 %889 }
 0x104   : > { %8173 = vst [vmem:[#allocation81_spill] sm:$0xff] %v5643_v38  ;;  %8174 = vst [vmem:[#allocation82_spill] sm:$0xff] %v5645_v40  ;;  %v659_v38 = vld [vmem:[#allocation2 + $0x4a] sm:$0xff] }
 0x105   : > { %1127 = vrot.lane.b32.xlu1 %v5194_v45, %s4959_s11  ;;  %1133 = vrot.lane.b32.xlu0 %v5198_v46, %s4959_s11 }
 0x107   : > { %v5651_v41 = vpop.permute.xlu1 %887  ;;  %v5653_v42 = vpop.permute.xlu0 %893 }
 0x108   : > { %8175 = vst [vmem:[#allocation83_spill] sm:$0xff] %v5651_v41  ;;  %8176 = vst [vmem:[#allocation84_spill] sm:$0xff] %v5653_v42 }
 0x109   : > { %1131 = vrot.lane.b32.xlu1 %v5202_v47, %s4959_s11  ;;  %1137 = vrot.lane.b32.xlu0 %v5206_v48, %s4959_s11 }
 0x10b   : > { %v5659_v43 = vpop.permute.xlu1 %891  ;;  %v5661_v44 = vpop.permute.xlu0 %897 }
 0x10c   : > { %8177 = vst [vmem:[#allocation85_spill] sm:$0xff] %v5659_v43  ;;  %8178 = vst [vmem:[#allocation86_spill] sm:$0xff] %v5661_v44  ;;  %v8217_v44 = vld [vmem:[#allocation25_spill] sm:$0xff] }
 0x10d   : > { %1135 = vrot.lane.b32.xlu1 %v5210_v49, %s4959_s11  ;;  %1141 = vrot.lane.b32.xlu0 %v5214_v50, %s4959_s11 }
 0x10f   : > { %v5667_v45 = vpop.permute.xlu1 %895  ;;  %v5669_v46 = vpop.permute.xlu0 %901 }
 0x110   : > { %8179 = vst [vmem:[#allocation87_spill] sm:$0xff] %v5667_v45  ;;  %8180 = vst [vmem:[#allocation88_spill] sm:$0xff] %v5669_v46 }
 0x111   : > { %1139 = vrot.lane.b32.xlu1 %v5218_v51, %s4959_s11  ;;  %1145 = vrot.lane.b32.xlu0 %v5222_v52, %s4959_s11 }
 0x113   : > { %v5675_v47 = vpop.permute.xlu1 %899  ;;  %v5677_v48 = vpop.permute.xlu0 %905 }
 0x114   : > { %8181 = vst [vmem:[#allocation89_spill] sm:$0xff] %v5675_v47  ;;  %8182 = vst [vmem:[#allocation90_spill] sm:$0xff] %v5677_v48  ;;  %v8215_v47 = vld [vmem:[#allocation23_spill] sm:$0xff] }
 0x115   : > { %1143 = vrot.lane.b32.xlu1 %v5226_v53, %s4959_s11  ;;  %1149 = vrot.lane.b32.xlu0 %v5230_v54, %s4959_s11 }
 0x117   : > { %v5683_v49 = vpop.permute.xlu1 %903  ;;  %v5685_v50 = vpop.permute.xlu0 %909 }
 0x118   : > { %8183 = vst [vmem:[#allocation91_spill] sm:$0xff] %v5683_v49  ;;  %8184 = vst [vmem:[#allocation92_spill] sm:$0xff] %v5685_v50 }
 0x119   : > { %1147 = vrot.lane.b32.xlu1 %v5234_v55, %s4959_s11  ;;  %1153 = vrot.lane.b32.xlu0 %v5238_v56, %s4959_s11  ;;  %v5709_v56 = vld [vmem:[#allocation2 + $0x181] sm:$0xff] }
 0x11b   : > { %v5691_v51 = vpop.permute.xlu1 %907  ;;  %v5693_v52 = vpop.permute.xlu0 %977 }
 0x11c   : > { %8185 = vst [vmem:[#allocation93_spill] sm:$0xff] %v5691_v51 }
 0x11d   : > { %1151 = vrot.lane.b32.xlu1 %v5242_v57, %s4959_s11  ;;  %1157 = vrot.lane.b32.xlu0 %v5248_v59, %s4959_s11 }
 0x11f   : > { %v5699_v53 = vpop.permute.xlu1 %911  ;;  %v5701_v54 = vpop.permute.xlu0 %981 }
 0x120   : > { %8186 = vst [vmem:[#allocation94_spill] sm:$0xff] %v5699_v53 }
 0x121   : > { %1155 = vrot.lane.b32.xlu1 %v5252_v60, %s4959_s11  ;;  %1161 = vrot.lane.b32.xlu0 %v5256_v61, %s4959_s11  ;;  %v5723_v60 = vld [vmem:[#allocation2 + $0x189] sm:$0xff] }
 0x123   : > { %v5707_v55 = vpop.permute.xlu1 %979  ;;  %v5711_v50 = vpop.permute.xlu0 %985 }
 0x125   : > { %1159 = vrot.lane.b32.xlu1 %v5262_v63, %s4959_s11  ;;  %1165 = vrot.lane.b32.xlu0 %v5709_v56, %s4959_s11 }
 0x127   : > { %v5717_v57 = vpop.permute.xlu1 %983  ;;  %v5719_v59 = vpop.permute.xlu0 %989 }
 0x129   : > { %1163 = vrot.lane.b32.xlu1 %v5268_v1, %s4959_s11  ;;  %1233 = vrot.lane.b32.xlu0 %v5271_v2, %s4960_s12 }
 0x12b   : > { %v5727_v61 = vpop.permute.xlu1 %987  ;;  %v5729_v53 = vpop.permute.xlu0 %993 }
 0x12d   : > { %1167 = vrot.lane.b32.xlu1 %v5723_v60, %s4959_s11  ;;  %1237 = vrot.lane.b32.xlu0 %v5277_v4, %s4960_s12 }
 0x12f   : > { %v5735_v63 = vpop.permute.xlu1 %991  ;;  %v5737_v51 = vpop.permute.xlu0 %997 }
 0x131   : > { %1235 = vrot.lane.b32.xlu1 %v5280_v5, %s4960_s12  ;;  %1241 = vrot.lane.b32.xlu0 %v5284_v6, %s4960_s12 }
 0x133   : > { %v5743_v1 = vpop.permute.xlu1 %995  ;;  %v5745_v2 = vpop.permute.xlu0 %1001 }
 0x134   : > { %8187 = vst [vmem:[#allocation95_spill] sm:$0xff] %v5745_v2 }
 0x135   : > { %1239 = vrot.lane.b32.xlu1 %v5288_v7, %s4960_s12  ;;  %1245 = vrot.lane.b32.xlu0 %v5292_v8, %s4960_s12 }
 0x137   : > { %v5751_v4 = vpop.permute.xlu1 %999  ;;  %v5753_v48 = vpop.permute.xlu0 %1005 }
 0x138   : > { %8188 = vst [vmem:[#allocation96_spill] sm:$0xff] %v5751_v4  ;;  %8189 = vst [vmem:[#allocation97_spill] sm:$0xff] %v5753_v48  ;;  %v8304_v4 = vld [vmem:[#allocation6_spill] sm:$0xff] }
 0x139   : > { %1243 = vrot.lane.b32.xlu1 %v5296_v9, %s4960_s12  ;;  %1249 = vrot.lane.b32.xlu0 %v5300_v10, %s4960_s12 }
 0x13b   : > { %v5759_v5 = vpop.permute.xlu1 %1003  ;;  %v5761_v6 = vpop.permute.xlu0 %1009 }
 0x13c   : > { %8190 = vst [vmem:[#allocation98_spill] sm:$0xff] %v5759_v5  ;;  %8191 = vst [vmem:[#allocation99_spill] sm:$0xff] %v5761_v6  ;;  %v629_v6 = vld [vmem:[#allocation2 + $0x61] sm:$0xff]  ;;  %v643_v5 = vld [vmem:[#allocation2 + $0x109] sm:$0xff] }
 0x13d   : > { %1247 = vrot.lane.b32.xlu1 %v5304_v11, %s4960_s12  ;;  %1253 = vrot.lane.b32.xlu0 %v5308_v12, %s4960_s12 }
 0x13f   : > { %v5767_v7 = vpop.permute.xlu1 %1007  ;;  %v5769_v8 = vpop.permute.xlu0 %1013 }
 0x140   : > { %8192 = vst [vmem:[#allocation100_spill] sm:$0xff] %v5767_v7  ;;  %8193 = vst [vmem:[#allocation101_spill] sm:$0xff] %v5769_v8 }
 0x141   : > { %1251 = vrot.lane.b32.xlu1 %v5312_v13, %s4960_s12  ;;  %1257 = vrot.lane.b32.xlu0 %v5316_v14, %s4960_s12 }
 0x143   : > { %v5775_v9 = vpop.permute.xlu1 %1011  ;;  %v5777_v10 = vpop.permute.xlu0 %1017 }
 0x144   : > { %8194 = vst [vmem:[#allocation102_spill] sm:$0xff] %v5775_v9  ;;  %8195 = vst [vmem:[#allocation103_spill] sm:$0xff] %v5777_v10  ;;  %v8229_v10 = vld [vmem:[#allocation37_spill] sm:$0xff] }
 0x145   : > { %1255 = vrot.lane.b32.xlu1 %v5320_v15, %s4960_s12  ;;  %1261 = vrot.lane.b32.xlu0 %v5324_v16, %s4960_s12  ;;  %v658_v9 = vld [vmem:[#allocation2 + $0x3a] sm:$0xff] }
 0x147   : > { %v5783_v11 = vpop.permute.xlu1 %1015  ;;  %v5785_v12 = vpop.permute.xlu0 %1021 }
 0x148   : > { %8196 = vst [vmem:[#allocation104_spill] sm:$0xff] %v5783_v11  ;;  %8197 = vst [vmem:[#allocation105_spill] sm:$0xff] %v5785_v12  ;;  %v8221_v12 = vld [vmem:[#allocation29_spill] sm:$0xff] }
 0x149   : > { %1259 = vrot.lane.b32.xlu1 %v5328_v17, %s4960_s12  ;;  %1265 = vrot.lane.b32.xlu0 %v5332_v18, %s4960_s12  ;;  %v8233_v11 = vld [vmem:[#allocation41_spill] sm:$0xff] }
 0x14b   : > { %v5791_v13 = vpop.permute.xlu1 %1019  ;;  %v5793_v14 = vpop.permute.xlu0 %1025 }
 0x14c   : > { %8198 = vst [vmem:[#allocation106_spill] sm:$0xff] %v5791_v13  ;;  %8199 = vst [vmem:[#allocation107_spill] sm:$0xff] %v5793_v14  ;;  %v8225_v13 = vld [vmem:[#allocation33_spill] sm:$0xff] }
 0x14d   : > { %1263 = vrot.lane.b32.xlu1 %v5336_v19, %s4960_s12  ;;  %1269 = vrot.lane.b32.xlu0 %v5340_v20, %s4960_s12 }
 0x14f   : > { %v5799_v15 = vpop.permute.xlu1 %1023  ;;  %v5801_v16 = vpop.permute.xlu0 %1029 }
 0x150   : > { %8200 = vst [vmem:[#allocation108_spill] sm:$0xff] %v5799_v15  ;;  %8201 = vst [vmem:[#allocation109_spill] sm:$0xff] %v5801_v16  ;;  %v8218_v15 = vld [vmem:[#allocation27_spill] sm:$0xff] }
 0x151   : > { %1267 = vrot.lane.b32.xlu1 %v5344_v21, %s4960_s12  ;;  %1273 = vrot.lane.b32.xlu0 %v5348_v22, %s4960_s12 }
 0x153   : > { %v5807_v17 = vpop.permute.xlu1 %1027  ;;  %v5809_v18 = vpop.permute.xlu0 %1033 }
 0x154   : > { %8202 = vst [vmem:[#allocation110_spill] sm:$0xff] %v5807_v17  ;;  %8203 = vst [vmem:[#allocation111_spill] sm:$0xff] %v5809_v18 }
 0x155   : > { %1271 = vrot.lane.b32.xlu1 %v5352_v23, %s4960_s12  ;;  %1277 = vrot.lane.b32.xlu0 %v5356_v24, %s4960_s12 }
 0x157   : > { %v5815_v19 = vpop.permute.xlu1 %1031  ;;  %v5817_v20 = vpop.permute.xlu0 %1037 }
 0x158   : > { %8204 = vst [vmem:[#allocation112_spill] sm:$0xff] %v5815_v19  ;;  %8205 = vst [vmem:[#allocation113_spill] sm:$0xff] %v5817_v20  ;;  %v8208_v20 = vld [vmem:[#allocation5_spill] sm:$0xff]  ;;  %v8212_v19 = vld [vmem:[#allocation16_spill] sm:$0xff] }
 0x159   : > { %1275 = vrot.lane.b32.xlu1 %v5360_v28, %s4960_s12  ;;  %1281 = vrot.lane.b32.xlu0 %v5364_v29, %s4960_s12  ;;  %v8209_v28 = vld [vmem:[#allocation7_spill] sm:$0xff] }
 0x15b   : > { %v5823_v21 = vpop.permute.xlu1 %1035  ;;  %v5825_v22 = vpop.permute.xlu0 %1105 }
 0x15c   : > { %8206 = vst [vmem:[#allocation114_spill] sm:$0xff] %v5823_v21  ;;  %v5841_v21 = vld [vmem:[#allocation2 + $0x182] sm:$0xff] }
 0x15d   : > { %1279 = vrot.lane.b32.xlu1 %v5370_v34, %s4960_s12  ;;  %1285 = vrot.lane.b32.xlu0 %v5374_v35, %s4960_s12  ;;  %v8210_v34 = vld [vmem:[#allocation9_spill] sm:$0xff] }
 0x15f   : > { %v5831_v23 = vpop.permute.xlu1 %1039  ;;  %v5833_v24 = vpop.permute.xlu0 %1109 }
 0x160   : > { %8207 = vst [vmem:[#allocation115_spill] sm:$0xff] %v5831_v23 }
 0x161   : > { %1283 = vrot.lane.b32.xlu1 %v8208_v20, %s4960_s12  ;;  %1289 = vrot.lane.b32.xlu0 %v8209_v28, %s4960_s12  ;;  %v8211_v20 = vld [vmem:[#allocation13_spill] sm:$0xff]  ;;  %v5855_v28 = vld [vmem:[#allocation2 + $0x18a] sm:$0xff] }
 0x163   : > { %v5839_v29 = vpop.permute.xlu1 %1107  ;;  %v5843_v18 = vpop.permute.xlu0 %1113 }
 0x165   : > { %1287 = vrot.lane.b32.xlu1 %v8210_v34, %s4960_s12  ;;  %1293 = vrot.lane.b32.xlu0 %v5841_v21, %s4960_s12  ;;  %v8213_v34 = vld [vmem:[#allocation19_spill] sm:$0xff] }
 0x167   : > { %v5849_v35 = vpop.permute.xlu1 %1111  ;;  %v5851_v23 = vpop.permute.xlu0 %1117 }
 0x169   : > { %1291 = vrot.lane.b32.xlu1 %v8211_v20, %s4960_s12  ;;  %1361 = vrot.lane.b32.xlu0 %v8212_v19, %s4961_s13  ;;  %v8214_v20 = vld [vmem:[#allocation21_spill] sm:$0xff] }
 0x16b   : > { %v5859_v49 = vpop.permute.xlu1 %1115  ;;  %v5861_v16 = vpop.permute.xlu0 %1121 }
 0x16d   : > { %1295 = vrot.lane.b32.xlu1 %v5855_v28, %s4960_s12  ;;  %1365 = vrot.lane.b32.xlu0 %v8213_v34, %s4961_s13 }
 0x16f   : > { %v5867_v46 = vpop.permute.xlu1 %1119  ;;  %v5869_v17 = vpop.permute.xlu0 %1125 }
 0x171   : > { %1363 = vrot.lane.b32.xlu1 %v8214_v20, %s4961_s13  ;;  %1369 = vrot.lane.b32.xlu0 %v8215_v47, %s4961_s13  ;;  %v8222_v20 = vld [vmem:[#allocation31_spill] sm:$0xff] }
 0x173   : > { %v5875_v19 = vpop.permute.xlu1 %1123  ;;  %v5877_v14 = vpop.permute.xlu0 %1129 }
 0x174   : > { %8216 = vst [vmem:[#allocation5_spill] sm:$0xff] %v5877_v14 }
 0x175   : > { %1367 = vrot.lane.b32.xlu1 %v8217_v44, %s4961_s13  ;;  %1373 = vrot.lane.b32.xlu0 %v8218_v15, %s4961_s13  ;;  %v8226_v44 = vld [vmem:[#allocation35_spill] sm:$0xff] }
 0x177   : > { %v5883_v34 = vpop.permute.xlu1 %1127  ;;  %v5885_v45 = vpop.permute.xlu0 %1133 }
 0x178   : > { %8219 = vst [vmem:[#allocation7_spill] sm:$0xff] %v5883_v34  ;;  %8220 = vst [vmem:[#allocation9_spill] sm:$0xff] %v5885_v45  ;;  %v677_v34 = vld [vmem:[#allocation2 + $0x122] sm:$0xff] }
 0x179   : > { %1371 = vrot.lane.b32.xlu1 %v8221_v12, %s4961_s13  ;;  %1377 = vrot.lane.b32.xlu0 %v8222_v20, %s4961_s13  ;;  %v8230_v12 = vld [vmem:[#allocation39_spill] sm:$0xff] }
 0x17b   : > { %v5891_v47 = vpop.permute.xlu1 %1131  ;;  %v5893_v42 = vpop.permute.xlu0 %1137 }
 0x17c   : > { %8223 = vst [vmem:[#allocation13_spill] sm:$0xff] %v5891_v47  ;;  %8224 = vst [vmem:[#allocation16_spill] sm:$0xff] %v5893_v42  ;;  %v673_v47 = vld [vmem:[#allocation2 + $0xf2] sm:$0xff] }
 0x17d   : > { %1375 = vrot.lane.b32.xlu1 %v8225_v13, %s4961_s13  ;;  %1381 = vrot.lane.b32.xlu0 %v8226_v44, %s4961_s13  ;;  %v8234_v13 = vld [vmem:[#allocation43_spill] sm:$0xff] }
 0x17f   : > { %v5899_v15 = vpop.permute.xlu1 %1135  ;;  %v5901_v43 = vpop.permute.xlu0 %1141 }
 0x180   : > { %8227 = vst [vmem:[#allocation19_spill] sm:$0xff] %v5899_v15  ;;  %8228 = vst [vmem:[#allocation21_spill] sm:$0xff] %v5901_v43  ;;  %v8237_v43 = vld [vmem:[#allocation45_spill] sm:$0xff] }
 0x181   : > { %1379 = vrot.lane.b32.xlu1 %v8229_v10, %s4961_s13  ;;  %1385 = vrot.lane.b32.xlu0 %v8230_v12, %s4961_s13  ;;  %v8238_v10 = vld [vmem:[#allocation47_spill] sm:$0xff] }
 0x183   : > { %v5907_v20 = vpop.permute.xlu1 %1139  ;;  %v5909_v40 = vpop.permute.xlu0 %1145 }
 0x184   : > { %8231 = vst [vmem:[#allocation23_spill] sm:$0xff] %v5907_v20  ;;  %8232 = vst [vmem:[#allocation25_spill] sm:$0xff] %v5909_v40  ;;  %v8241_v40 = vld [vmem:[#allocation49_spill] sm:$0xff] }
 0x185   : > { %1383 = vrot.lane.b32.xlu1 %v8233_v11, %s4961_s13  ;;  %1389 = vrot.lane.b32.xlu0 %v8234_v13, %s4961_s13  ;;  %v8242_v11 = vld [vmem:[#allocation51_spill] sm:$0xff]  ;;  %v626_v20 = vld [vmem:[#allocation2 + $0x39] sm:$0xff] }
 0x187   : > { %v5915_v44 = vpop.permute.xlu1 %1143  ;;  %v5917_v41 = vpop.permute.xlu0 %1149 }
 0x188   : > { %8235 = vst [vmem:[#allocation27_spill] sm:$0xff] %v5915_v44  ;;  %8236 = vst [vmem:[#allocation29_spill] sm:$0xff] %v5917_v41  ;;  %v8245_v41 = vld [vmem:[#allocation53_spill] sm:$0xff] }
 0x189   : > { %1387 = vrot.lane.b32.xlu1 %v8237_v43, %s4961_s13  ;;  %1393 = vrot.lane.b32.xlu0 %v8238_v10, %s4961_s13  ;;  %v8246_v43 = vld [vmem:[#allocation55_spill] sm:$0xff] }
 0x18b   : > { %v5923_v12 = vpop.permute.xlu1 %1147  ;;  %v5925_v8 = vpop.permute.xlu0 %1153 }
 0x18c   : > { %8239 = vst [vmem:[#allocation31_spill] sm:$0xff] %v5923_v12  ;;  %8240 = vst [vmem:[#allocation33_spill] sm:$0xff] %v5925_v8  ;;  %v8249_v8 = vld [vmem:[#allocation57_spill] sm:$0xff] }
 0x18d   : > { %1391 = vrot.lane.b32.xlu1 %v8241_v40, %s4961_s13  ;;  %1397 = vrot.lane.b32.xlu0 %v8242_v11, %s4961_s13  ;;  %v8250_v40 = vld [vmem:[#allocation59_spill] sm:$0xff] }
 0x18f   : > { %v5931_v13 = vpop.permute.xlu1 %1151  ;;  %v5933_v44 = vpop.permute.xlu0 %1157 }
 0x190   : > { %8243 = vst [vmem:[#allocation35_spill] sm:$0xff] %v5931_v13  ;;  %8244 = vst [vmem:[#allocation37_spill] sm:$0xff] %v5933_v44  ;;  %v8253_v44 = vld [vmem:[#allocation61_spill] sm:$0xff] }
 0x191   : > { %1395 = vrot.lane.b32.xlu1 %v8245_v41, %s4961_s13  ;;  %1401 = vrot.lane.b32.xlu0 %v8246_v43, %s4961_s13  ;;  %v8254_v41 = vld [vmem:[#allocation63_spill] sm:$0xff] }
 0x193   : > { %v5939_v10 = vpop.permute.xlu1 %1155  ;;  %v5941_v12 = vpop.permute.xlu0 %1161 }
 0x194   : > { %8247 = vst [vmem:[#allocation39_spill] sm:$0xff] %v5939_v10  ;;  %8248 = vst [vmem:[#allocation41_spill] sm:$0xff] %v5941_v12  ;;  %v8256_v12 = vld [vmem:[#allocation65_spill] sm:$0xff] }
 0x195   : > { %1399 = vrot.lane.b32.xlu1 %v8249_v8, %s4961_s13  ;;  %1405 = vrot.lane.b32.xlu0 %v8250_v40, %s4961_s13  ;;  %v1976_v8 = vld [vmem:[%s8051_s1] sm:$0xff]  ;;  %v1977_v40 = vld [vmem:[%s8051_s1 + $0x8] sm:$0xff] }
 0x197   : > { %v5947_v11 = vpop.permute.xlu1 %1159  ;;  %v5949_v13 = vpop.permute.xlu0 %1165 }
 0x198   : > { %8251 = vst [vmem:[#allocation43_spill] sm:$0xff] %v5947_v11  ;;  %8252 = vst [vmem:[#allocation45_spill] sm:$0xff] %v5949_v13  ;;  %v4880_v13 = vpack.c.bf16 %v1977_v40, %v1976_v8  ;;  %v1979_v8 = vld [vmem:[%s8051_s1 + $0x18] sm:$0xff] }
 0x199   : > { %1403 = vrot.lane.b32.xlu1 %v8253_v44, %s4961_s13  ;;  %1409 = vrot.lane.b32.xlu0 %v8254_v41, %s4961_s13 }
 0x19a   : > { %4881 = vmatprep.subr.bf16.mxu0 %v4880_v13 }
 0x19b   : > { %v5955_v43 = vpop.permute.xlu1 %1163  ;;  %v5957_v10 = vpop.permute.xlu0 %1233  ;;  %4883 = vmatpush3.bf16.msra.mxu0 %v4880_v13 }
 0x19c   : > { %8255 = vst [vmem:[#allocation47_spill] sm:$0xff] %v5955_v43  ;;  %v8258_v43 = vld [vmem:[#allocation68_spill] sm:$0xff] }
 0x19d   : > { %1407 = vrot.lane.b32.xlu1 %v8256_v12, %s4961_s13  ;;  %1413 = vrot.lane.b32.xlu0 %v5567_v39, %s4961_s13  ;;  %v1978_v12 = vld [vmem:[%s8051_s1 + $0x10] sm:$0xff] }
 0x19e   : > { %v4884_v40 = vpack.c.bf16 %v1979_v8, %v1978_v12  ;;  %v627_v8 = vld [vmem:[#allocation2 + $0x49] sm:$0xff] }
 0x19f   : > { %v5969_v44 = vpop.permute.xlu1 %1167  ;;  %v5971_v41 = vpop.permute.xlu0 %1237 }
 0x1a0   : > { %8257 = vst [vmem:[#allocation49_spill] sm:$0xff] %v5969_v44  ;;  %v623_v44 = vld [vmem:[#allocation2 + $0x198] sm:$0xff]  ;;  %4885 = vmatprep.subr.bf16.mxu0 %v4884_v40 }
 0x1a1   : > { %1411 = vrot.lane.b32.xlu1 %v8258_v43, %s4961_s13  ;;  %1417 = vrot.lane.b32.xlu0 %v5575_v36, %s4961_s13  ;;  %v1980_v43 = vld [vmem:[%s8051_s1 + $0x20] sm:$0xf]  ;;  %v625_v36 = vld [vmem:[#allocation2 + $0x31] sm:$0xff] }
 0x1a2   : > { %4887 = vmatpush3.bf16.msra.mxu0 %v4884_v40 }
 0x1a3   : > { %v5983_v39 = vpop.permute.xlu1 %1235  ;;  %v5985_v11 = vpop.permute.xlu0 %1241  ;;  %4772 = vmatprep.subr.msk.mxu0 %vm2078_vm2, %v1980_v43 }
 0x1a5   : > { %1415 = vrot.lane.b32.xlu1 %v5585_v0, %s4961_s13  ;;  %1421 = vrot.lane.b32.xlu0 %v623_v44, %s4961_s13  ;;  %v624_v0 = vld [vmem:[#allocation2 + $0x1a0] sm:$0xff] }
 0x1a6   : > { %4773 = vmatpush3.msk.msra.mxu0 %vm2078_vm2, %v1980_v43  ;;  %v657_v43 = vld [vmem:[#allocation2 + $0x32] sm:$0xff] }
 0x1a7   : > { %v5990_v13 = vpop.permute.xlu1 %1239  ;;  %v5996_v12 = vpop.permute.xlu0 %1245 }
 0x1a9   : > { %1419 = vrot.lane.b32.xlu1 %v5591_v37, %s4961_s13  ;;  %1489 = vrot.lane.b32.xlu0 %v625_v36, %s4962_s26 }
 0x1ab   : > { %v6002_v44 = vpop.permute.xlu1 %1243  ;;  %v6004_v40 = vpop.permute.xlu0 %1249 }
 0x1ad   : > { %1423 = vrot.lane.b32.xlu1 %v624_v0, %s4961_s13  ;;  %1493 = vrot.lane.b32.xlu0 %v627_v8, %s4962_s26  ;;  %v628_v0 = vld [vmem:[#allocation2 + $0x51] sm:$0xff] }
 0x1af   : > { %v6008_v32 = vpop.permute.xlu1 %1247  ;;  %v6010_v37 = vpop.permute.xlu0 %1253 }
 0x1b1   : > { %1491 = vrot.lane.b32.xlu1 %v626_v20, %s4962_s26  ;;  %1619 = vrot.lane.b32.xlu0 %v658_v9, %s4963_s28  ;;  %v660_v20 = vld [vmem:[#allocation2 + $0x52] sm:$0xff] }
 0x1b3   : > { %v6014_v36 = vpop.permute.xlu1 %1251  ;;  %v6016_v42 = vpop.permute.xlu0 %1257 }
 0x1b4   : > { %8259 = vst [vmem:[#allocation51_spill] sm:$0xff] %v6016_v42  ;;  %v675_v42 = vld [vmem:[#allocation2 + $0x10a] sm:$0xff] }
 0x1b5   : > { %1617 = vrot.lane.b32.xlu1 %v657_v43, %s4963_s28  ;;  %1621 = vrot.lane.b32.xlu0 %v659_v38, %s4963_s28  ;;  %v630_v43 = vld [vmem:[#allocation2 + $0x69] sm:$0xff] }
 0x1b7   : > { %v6020_v8 = vpop.permute.xlu1 %1255  ;;  %v6022_v15 = vpop.permute.xlu0 %1261 }
 0x1b8   : > { %8260 = vst [vmem:[#allocation53_spill] sm:$0xff] %v6020_v8  ;;  %8261 = vst [vmem:[#allocation55_spill] sm:$0xff] %v6022_v15  ;;  %v663_v15 = vld [vmem:[#allocation2 + $0x7a] sm:$0xff] }
 0x1b9   : > { %1495 = vrot.lane.b32.xlu1 %v628_v0, %s4962_s26  ;;  %1497 = vrot.lane.b32.xlu0 %v629_v6, %s4962_s26  ;;  %v662_v0 = vld [vmem:[#allocation2 + $0x6a] sm:$0xff]  ;;  %v645_v8 = vld [vmem:[#allocation2 + $0x121] sm:$0xff] }
 0x1bb   : > { %v6026_v9 = vpop.permute.xlu1 %1259  ;;  %v6028_v7 = vpop.permute.xlu0 %1265 }
 0x1bc   : > { %8262 = vst [vmem:[#allocation57_spill] sm:$0xff] %v6026_v9  ;;  %8263 = vst [vmem:[#allocation59_spill] sm:$0xff] %v6028_v7  ;;  %v633_v7 = vld [vmem:[#allocation2 + $0x91] sm:$0xff] }
 0x1bd   : > { %1623 = vrot.lane.b32.xlu1 %v660_v20, %s4963_s28  ;;  %1625 = vrot.lane.b32.xlu0 %v661_v30, %s4963_s28  ;;  %v632_v20 = vld [vmem:[#allocation2 + $0x81] sm:$0xff] }
 0x1bf   : > { %v6032_v38 = vpop.permute.xlu1 %1263  ;;  %v6034_v45 = vpop.permute.xlu0 %1269 }
 0x1c0   : > { %8264 = vst [vmem:[#allocation61_spill] sm:$0xff] %v6032_v38  ;;  %8265 = vst [vmem:[#allocation63_spill] sm:$0xff] %v6034_v45  ;;  %v665_v45 = vld [vmem:[#allocation2 + $0x92] sm:$0xff] }
 0x1c1   : > { %1499 = vrot.lane.b32.xlu1 %v630_v43, %s4962_s26  ;;  %1501 = vrot.lane.b32.xlu0 %v631_v31, %s4962_s26  ;;  %v664_v43 = vld [vmem:[#allocation2 + $0x82] sm:$0xff] }
 0x1c3   : > { %v6038_v6 = vpop.permute.xlu1 %1267  ;;  %v6040_v9 = vpop.permute.xlu0 %1273 }
 0x1c4   : > { %8266 = vst [vmem:[#allocation65_spill] sm:$0xff] %v6038_v6  ;;  %8267 = vst [vmem:[#allocation68_spill] sm:$0xff] %v6040_v9  ;;  %v635_v9 = vld [vmem:[#allocation2 + $0xa9] sm:$0xff] }
 0x1c5   : > { %1627 = vrot.lane.b32.xlu1 %v662_v0, %s4963_s28  ;;  %1629 = vrot.lane.b32.xlu0 %v663_v15, %s4963_s28  ;;  %v634_v0 = vld [vmem:[#allocation2 + $0x99] sm:$0xff] }
 0x1c7   : > { %v6044_v30 = vpop.permute.xlu1 %1271  ;;  %v6046_v38 = vpop.permute.xlu0 %1277 }
 0x1c8   : > { %8268 = vst [vmem:[#allocation116_spill] sm:$0xff] %v6044_v30  ;;  %8269 = vst [vmem:[#allocation117_spill] sm:$0xff] %v6046_v38  ;;  %v667_v38 = vld [vmem:[#allocation2 + $0xaa] sm:$0xff] }
 0x1c9   : > { %1503 = vrot.lane.b32.xlu1 %v632_v20, %s4962_s26  ;;  %1505 = vrot.lane.b32.xlu0 %v633_v7, %s4962_s26  ;;  %v666_v20 = vld [vmem:[#allocation2 + $0x9a] sm:$0xff] }
 0x1cb   : > { %v6050_v31 = vpop.permute.xlu1 %1275  ;;  %v6052_v6 = vpop.permute.xlu0 %1281 }
 0x1cc   : > { %8270 = vst [vmem:[#allocation118_spill] sm:$0xff] %v6050_v31  ;;  %8271 = vst [vmem:[#allocation119_spill] sm:$0xff] %v6052_v6  ;;  %v637_v6 = vld [vmem:[#allocation2 + $0xc1] sm:$0xff] }
 0x1cd   : > { %1631 = vrot.lane.b32.xlu1 %v664_v43, %s4963_s28  ;;  %1633 = vrot.lane.b32.xlu0 %v665_v45, %s4963_s28  ;;  %v636_v43 = vld [vmem:[#allocation2 + $0xb1] sm:$0xff] }
 0x1cf   : > { %v6056_v15 = vpop.permute.xlu1 %1279  ;;  %v6058_v30 = vpop.permute.xlu0 %1285 }
 0x1d0   : > { %8272 = vst [vmem:[#allocation120_spill] sm:$0xff] %v6056_v15  ;;  %8273 = vst [vmem:[#allocation121_spill] sm:$0xff] %v6058_v30  ;;  %v669_v30 = vld [vmem:[#allocation2 + $0xc2] sm:$0xff] }
 0x1d1   : > { %1507 = vrot.lane.b32.xlu1 %v634_v0, %s4962_s26  ;;  %1509 = vrot.lane.b32.xlu0 %v635_v9, %s4962_s26  ;;  %v668_v0 = vld [vmem:[#allocation2 + $0xb2] sm:$0xff] }
 0x1d3   : > { %v6062_v7 = vpop.permute.xlu1 %1283  ;;  %v6064_v31 = vpop.permute.xlu0 %1289 }
 0x1d4   : > { %8274 = vst [vmem:[#allocation122_spill] sm:$0xff] %v6062_v7  ;;  %8275 = vst [vmem:[#allocation123_spill] sm:$0xff] %v6064_v31  ;;  %v639_v31 = vld [vmem:[#allocation2 + $0xd9] sm:$0xff] }
 0x1d5   : > { %1635 = vrot.lane.b32.xlu1 %v666_v20, %s4963_s28  ;;  %1637 = vrot.lane.b32.xlu0 %v667_v38, %s4963_s28  ;;  %v638_v20 = vld [vmem:[#allocation2 + $0xc9] sm:$0xff] }
 0x1d7   : > { %v6068_v45 = vpop.permute.xlu1 %1287  ;;  %v6070_v15 = vpop.permute.xlu0 %1293 }
 0x1d8   : > { %8276 = vst [vmem:[#allocation124_spill] sm:$0xff] %v6068_v45  ;;  %8277 = vst [vmem:[#allocation125_spill] sm:$0xff] %v6070_v15  ;;  %v671_v15 = vld [vmem:[#allocation2 + $0xda] sm:$0xff] }
 0x1d9   : > { %1511 = vrot.lane.b32.xlu1 %v636_v43, %s4962_s26  ;;  %1513 = vrot.lane.b32.xlu0 %v637_v6, %s4962_s26  ;;  %v670_v43 = vld [vmem:[#allocation2 + $0xca] sm:$0xff] }
 0x1db   : > { %v6074_v9 = vpop.permute.xlu1 %1291  ;;  %v6076_v7 = vpop.permute.xlu0 %1361 }
 0x1dc   : > { %8278 = vst [vmem:[#allocation126_spill] sm:$0xff] %v6074_v9 }
 0x1dd   : > { %1639 = vrot.lane.b32.xlu1 %v668_v0, %s4963_s28  ;;  %1641 = vrot.lane.b32.xlu0 %v669_v30, %s4963_s28  ;;  %v640_v0 = vld [vmem:[#allocation2 + $0xe1] sm:$0xff] }
 0x1df   : > { %v6080_v38 = vpop.permute.xlu1 %1295  ;;  %v6082_v45 = vpop.permute.xlu0 %1365 }
 0x1e0   : > { %8279 = vst [vmem:[#allocation127_spill] sm:$0xff] %v6080_v38  ;;  %v641_v38 = vld [vmem:[#allocation2 + $0xf1] sm:$0xff] }
 0x1e1   : > { %1515 = vrot.lane.b32.xlu1 %v638_v20, %s4962_s26  ;;  %1517 = vrot.lane.b32.xlu0 %v639_v31, %s4962_s26  ;;  %v672_v20 = vld [vmem:[#allocation2 + $0xe2] sm:$0xff] }
 0x1e3   : > { %v6086_v6 = vpop.permute.xlu1 %1363  ;;  %v6088_v9 = vpop.permute.xlu0 %1369 }
 0x1e5   : > { %1643 = vrot.lane.b32.xlu1 %v670_v43, %s4963_s28  ;;  %1645 = vrot.lane.b32.xlu0 %v671_v15, %s4963_s28  ;;  %v642_v43 = vld [vmem:[#allocation2 + $0xf9] sm:$0xff] }
 0x1e7   : > { %v6092_v30 = vpop.permute.xlu1 %1367  ;;  %v6094_v48 = vpop.permute.xlu0 %1373 }
 0x1e9   : > { %1519 = vrot.lane.b32.xlu1 %v640_v0, %s4962_s26  ;;  %1521 = vrot.lane.b32.xlu0 %v641_v38, %s4962_s26  ;;  %v674_v0 = vld [vmem:[#allocation2 + $0xfa] sm:$0xff] }
 0x1eb   : > { %v6098_v31 = vpop.permute.xlu1 %1371  ;;  %v6100_v62 = vpop.permute.xlu0 %1377 }
 0x1ed   : > { %1647 = vrot.lane.b32.xlu1 %v672_v20, %s4963_s28  ;;  %1649 = vrot.lane.b32.xlu0 %v673_v47, %s4963_s28  ;;  %v644_v20 = vld [vmem:[#allocation2 + $0x111] sm:$0xff] }
 0x1ef   : > { %v6104_v15 = vpop.permute.xlu1 %1375  ;;  %v6106_v27 = vpop.permute.xlu0 %1381 }
 0x1f1   : > { %1523 = vrot.lane.b32.xlu1 %v642_v43, %s4962_s26  ;;  %1525 = vrot.lane.b32.xlu0 %v643_v5, %s4962_s26  ;;  %v676_v43 = vld [vmem:[#allocation2 + $0x112] sm:$0xff] }
 0x1f3   : > { %v6110_v38 = vpop.permute.xlu1 %1379  ;;  %v6112_v14 = vpop.permute.xlu0 %1385 }
 0x1f4   : > { %8280 = vst [vmem:[#allocation128_spill] sm:$0xff] %v6112_v14  ;;  %v647_v14 = vld [vmem:[#allocation2 + $0x139] sm:$0xff] }
 0x1f5   : > { %1651 = vrot.lane.b32.xlu1 %v674_v0, %s4963_s28  ;;  %1653 = vrot.lane.b32.xlu0 %v675_v42, %s4963_s28  ;;  %v646_v0 = vld [vmem:[#allocation2 + $0x129] sm:$0xff] }
 0x1f7   : > { %v6116_v47 = vpop.permute.xlu1 %1383  ;;  %v6118_v2 = vpop.permute.xlu0 %1389 }
 0x1f8   : > { %8281 = vst [vmem:[#allocation129_spill] sm:$0xff] %v6116_v47  ;;  %8282 = vst [vmem:[#allocation130_spill] sm:$0xff] %v6118_v2  ;;  %v679_v2 = vld [vmem:[#allocation2 + $0x13a] sm:$0xff] }
 0x1f9   : > { %1527 = vrot.lane.b32.xlu1 %v644_v20, %s4962_s26  ;;  %1529 = vrot.lane.b32.xlu0 %v645_v8, %s4962_s26  ;;  %v678_v20 = vld [vmem:[#allocation2 + $0x12a] sm:$0xff] }
 0x1fb   : > { %v6122_v5 = vpop.permute.xlu1 %1387  ;;  %v6124_v3 = vpop.permute.xlu0 %1393 }
 0x1fc   : > { %8283 = vst [vmem:[#allocation131_spill] sm:$0xff] %v6122_v5  ;;  %8284 = vst [vmem:[#allocation132_spill] sm:$0xff] %v6124_v3  ;;  %v649_v3 = vld [vmem:[#allocation2 + $0x151] sm:$0xff] }
 0x1fd   : > { %1655 = vrot.lane.b32.xlu1 %v676_v43, %s4963_s28  ;;  %1657 = vrot.lane.b32.xlu0 %v677_v34, %s4963_s28  ;;  %v648_v43 = vld [vmem:[#allocation2 + $0x141] sm:$0xff] }
 0x1ff   : > { %v6128_v42 = vpop.permute.xlu1 %1391  ;;  %v6130_v47 = vpop.permute.xlu0 %1397 }
 0x200   : > { %8285 = vst [vmem:[#allocation133_spill] sm:$0xff] %v6128_v42  ;;  %8286 = vst [vmem:[#allocation134_spill] sm:$0xff] %v6130_v47  ;;  %v681_v47 = vld [vmem:[#allocation2 + $0x152] sm:$0xff] }
 0x201   : > { %1531 = vrot.lane.b32.xlu1 %v646_v0, %s4962_s26  ;;  %1533 = vrot.lane.b32.xlu0 %v647_v14, %s4962_s26  ;;  %v680_v0 = vld [vmem:[#allocation2 + $0x142] sm:$0xff] }
 0x203   : > { %v6134_v8 = vpop.permute.xlu1 %1395  ;;  %v6136_v5 = vpop.permute.xlu0 %1401 }
 0x204   : > { %8287 = vst [vmem:[#allocation135_spill] sm:$0xff] %v6134_v8  ;;  %8288 = vst [vmem:[#allocation136_spill] sm:$0xff] %v6136_v5  ;;  %v651_v5 = vld [vmem:[#allocation2 + $0x169] sm:$0xff] }
 0x205   : > { %1659 = vrot.lane.b32.xlu1 %v678_v20, %s4963_s28  ;;  %1661 = vrot.lane.b32.xlu0 %v679_v2, %s4963_s28  ;;  %v650_v20 = vld [vmem:[#allocation2 + $0x159] sm:$0xff] }
 0x207   : > { %v6140_v34 = vpop.permute.xlu1 %1399  ;;  %v6142_v42 = vpop.permute.xlu0 %1405 }
 0x208   : > { %8289 = vst [vmem:[#allocation137_spill] sm:$0xff] %v6140_v34  ;;  %8290 = vst [vmem:[#allocation138_spill] sm:$0xff] %v6142_v42  ;;  %v683_v42 = vld [vmem:[#allocation2 + $0x16a] sm:$0xff] }
 0x209   : > { %1535 = vrot.lane.b32.xlu1 %v648_v43, %s4962_s26  ;;  %1537 = vrot.lane.b32.xlu0 %v649_v3, %s4962_s26  ;;  %v682_v43 = vld [vmem:[#allocation2 + $0x15a] sm:$0xff] }
 0x20b   : > { %v6146_v14 = vpop.permute.xlu1 %1403  ;;  %v6148_v8 = vpop.permute.xlu0 %1409 }
 0x20c   : > { %8291 = vst [vmem:[#allocation139_spill] sm:$0xff] %v6146_v14  ;;  %8292 = vst [vmem:[#allocation140_spill] sm:$0xff] %v6148_v8 }
 0x20d   : > { %1663 = vrot.lane.b32.xlu1 %v680_v0, %s4963_s28  ;;  %1665 = vrot.lane.b32.xlu0 %v681_v47, %s4963_s28  ;;  %v652_v0 = vld [vmem:[#allocation2 + $0x171] sm:$0xff] }
 0x20f   : > { %v6152_v2 = vpop.permute.xlu1 %1407  ;;  %v6154_v34 = vpop.permute.xlu0 %1413 }
 0x210   : > { %8293 = vst [vmem:[#allocation141_spill] sm:$0xff] %v6152_v2  ;;  %8294 = vst [vmem:[#allocation142_spill] sm:$0xff] %v6154_v34  ;;  %v401_v34 = vld [vmem:[#allocation2 + $0x8] sm:$0xff] }
 0x211   : > { %1539 = vrot.lane.b32.xlu1 %v650_v20, %s4962_s26  ;;  %1541 = vrot.lane.b32.xlu0 %v651_v5, %s4962_s26  ;;  %v684_v20 = vld [vmem:[#allocation2 + $0x172] sm:$0xff] }
 0x213   : > { %v6158_v3 = vpop.permute.xlu1 %1411  ;;  %v6160_v14 = vpop.permute.xlu0 %1417 }
 0x214   : > { %8295 = vst [vmem:[#allocation143_spill] sm:$0xff] %v6158_v3  ;;  %8296 = vst [vmem:[#allocation144_spill] sm:$0xff] %v6160_v14  ;;  %v655_v14 = vld [vmem:[#allocation2 + $0x199] sm:$0xff] }
 0x215   : > { %1667 = vrot.lane.b32.xlu1 %v682_v43, %s4963_s28  ;;  %1669 = vrot.lane.b32.xlu0 %v683_v42, %s4963_s28  ;;  %v400_v43 = vld [vmem:[#allocation2] sm:$0xff] }
 0x217   : > { %v6164_v47 = vpop.permute.xlu1 %1415  ;;  %v6166_v8 = vpop.permute.xlu0 %1421 }
 0x218   : > { %8297 = vst [vmem:[#allocation145_spill] sm:$0xff] %v6164_v47  ;;  %8298 = vst [vmem:[#allocation146_spill] sm:$0xff] %v6166_v8  ;;  %v8301_v8 = vld [vmem:[#allocation4_spill] sm:$0xff]  ;;  %v8302_v47 = vld [vmem:[#allocation3_spill] sm:$0xff] }
 0x219   : > { %1543 = vrot.lane.b32.xlu1 %v652_v0, %s4962_s26  ;;  %1545 = vrot.lane.b32.xlu0 %v5709_v56, %s4962_s26  ;;  %v1714_v0 = vsel %vm279_vm0, %v401_v34, %v8301_v8  ;;  %v1713_v56 = vsel %vm279_vm0, %v400_v43, %v8302_v47  ;;  %v8307_v47 = vld [vmem:[#allocation66_spill] sm:$0xff] }
 0x21a   : > { %v1746_v8 = vsel %vm1745_vm3, %v1713_v56, %v8306_v26 }
 0x21b   : > { %v6171_v5 = vpop.permute.xlu1 %1419  ;;  %v1490_v3 = vpop.permute.xlu0 %1489 }
 0x21c   : > { %8299 = vst [vmem:[#allocation147_spill] sm:$0xff] %v6171_v5  ;;  %v8303_v5 = vld [vmem:[#allocation67_spill] sm:$0xff] }
 0x21d   : > { %1671 = vrot.lane.b32.xlu1 %v684_v20, %s4963_s28  ;;  %1673 = vrot.lane.b32.xlu0 %v5841_v21, %s4963_s28  ;;  %v1747_v2 = vsel %vm1745_vm3, %v1714_v0, %v8303_v5  ;;  %v8305_v21 = vld [vmem:[#allocation12_spill] sm:$0xff]  ;;  %v1779_v5 = vsel %vm1778_vm4, %v1746_v8, %v5693_v52 }
 0x21e   : > { %v1780_v34 = vsel %vm1778_vm4, %v1747_v2, %v5707_v55  ;;  %v1812_v55 = vsel %vm1811_vm5, %v1779_v5, %v5825_v22  ;;  %v688_v5 = vld [vmem:[#allocation2 + $0x1a2] sm:$0xff] }
 0x21f   : > { %v6176_v42 = vpop.permute.xlu1 %1423  ;;  %v1494_v20 = vpop.permute.xlu0 %1493 }
 0x220   : > { %8300 = vst [vmem:[#allocation148_spill] sm:$0xff] %v6176_v42  ;;  %v1715_v42 = vsel %vm279_vm0, %v8305_v21, %v8304_v4  ;;  %v4913_v21 = vld [vmem:[#allocation2 + $0x20] sm:$0xff] }
 0x221   : > { %1547 = vrot.lane.b32.xlu1 %v5723_v60, %s4962_s26  ;;  %v1748_v43 = vsel %vm1745_vm3, %v1715_v42, %v8307_v47  ;;  %v1813_v60 = vsel %vm1811_vm5, %v1780_v34, %v5839_v29  ;;  %1549 = vrot.lane.b32.xlu0 %v655_v14, %s4962_s26  ;;  %v687_v42 = vld [vmem:[#allocation2 + $0x19a] sm:$0xff]  ;;  %v1845_v29 = vsel %vm1844_vm6, %v1812_v55, %v5957_v10 }
 0x222   : > { %v1781_v26 = vsel %vm1778_vm4, %v1748_v43, %v5701_v54  ;;  %v1846_v2 = vsel %vm1844_vm6, %v1813_v60, %v5983_v39  ;;  %v1878_v54 = vsel %vm1877_vm7, %v1845_v29, %v6076_v7  ;;  %v656_v39 = vld [vmem:[#allocation2 + $0x1a1] sm:$0xff]  ;;  %v4914_v60 = vld [vmem:[#allocation2 + $0x30] sm:$0xff] }
 0x223   : > { %v1492_v4 = vpop.permute.xlu1 %1491  ;;  %v1814_v52 = vsel %vm1811_vm5, %v1781_v26, %v5833_v24  ;;  %v1879_v14 = vsel %vm1877_vm7, %v1846_v2, %v6086_v6  ;;  %v1620_v0 = vpop.permute.xlu0 %1619  ;;  %v1911_v10 = vsel %vm1910_vm8, %v1878_v54, %v1490_v3  ;;  %v8308_v7 = vld [vmem:[#allocation10_spill] sm:$0xff]  ;;  %v8311_v2 = vld [vmem:[#allocation69_spill] sm:$0xff] }
 0x224   : > { %v1912_v22 = vsel %vm1910_vm8, %v1879_v14, %v1492_v4  ;;  %v1847_v24 = vsel %vm1844_vm6, %v1814_v52, %v5971_v41  ;;  %v1716_v8 = vsel %vm279_vm0, %v4913_v21, %v8308_v7  ;;  %v8309_v41 = vld [vmem:[#allocation70_spill] sm:$0xff]  ;;  %v8310_v4 = vld [vmem:[#allocation8_spill] sm:$0xff]  ;;  %v8314_v7 = vld [vmem:[#allocation11_spill] sm:$0xff] }
 0x225   : > { %1675 = vrot.lane.b32.xlu1 %v5855_v28, %s4963_s28  ;;  %1677 = vrot.lane.b32.xlu0 %v687_v42, %s4963_s28  ;;  %v1880_v56 = vsel %vm1877_vm7, %v1847_v24, %v6082_v45  ;;  %v1945_v47 = vsel %vm1943_vm9, %v1912_v22, %v1620_v0  ;;  %v1749_v3 = vsel %vm1745_vm3, %v1716_v8, %v8309_v41  ;;  %v4915_v24 = vld [vmem:[#allocation2 + $0x38] sm:$0xff]  ;;  %v4916_v21 = vld [vmem:[#allocation2 + $0x48] sm:$0xff] }
 0x226   : > { %v1913_v34 = vsel %vm1910_vm8, %v1880_v56, %v1494_v20  ;;  %v1717_v26 = vsel %vm279_vm0, %v4914_v60, %v8310_v4  ;;  %v1782_v20 = vsel %vm1778_vm4, %v1749_v3, %v5717_v57 }
 0x227   : > { %v1618_v6 = vpop.permute.xlu1 %1617  ;;  %v1622_v43 = vpop.permute.xlu0 %1621  ;;  %v1750_v42 = vsel %vm1745_vm3, %v1717_v26, %v8311_v2  ;;  %v1815_v52 = vsel %vm1811_vm5, %v1782_v20, %v5849_v35 }
 0x228   : > { %v1944_v28 = vsel %vm1943_vm9, %v1911_v10, %v1618_v6  ;;  %v1946_v45 = vsel %vm1943_vm9, %v1913_v34, %v1622_v43  ;;  %v1783_v29 = vsel %vm1778_vm4, %v1750_v42, %v5711_v50  ;;  %v1848_v14 = vsel %vm1844_vm6, %v1815_v52, %v5990_v13  ;;  %v8312_v10 = vld [vmem:[#allocation14_spill] sm:$0xff]  ;;  %v4918_v52 = vld [vmem:[#allocation2 + $0x60] sm:$0xff] }
 0x229   : > { %1551 = vrot.lane.b32.xlu1 %v656_v39, %s4962_s26  ;;  %4774 = vmatprep.mubr.msk.f32.mxu0 %vm1981_vm10, %v1944_v28  ;;  %v1816_v57 = vsel %vm1811_vm5, %v1783_v29, %v5843_v18  ;;  %v1881_v54 = vsel %vm1877_vm7, %v1848_v14, %v6092_v30  ;;  %v1718_v6 = vsel %vm279_vm0, %v4915_v24, %v8312_v10  ;;  %v8313_v30 = vld [vmem:[#allocation72_spill] sm:$0xff]  ;;  %v8317_v29 = vld [vmem:[#allocation15_spill] sm:$0xff] }
 0x22a   : > { %4775 = vmatmul.mubr.msk.f32.vlgmr.msra.gmra.mrb[0].mxu0 %vm1981_vm10, %v1945_v47  ;;  %v1849_v22 = vsel %vm1844_vm6, %v1816_v57, %v5985_v11  ;;  %v1751_v11 = vsel %vm1745_vm3, %v1718_v6, %v8313_v30  ;;  %v8315_v47 = vld [vmem:[#allocation71_spill] sm:$0xff]  ;;  %v8318_v57 = vld [vmem:[#allocation73_spill] sm:$0xff]  ;;  %v4919_v6 = vld [vmem:[#allocation2 + $0x68] sm:$0xff] }
 0x22b   : > { %v1496_v55 = vpop.permute.xlu1 %1495  ;;  %4777 = vmatprep.mubr.msk.f32.mxu0 %vm1981_vm10, %v1946_v45  ;;  %v1498_v0 = vpop.permute.xlu0 %1497  ;;  %v1882_v50 = vsel %vm1877_vm7, %v1849_v22, %v6088_v9  ;;  %v1719_v9 = vsel %vm279_vm0, %v4916_v21, %v8314_v7  ;;  %v1784_v8 = vsel %vm1778_vm4, %v1751_v11, %v5727_v61  ;;  %v4920_v30 = vld [vmem:[#allocation2 + $0x78] sm:$0xff]  ;;  %v8320_v11 = vld [vmem:[#allocation18_spill] sm:$0xff] }
 0x22c   : > { %v1914_v35 = vsel %vm1910_vm8, %v1881_v54, %v1496_v55  ;;  %v1915_v18 = vsel %vm1910_vm8, %v1882_v50, %v1498_v0  ;;  %v1752_v43 = vsel %vm1745_vm3, %v1719_v9, %v8315_v47  ;;  %v1817_v41 = vsel %vm1811_vm5, %v1784_v8, %v5859_v49  ;;  %v4917_v55 = vld [vmem:[#allocation2 + $0x50] sm:$0xff] }
 0x22d   : > { %1679 = vrot.lane.b32.xlu1 %v688_v5, %s4963_s28  ;;  %v1785_v3 = vsel %vm1778_vm4, %v1752_v43, %v5719_v59  ;;  %v1850_v45 = vsel %vm1844_vm6, %v1817_v41, %v6002_v44  ;;  %v8316_v44 = vld [vmem:[#allocation17_spill] sm:$0xff] }
 0x22e   : > { %v1818_v60 = vsel %vm1811_vm5, %v1785_v3, %v5851_v23  ;;  %v1883_v61 = vsel %vm1877_vm7, %v1850_v45, %v6098_v31  ;;  %v1720_v2 = vsel %vm279_vm0, %v4917_v55, %v8316_v44  ;;  %v4921_v3 = vld [vmem:[#allocation2 + $0x80] sm:$0xff]  ;;  %v8326_v44 = vld [vmem:[#allocation7_spill] sm:$0xff] }
 0x22f   : > { %v1624_v39 = vpop.permute.xlu1 %1623  ;;  %v1626_v56 = vpop.permute.xlu0 %1625  ;;  %v1851_v4 = vsel %vm1844_vm6, %v1818_v60, %v5996_v12  ;;  %v1753_v12 = vsel %vm1745_vm3, %v1720_v2, %v5603_v58 }
 0x230   : > { %v1947_v13 = vsel %vm1943_vm9, %v1914_v35, %v1624_v39  ;;  %v1948_v28 = vsel %vm1943_vm9, %v1915_v18, %v1626_v56  ;;  %v1884_v49 = vsel %vm1877_vm7, %v1851_v4, %v6094_v48  ;;  %v1721_v48 = vsel %vm279_vm0, %v4918_v52, %v8317_v29  ;;  %v8323_v4 = vld [vmem:[#allocation22_spill] sm:$0xff]  ;;  %v8329_v29 = vld [vmem:[#allocation5_spill] sm:$0xff] }
 0x231   : > { %4778 = vmatmul.mubr.msk.f32.gmra.mrb[2].mxu0 %vm1981_vm10, %v1947_v13  ;;  %v1786_v14 = vsel %vm1778_vm4, %v1753_v12, %v5735_v63  ;;  %v1754_v54 = vsel %vm1745_vm3, %v1721_v48, %v8318_v57  ;;  %v8328_v12 = vld [vmem:[#allocation53_spill] sm:$0xff]  ;;  %v8331_v57 = vld [vmem:[#allocation51_spill] sm:$0xff] }
 0x232   : > { %4780 = vmatprep.mubr.msk.f32.mxu0 %vm1981_vm10, %v1948_v28  ;;  %v1819_v22 = vsel %vm1811_vm5, %v1786_v14, %v5867_v46  ;;  %v1787_v58 = vsel %vm1778_vm4, %v1754_v54, %v5729_v53  ;;  %v8330_v14 = vld [vmem:[#allocation129_spill] sm:$0xff] }
 0x233   : > { %v1500_v34 = vpop.permute.xlu1 %1499  ;;  %v1502_v5 = vpop.permute.xlu0 %1501  ;;  %v1852_v35 = vsel %vm1844_vm6, %v1819_v22, %v6008_v32  ;;  %v1820_v50 = vsel %vm1811_vm5, %v1787_v58, %v5861_v16  ;;  %v8319_v32 = vld [vmem:[#allocation20_spill] sm:$0xff] }
 0x234   : > { %v1916_v26 = vsel %vm1910_vm8, %v1883_v61, %v1500_v34  ;;  %v1917_v23 = vsel %vm1910_vm8, %v1884_v49, %v1502_v5  ;;  %v1885_v63 = vsel %vm1877_vm7, %v1852_v35, %v6104_v15  ;;  %v1853_v13 = vsel %vm1844_vm6, %v1820_v50, %v6004_v40  ;;  %v4922_v61 = vld [vmem:[#allocation2 + $0x90] sm:$0xff]  ;;  %v8332_v35 = vld [vmem:[#allocation128_spill] sm:$0xff] }
 0x235   : > { %v1886_v46 = vsel %vm1877_vm7, %v1853_v13, %v6100_v62  ;;  %v1722_v18 = vsel %vm279_vm0, %v4919_v6, %v8319_v32  ;;  %v1723_v62 = vsel %vm279_vm0, %v4920_v30, %v8320_v11  ;;  %v8333_v13 = vld [vmem:[#allocation28_spill] sm:$0xff] }
 0x236   : > { %v1755_v40 = vsel %vm1745_vm3, %v1722_v18, %v5611_v25  ;;  %v1756_v7 = vsel %vm1745_vm3, %v1723_v62, %v5605_v33  ;;  %v4924_v18 = vld [vmem:[#allocation2 + $0xa8] sm:$0xff]  ;;  %v8337_v11 = vld [vmem:[#allocation76_spill] sm:$0xff] }
 0x237   : > { %v1628_v20 = vpop.permute.xlu1 %1627  ;;  %v1630_v42 = vpop.permute.xlu0 %1629  ;;  %v1788_v28 = vsel %vm1778_vm4, %v1755_v40, %v5743_v1  ;;  %v1789_v25 = vsel %vm1778_vm4, %v1756_v7, %v5737_v51  ;;  %v8336_v40 = vld [vmem:[#allocation98_spill] sm:$0xff]  ;;  %v8339_v7 = vld [vmem:[#allocation97_spill] sm:$0xff] }
 0x238   : > { %v1949_v59 = vsel %vm1943_vm9, %v1916_v26, %v1628_v20  ;;  %v1950_v31 = vsel %vm1943_vm9, %v1917_v23, %v1630_v42  ;;  %v1821_v9 = vsel %vm1811_vm5, %v1788_v28, %v5875_v19  ;;  %v1822_v47 = vsel %vm1811_vm5, %v1789_v25, %v5869_v17  ;;  %v8324_v26 = vld [vmem:[#allocation96_spill] sm:$0xff]  ;;  %v8327_v23 = vld [vmem:[#allocation95_spill] sm:$0xff]  ;;  %v8338_v28 = vld [vmem:[#allocation13_spill] sm:$0xff] }
 0x239   : > { %4781 = vmatmul.mubr.msk.f32.gmra.mrb[4].mxu0 %vm1981_vm10, %v1949_v59  ;;  %v1854_v8 = vsel %vm1844_vm6, %v1821_v9, %v6014_v36  ;;  %v1855_v43 = vsel %vm1844_vm6, %v1822_v47, %v6010_v37  ;;  %v8321_v36 = vld [vmem:[#allocation24_spill] sm:$0xff]  ;;  %v8325_v59 = vld [vmem:[#allocation74_spill] sm:$0xff]  ;;  %v8340_v25 = vld [vmem:[#allocation57_spill] sm:$0xff] }
 0x23a   : > { %4783 = vmatprep.mubr.msk.f32.mxu0 %vm1981_vm10, %v1950_v31  ;;  %v1887_v1 = vsel %vm1877_vm7, %v1854_v8, %v6110_v38  ;;  %v1888_v19 = vsel %vm1877_vm7, %v1855_v43, %v6106_v27  ;;  %v1724_v45 = vsel %vm279_vm0, %v4921_v3, %v8321_v36  ;;  %v8322_v38 = vld [vmem:[#allocation75_spill] sm:$0xff]  ;;  %v1725_v27 = vsel %vm279_vm0, %v4922_v61, %v8323_v4  ;;  %v8341_v47 = vld [vmem:[#allocation9_spill] sm:$0xff]  ;;  %v8344_v36 = vld [vmem:[#allocation130_spill] sm:$0xff] }
 0x23b   : > { %v1504_v0 = vpop.permute.xlu1 %1503  ;;  %v1506_v39 = vpop.permute.xlu0 %1505  ;;  %v1757_v37 = vsel %vm1745_vm3, %v1724_v45, %v8322_v38  ;;  %v1758_v55 = vsel %vm1745_vm3, %v1725_v27, %v8325_v59  ;;  %v8342_v43 = vld [vmem:[#allocation131_spill] sm:$0xff]  ;;  %v8345_v38 = vld [vmem:[#allocation32_spill] sm:$0xff] }
 0x23c   : > { %v1918_v24 = vsel %vm1910_vm8, %v1885_v63, %v1504_v0  ;;  %v1919_v16 = vsel %vm1910_vm8, %v1886_v46, %v1506_v39  ;;  %v1790_v20 = vsel %vm1778_vm4, %v1757_v37, %v8324_v26  ;;  %v1791_v42 = vsel %vm1778_vm4, %v1758_v55, %v8327_v23  ;;  %v4923_v63 = vld [vmem:[#allocation2 + $0x98] sm:$0xff]  ;;  %v8346_v4 = vld [vmem:[#allocation79_spill] sm:$0xff]  ;;  %v8349_v23 = vld [vmem:[#allocation78_spill] sm:$0xff] }
 0x23d   : > { %v1823_v2 = vsel %vm1811_vm5, %v1790_v20, %v8326_v44  ;;  %v1824_v48 = vsel %vm1811_vm5, %v1791_v42, %v8329_v29  ;;  %v4926_v20 = vld [vmem:[#allocation2 + $0xc0] sm:$0xff]  ;;  %v8348_v55 = vld [vmem:[#allocation100_spill] sm:$0xff] }
 0x23e   : > { %v1856_v31 = vsel %vm1844_vm6, %v1823_v2, %v8328_v12  ;;  %v1857_v54 = vsel %vm1844_vm6, %v1824_v48, %v8331_v57  ;;  %v8350_v12 = vld [vmem:[#allocation19_spill] sm:$0xff]  ;;  %v8352_v48 = vld [vmem:[#allocation61_spill] sm:$0xff]  ;;  %v8353_v57 = vld [vmem:[#allocation16_spill] sm:$0xff] }
 0x23f   : > { %v1632_v10 = vpop.permute.xlu1 %1631  ;;  %v1634_v56 = vpop.permute.xlu0 %1633  ;;  %v1889_v0 = vsel %vm1877_vm7, %v1856_v31, %v8330_v14  ;;  %v1890_v39 = vsel %vm1877_vm7, %v1857_v54, %v8332_v35  ;;  %v8355_v35 = vld [vmem:[#allocation59_spill] sm:$0xff] }
 0x240   : > { %v1951_v53 = vsel %vm1943_vm9, %v1918_v24, %v1632_v10  ;;  %v1952_v15 = vsel %vm1943_vm9, %v1919_v16, %v1634_v56  ;;  %v1726_v24 = vsel %vm279_vm0, %v4923_v63, %v8333_v13  ;;  %v8335_v16 = vld [vmem:[#allocation26_spill] sm:$0xff]  ;;  %v8356_v13 = vld [vmem:[#allocation132_spill] sm:$0xff] }
 0x241   : > { %4784 = vmatmul.mubr.msk.f32.gmra.mrb[6].mxu0 %vm1981_vm10, %v1951_v53  ;;  %v8334_v53 = vld [vmem:[#allocation77_spill] sm:$0xff]  ;;  %v1727_v56 = vsel %vm279_vm0, %v4924_v18, %v8335_v16 }
 0x242   : > { %4786 = vmatprep.mubr.msk.f32.mxu0 %vm1981_vm10, %v1952_v15  ;;  %v1759_v6 = vsel %vm1745_vm3, %v1726_v24, %v8334_v53  ;;  %v1760_v62 = vsel %vm1745_vm3, %v1727_v56, %v8337_v11  ;;  %v8357_v53 = vld [vmem:[#allocation36_spill] sm:$0xff]  ;;  %v8358_v16 = vld [vmem:[#allocation81_spill] sm:$0xff] }
 0x243   : > { %v1508_v21 = vpop.permute.xlu1 %1507  ;;  %v1510_v34 = vpop.permute.xlu0 %1509  ;;  %v1792_v15 = vsel %vm1778_vm4, %v1759_v6, %v8336_v40  ;;  %v1793_v9 = vsel %vm1778_vm4, %v1760_v62, %v8339_v7  ;;  %v8360_v62 = vld [vmem:[#allocation102_spill] sm:$0xff]  ;;  %v8361_v7 = vld [vmem:[#allocation80_spill] sm:$0xff] }
 0x244   : > { %v1920_v33 = vsel %vm1910_vm8, %v1887_v1, %v1508_v21  ;;  %v1921_v17 = vsel %vm1910_vm8, %v1888_v19, %v1510_v34  ;;  %v1825_v21 = vsel %vm1811_vm5, %v1792_v15, %v8338_v28  ;;  %v1826_v1 = vsel %vm1811_vm5, %v1793_v9, %v8341_v47  ;;  %v4928_v15 = vld [vmem:[#allocation2 + $0xd8] sm:$0xff] }
 0x245   : > { %v1858_v8 = vsel %vm1844_vm6, %v1825_v21, %v8340_v25  ;;  %v8362_v25 = vld [vmem:[#allocation23_spill] sm:$0xff] }
 0x247   : > { %v1636_v41 = vpop.permute.xlu1 %1635  ;;  %v1638_v5 = vpop.permute.xlu0 %1637 }
 0x248   : > { %v1953_v51 = vsel %vm1943_vm9, %v1920_v33, %v1636_v41  ;;  %v1954_v60 = vsel %vm1943_vm9, %v1921_v17, %v1638_v5  ;;  %v1891_v33 = vsel %vm1877_vm7, %v1858_v8, %v8342_v43  ;;  %v8343_v41 = vld [vmem:[#allocation55_spill] sm:$0xff] }
 0x249   : > { %4787 = vmatmul.mubr.msk.f32.gmra.mrb[8].mxu0 %vm1981_vm10, %v1953_v51  ;;  %v1859_v19 = vsel %vm1844_vm6, %v1826_v1, %v8343_v41  ;;  %v4925_v5 = vld [vmem:[#allocation2 + $0xb0] sm:$0xff]  ;;  %v8364_v1 = vld [vmem:[#allocation65_spill] sm:$0xff] }
 0x24a   : > { %4789 = vmatprep.mubr.msk.f32.mxu0 %vm1981_vm10, %v1954_v60  ;;  %v1892_v45 = vsel %vm1877_vm7, %v1859_v19, %v8344_v36  ;;  %v1728_v37 = vsel %vm279_vm0, %v4925_v5, %v8345_v38  ;;  %v8365_v41 = vld [vmem:[#allocation21_spill] sm:$0xff]  ;;  %v8367_v36 = vld [vmem:[#allocation63_spill] sm:$0xff]  ;;  %v8368_v38 = vld [vmem:[#allocation134_spill] sm:$0xff] }
 0x24b   : > { %v1512_v49 = vpop.permute.xlu1 %1511  ;;  %v1514_v52 = vpop.permute.xlu0 %1513  ;;  %v1761_v27 = vsel %vm1745_vm3, %v1728_v37, %v8346_v4  ;;  %v8369_v4 = vld [vmem:[#allocation40_spill] sm:$0xff] }
 0x24c   : > { %v1922_v22 = vsel %vm1910_vm8, %v1889_v0, %v1512_v49  ;;  %v1923_v10 = vsel %vm1910_vm8, %v1890_v39, %v1514_v52  ;;  %v8347_v49 = vld [vmem:[#allocation30_spill] sm:$0xff]  ;;  %v1794_v44 = vsel %vm1778_vm4, %v1761_v27, %v8348_v55  ;;  %v8351_v52 = vld [vmem:[#allocation99_spill] sm:$0xff] }
 0x24d   : > { %v1729_v59 = vsel %vm279_vm0, %v4926_v20, %v8347_v49  ;;  %v1827_v31 = vsel %vm1811_vm5, %v1794_v44, %v8350_v12  ;;  %v8370_v49 = vld [vmem:[#allocation83_spill] sm:$0xff] }
 0x24e   : > { %v1762_v42 = vsel %vm1745_vm3, %v1729_v59, %v8349_v23  ;;  %v1860_v14 = vsel %vm1844_vm6, %v1827_v31, %v8352_v48  ;;  %v4930_v44 = vld [vmem:[#allocation2 + $0xf0] sm:$0xff] }
 0x24f   : > { %v1640_v58 = vpop.permute.xlu1 %1639  ;;  %v1642_v46 = vpop.permute.xlu0 %1641  ;;  %v1795_v29 = vsel %vm1778_vm4, %v1762_v42, %v8351_v52  ;;  %v8372_v42 = vld [vmem:[#allocation104_spill] sm:$0xff]  ;;  %v8373_v52 = vld [vmem:[#allocation82_spill] sm:$0xff]  ;;  %v8374_v48 = vld [vmem:[#allocation27_spill] sm:$0xff] }
 0x250   : > { %v1955_v50 = vsel %vm1943_vm9, %v1922_v22, %v1640_v58  ;;  %v1956_v32 = vsel %vm1943_vm9, %v1923_v10, %v1642_v46  ;;  %v1828_v54 = vsel %vm1811_vm5, %v1795_v29, %v8353_v57  ;;  %v8354_v22 = vld [vmem:[#allocation133_spill] sm:$0xff]  ;;  %v4927_v46 = vld [vmem:[#allocation2 + $0xc8] sm:$0xff] }
 0x251   : > { %4790 = vmatmul.mubr.msk.f32.gmra.mrb[10].mxu0 %vm1981_vm10, %v1955_v50  ;;  %v1893_v58 = vsel %vm1877_vm7, %v1860_v14, %v8354_v22  ;;  %v1861_v39 = vsel %vm1844_vm6, %v1828_v54, %v8355_v35  ;;  %v1730_v6 = vsel %vm279_vm0, %v4927_v46, %v8357_v53  ;;  %v8376_v54 = vld [vmem:[#allocation116_spill] sm:$0xff]  ;;  %v8377_v35 = vld [vmem:[#allocation25_spill] sm:$0xff] }
 0x252   : > { %4792 = vmatprep.mubr.msk.f32.mxu0 %vm1981_vm10, %v1956_v32  ;;  %v1894_v24 = vsel %vm1877_vm7, %v1861_v39, %v8356_v13  ;;  %v1763_v56 = vsel %vm1745_vm3, %v1730_v6, %v8358_v16  ;;  %v8379_v13 = vld [vmem:[#allocation68_spill] sm:$0xff] }
 0x253   : > { %v1516_v30 = vpop.permute.xlu1 %1515  ;;  %v1518_v34 = vpop.permute.xlu0 %1517  ;;  %v1796_v28 = vsel %vm1778_vm4, %v1763_v56, %v8360_v62  ;;  %v8380_v53 = vld [vmem:[#allocation136_spill] sm:$0xff] }
 0x254   : > { %v1924_v51 = vsel %vm1910_vm8, %v1891_v33, %v1516_v30  ;;  %v1925_v60 = vsel %vm1910_vm8, %v1892_v45, %v1518_v34  ;;  %v8359_v30 = vld [vmem:[#allocation34_spill] sm:$0xff]  ;;  %v1829_v8 = vsel %vm1811_vm5, %v1796_v28, %v8362_v25  ;;  %v8363_v34 = vld [vmem:[#allocation101_spill] sm:$0xff]  ;;  %v8381_v16 = vld [vmem:[#allocation44_spill] sm:$0xff] }
 0x255   : > { %v1731_v11 = vsel %vm279_vm0, %v4928_v15, %v8359_v30  ;;  %v1862_v43 = vsel %vm1844_vm6, %v1829_v8, %v8364_v1  ;;  %v8382_v30 = vld [vmem:[#allocation85_spill] sm:$0xff]  ;;  %v4932_v28 = vld [vmem:[#allocation2 + $0x108] sm:$0xff]  ;;  %v8386_v1 = vld [vmem:[#allocation31_spill] sm:$0xff] }
 0x256   : > { %v1764_v9 = vsel %vm1745_vm3, %v1731_v11, %v8361_v7 }
 0x257   : > { %v1644_v3 = vpop.permute.xlu1 %1643  ;;  %v1646_v61 = vpop.permute.xlu0 %1645  ;;  %v1797_v47 = vsel %vm1778_vm4, %v1764_v9, %v8363_v34  ;;  %v8384_v9 = vld [vmem:[#allocation106_spill] sm:$0xff]  ;;  %v8385_v34 = vld [vmem:[#allocation84_spill] sm:$0xff] }
 0x258   : > { %v1957_v17 = vsel %vm1943_vm9, %v1924_v51, %v1644_v3  ;;  %v1958_v26 = vsel %vm1943_vm9, %v1925_v60, %v1646_v61  ;;  %v1830_v19 = vsel %vm1811_vm5, %v1797_v47, %v8365_v41  ;;  %v8366_v51 = vld [vmem:[#allocation135_spill] sm:$0xff]  ;;  %v4929_v61 = vld [vmem:[#allocation2 + $0xe0] sm:$0xff] }
 0x259   : > { %4793 = vmatmul.mubr.msk.f32.gmra.mrb[12].mxu0 %vm1981_vm10, %v1957_v17  ;;  %v1895_v3 = vsel %vm1877_vm7, %v1862_v43, %v8366_v51  ;;  %v1863_v45 = vsel %vm1844_vm6, %v1830_v19, %v8367_v36  ;;  %v1732_v27 = vsel %vm279_vm0, %v4929_v61, %v8369_v4  ;;  %v8388_v19 = vld [vmem:[#allocation118_spill] sm:$0xff]  ;;  %v8389_v36 = vld [vmem:[#allocation29_spill] sm:$0xff] }
 0x25a   : > { %4795 = vmatprep.mubr.msk.f32.mxu0 %vm1981_vm10, %v1958_v26  ;;  %v1896_v37 = vsel %vm1877_vm7, %v1863_v45, %v8368_v38  ;;  %v1765_v59 = vsel %vm1745_vm3, %v1732_v27, %v8370_v49  ;;  %v8391_v38 = vld [vmem:[#allocation117_spill] sm:$0xff]  ;;  %v8392_v4 = vld [vmem:[#allocation138_spill] sm:$0xff]  ;;  %v8393_v49 = vld [vmem:[#allocation48_spill] sm:$0xff] }
 0x25b   : > { %v1520_v2 = vpop.permute.xlu1 %1519  ;;  %v1522_v0 = vpop.permute.xlu0 %1521  ;;  %v1798_v12 = vsel %vm1778_vm4, %v1765_v59, %v8372_v42 }
 0x25c   : > { %v1926_v50 = vsel %vm1910_vm8, %v1893_v58, %v1520_v2  ;;  %v1927_v32 = vsel %vm1910_vm8, %v1894_v24, %v1522_v0  ;;  %v8371_v2 = vld [vmem:[#allocation38_spill] sm:$0xff]  ;;  %v1831_v14 = vsel %vm1811_vm5, %v1798_v12, %v8374_v48  ;;  %v8375_v0 = vld [vmem:[#allocation103_spill] sm:$0xff]  ;;  %v4934_v12 = vld [vmem:[#allocation2 + $0x120] sm:$0xff] }
 0x25d   : > { %v1733_v23 = vsel %vm279_vm0, %v4930_v44, %v8371_v2  ;;  %v1864_v22 = vsel %vm1844_vm6, %v1831_v14, %v8376_v54  ;;  %v8394_v2 = vld [vmem:[#allocation87_spill] sm:$0xff] }
 0x25e   : > { %v1766_v29 = vsel %vm1745_vm3, %v1733_v23, %v8373_v52  ;;  %v8398_v54 = vld [vmem:[#allocation35_spill] sm:$0xff] }
 0x25f   : > { %v1648_v63 = vpop.permute.xlu1 %1647  ;;  %v1650_v18 = vpop.permute.xlu0 %1649  ;;  %v1799_v57 = vsel %vm1778_vm4, %v1766_v29, %v8375_v0  ;;  %v8396_v29 = vld [vmem:[#allocation108_spill] sm:$0xff]  ;;  %v8397_v0 = vld [vmem:[#allocation86_spill] sm:$0xff] }
 0x260   : > { %v1959_v10 = vsel %vm1943_vm9, %v1926_v50, %v1648_v63  ;;  %v1960_v40 = vsel %vm1943_vm9, %v1927_v32, %v1650_v18  ;;  %v1832_v39 = vsel %vm1811_vm5, %v1799_v57, %v8377_v35  ;;  %v8378_v50 = vld [vmem:[#allocation137_spill] sm:$0xff]  ;;  %v4931_v18 = vld [vmem:[#allocation2 + $0xf8] sm:$0xff] }
 0x261   : > { %4796 = vmatmul.mubr.msk.f32.gmra.mrb[14].mxu0 %vm1981_vm10, %v1959_v10  ;;  %v1897_v63 = vsel %vm1877_vm7, %v1864_v22, %v8378_v50  ;;  %v1865_v24 = vsel %vm1844_vm6, %v1832_v39, %v8379_v13  ;;  %v1734_v56 = vsel %vm279_vm0, %v4931_v18, %v8381_v16  ;;  %v8400_v39 = vld [vmem:[#allocation120_spill] sm:$0xff]  ;;  %v8401_v13 = vld [vmem:[#allocation33_spill] sm:$0xff] }
 0x262   : > { %4798 = vmatprep.mubr.msk.f32.mxu0 %vm1981_vm10, %v1960_v40  ;;  %v1898_v6 = vsel %vm1877_vm7, %v1865_v24, %v8380_v53  ;;  %v1767_v11 = vsel %vm1745_vm3, %v1734_v56, %v8382_v30  ;;  %v8403_v53 = vld [vmem:[#allocation119_spill] sm:$0xff]  ;;  %v8404_v16 = vld [vmem:[#allocation140_spill] sm:$0xff] }
 0x263   : > { %v1524_v21 = vpop.permute.xlu1 %1523  ;;  %v1526_v33 = vpop.permute.xlu0 %1525  ;;  %v1800_v25 = vsel %vm1778_vm4, %v1767_v11, %v8384_v9  ;;  %v8405_v30 = vld [vmem:[#allocation52_spill] sm:$0xff] }
 0x264   : > { %v1928_v17 = vsel %vm1910_vm8, %v1895_v3, %v1524_v21  ;;  %v1929_v26 = vsel %vm1910_vm8, %v1896_v37, %v1526_v33  ;;  %v8383_v21 = vld [vmem:[#allocation42_spill] sm:$0xff]  ;;  %v1833_v43 = vsel %vm1811_vm5, %v1800_v25, %v8386_v1  ;;  %v8387_v33 = vld [vmem:[#allocation105_spill] sm:$0xff]  ;;  %v4936_v25 = vld [vmem:[#allocation2 + $0x138] sm:$0xff] }
 0x265   : > { %v1735_v7 = vsel %vm279_vm0, %v4932_v28, %v8383_v21  ;;  %v1866_v51 = vsel %vm1844_vm6, %v1833_v43, %v8388_v19  ;;  %v8406_v21 = vld [vmem:[#allocation89_spill] sm:$0xff]  ;;  %v8410_v19 = vld [vmem:[#allocation39_spill] sm:$0xff] }
 0x266   : > { %v1768_v47 = vsel %vm1745_vm3, %v1735_v7, %v8385_v34 }
 0x267   : > { %v1652_v5 = vpop.permute.xlu1 %1651  ;;  %v1654_v20 = vpop.permute.xlu0 %1653  ;;  %v1801_v41 = vsel %vm1778_vm4, %v1768_v47, %v8387_v33  ;;  %v8408_v47 = vld [vmem:[#allocation110_spill] sm:$0xff]  ;;  %v8409_v33 = vld [vmem:[#allocation88_spill] sm:$0xff] }
 0x268   : > { %v1961_v60 = vsel %vm1943_vm9, %v1928_v17, %v1652_v5  ;;  %v1962_v55 = vsel %vm1943_vm9, %v1929_v26, %v1654_v20  ;;  %v1834_v45 = vsel %vm1811_vm5, %v1801_v41, %v8389_v36  ;;  %v8390_v17 = vld [vmem:[#allocation139_spill] sm:$0xff] }
 0x269   : > { %4799 = vmatmul.mubr.msk.f32.gmra.mrb[16].mxu0 %vm1981_vm10, %v1961_v60  ;;  %v1899_v5 = vsel %vm1877_vm7, %v1866_v51, %v8390_v17  ;;  %v1867_v37 = vsel %vm1844_vm6, %v1834_v45, %v8391_v38  ;;  %v4933_v20 = vld [vmem:[#allocation2 + $0x110] sm:$0xff]  ;;  %v8412_v45 = vld [vmem:[#allocation122_spill] sm:$0xff]  ;;  %v8413_v38 = vld [vmem:[#allocation37_spill] sm:$0xff] }
 0x26a   : > { %4801 = vmatprep.mubr.msk.f32.mxu0 %vm1981_vm10, %v1962_v55  ;;  %v1900_v27 = vsel %vm1877_vm7, %v1867_v37, %v8392_v4  ;;  %v1736_v59 = vsel %vm279_vm0, %v4933_v20, %v8393_v49  ;;  %v8415_v4 = vld [vmem:[#allocation121_spill] sm:$0xff]  ;;  %v2482_v49 = vld [vmem:[#allocation2 + $0x9] sm:$0xff] }
 0x26b   : > { %v1528_v31 = vpop.permute.xlu1 %1527  ;;  %v1530_v58 = vpop.permute.xlu0 %1529  ;;  %v1769_v23 = vsel %vm1745_vm3, %v1736_v59, %v8394_v2  ;;  %v8416_v59 = vld [vmem:[#allocation142_spill] sm:$0xff]  ;;  %2771 = vrot.lane.b32.xlu1 %v2482_v49, %s4956_s8  ;;  %v8438_v49 = vld [vmem:[#allocation147_spill] sm:$0xff] }
 0x26c   : > { %v1930_v10 = vsel %vm1910_vm8, %v1897_v63, %v1528_v31  ;;  %v1931_v40 = vsel %vm1910_vm8, %v1898_v6, %v1530_v58  ;;  %v8395_v31 = vld [vmem:[#allocation46_spill] sm:$0xff]  ;;  %v1802_v48 = vsel %vm1778_vm4, %v1769_v23, %v8396_v29  ;;  %v8399_v58 = vld [vmem:[#allocation107_spill] sm:$0xff]  ;;  %v4937_v23 = vld [vmem:[#allocation2 + $0x140] sm:$0xff] }
 0x26d   : > { %v1737_v52 = vsel %vm279_vm0, %v4934_v12, %v8395_v31  ;;  %v1835_v22 = vsel %vm1811_vm5, %v1802_v48, %v8398_v54  ;;  %v2481_v2 = vld [vmem:[#allocation2 + $0x1] sm:$0xff]  ;;  %v8418_v29 = vld [vmem:[#allocation91_spill] sm:$0xff] }
 0x26e   : > { %v1770_v57 = vsel %vm1745_vm3, %v1737_v52, %v8397_v0  ;;  %v1868_v50 = vsel %vm1844_vm6, %v1835_v22, %v8400_v39  ;;  %2769 = vrot.lane.b32.xlu0 %v2481_v2, %s4956_s8  ;;  %v4938_v0 = vld [vmem:[#allocation2 + $0x150] sm:$0xff]  ;;  %v8420_v22 = vld [vmem:[#allocation112_spill] sm:$0xff]  ;;  %v8421_v39 = vld [vmem:[#allocation90_spill] sm:$0xff] }
 0x26f   : > { %v1656_v46 = vpop.permute.xlu1 %1655  ;;  %v1658_v15 = vpop.permute.xlu0 %1657  ;;  %v1803_v35 = vsel %vm1778_vm4, %v1770_v57, %v8399_v58  ;;  %v8419_v57 = vld [vmem:[#allocation54_spill] sm:$0xff] }
 0x270   : > { %v1963_v32 = vsel %vm1943_vm9, %v1930_v10, %v1656_v46  ;;  %v1964_v62 = vsel %vm1943_vm9, %v1931_v40, %v1658_v15  ;;  %v1836_v24 = vsel %vm1811_vm5, %v1803_v35, %v8401_v13  ;;  %v8402_v10 = vld [vmem:[#allocation141_spill] sm:$0xff]  ;;  %v4935_v15 = vld [vmem:[#allocation2 + $0x128] sm:$0xff]  ;;  %v1741_v54 = vsel %vm279_vm0, %v4938_v0, %v8419_v57 }
 0x271   : > { %4802 = vmatmul.mubr.msk.f32.gmra.mrb[18].mxu0 %vm1981_vm10, %v1963_v32  ;;  %v1901_v46 = vsel %vm1877_vm7, %v1868_v50, %v8402_v10  ;;  %v1869_v6 = vsel %vm1844_vm6, %v1836_v24, %v8403_v53  ;;  %v1738_v11 = vsel %vm279_vm0, %v4935_v15, %v8405_v30  ;;  %v1774_v50 = vsel %vm1745_vm3, %v1741_v54, %v8421_v39  ;;  %v8423_v24 = vld [vmem:[#allocation111_spill] sm:$0xff]  ;;  %v8442_v57 = vld [vmem:[#allocation94_spill] sm:$0xff] }
 0x272   : > { %4804 = vmatprep.mubr.msk.f32.mxu0 %vm1981_vm10, %v1964_v62  ;;  %v1902_v56 = vsel %vm1877_vm7, %v1869_v6, %v8404_v16  ;;  %v1771_v7 = vsel %vm1745_vm3, %v1738_v11, %v8406_v21  ;;  %v1807_v10 = vsel %vm1778_vm4, %v1774_v50, %v8423_v24  ;;  %v8426_v16 = vld [vmem:[#allocation145_spill] sm:$0xff] }
 0x273   : > { %v1532_v8 = vpop.permute.xlu1 %1531  ;;  %v1534_v3 = vpop.permute.xlu0 %1533  ;;  %v1804_v1 = vsel %vm1778_vm4, %v1771_v7, %v8408_v47  ;;  %v4939_v7 = vld [vmem:[#allocation2 + $0x158] sm:$0xff]  ;;  %v8430_v47 = vld [vmem:[#allocation93_spill] sm:$0xff] }
 0x274   : > { %v1932_v60 = vsel %vm1910_vm8, %v1899_v5, %v1532_v8  ;;  %v1933_v55 = vsel %vm1910_vm8, %v1900_v27, %v1534_v3  ;;  %v8407_v8 = vld [vmem:[#allocation50_spill] sm:$0xff]  ;;  %v1837_v51 = vsel %vm1811_vm5, %v1804_v1, %v8410_v19  ;;  %v8411_v3 = vld [vmem:[#allocation109_spill] sm:$0xff] }
 0x275   : > { %v1739_v34 = vsel %vm279_vm0, %v4936_v25, %v8407_v8  ;;  %v1870_v17 = vsel %vm1844_vm6, %v1837_v51, %v8412_v45  ;;  %v8432_v51 = vld [vmem:[#allocation114_spill] sm:$0xff]  ;;  %v8433_v45 = vld [vmem:[#allocation92_spill] sm:$0xff]  ;;  %v8444_v50 = vld [vmem:[#allocation49_spill] sm:$0xff] }
 0x276   : > { %v1772_v41 = vsel %vm1745_vm3, %v1739_v34, %v8409_v33  ;;  %v4940_v33 = vld [vmem:[#allocation2 + $0x168] sm:$0xff] }
 0x277   : > { %v1660_v61 = vpop.permute.xlu1 %1659  ;;  %v1662_v44 = vpop.permute.xlu0 %1661  ;;  %v1805_v36 = vsel %vm1778_vm4, %v1772_v41, %v8411_v3  ;;  %v8431_v41 = vld [vmem:[#allocation58_spill] sm:$0xff] }
 0x278   : > { %v1965_v26 = vsel %vm1943_vm9, %v1932_v60, %v1660_v61  ;;  %v1966_v42 = vsel %vm1943_vm9, %v1933_v55, %v1662_v44  ;;  %v1838_v37 = vsel %vm1811_vm5, %v1805_v36, %v8413_v38  ;;  %v8414_v60 = vld [vmem:[#allocation143_spill] sm:$0xff]  ;;  %v1743_v19 = vsel %vm279_vm0, %v4940_v33, %v8431_v41 }
 0x279   : > { %4805 = vmatmul.mubr.msk.f32.gmra.mrb[20].mxu0 %vm1981_vm10, %v1965_v26  ;;  %v1903_v61 = vsel %vm1877_vm7, %v1870_v17, %v8414_v60  ;;  %v1871_v27 = vsel %vm1844_vm6, %v1838_v37, %v8415_v4  ;;  %v1776_v17 = vsel %vm1745_vm3, %v1743_v19, %v8433_v45  ;;  %v8435_v37 = vld [vmem:[#allocation113_spill] sm:$0xff] }
 0x27a   : > { %4807 = vmatprep.mubr.msk.f32.mxu0 %vm1981_vm10, %v1966_v42  ;;  %v1904_v55 = vsel %vm1877_vm7, %v1871_v27, %v8416_v59  ;;  %v8417_v42 = vld [vmem:[#allocation56_spill] sm:$0xff]  ;;  %v1809_v60 = vsel %vm1778_vm4, %v1776_v17, %v8435_v37 }
 0x27b   : > { %v1536_v14 = vpop.permute.xlu1 %1535  ;;  %v1538_v63 = vpop.permute.xlu0 %1537  ;;  %v1740_v12 = vsel %vm279_vm0, %v4937_v23, %v8417_v42  ;;  %v8440_v42 = vld [vmem:[#allocation146_spill] sm:$0xff] }
 0x27c   : > { %v1934_v32 = vsel %vm1910_vm8, %v1901_v46, %v1536_v14  ;;  %v1935_v62 = vsel %vm1910_vm8, %v1902_v56, %v1538_v63  ;;  %v1773_v48 = vsel %vm1745_vm3, %v1740_v12, %v8418_v29  ;;  %v8422_v63 = vld [vmem:[#allocation43_spill] sm:$0xff]  ;;  %v8424_v46 = vld [vmem:[#allocation124_spill] sm:$0xff] }
 0x27d   : > { %v1806_v58 = vsel %vm1778_vm4, %v1773_v48, %v8420_v22  ;;  %v8441_v29 = vld [vmem:[#allocation64_spill] sm:$0xff] }
 0x27e   : > { %v1839_v13 = vsel %vm1811_vm5, %v1806_v58, %v8422_v63  ;;  %v8443_v58 = vld [vmem:[#allocation115_spill] sm:$0xff] }
 0x27f   : > { %v1664_v18 = vpop.permute.xlu1 %1663  ;;  %v1666_v28 = vpop.permute.xlu0 %1665  ;;  %v1872_v53 = vsel %vm1844_vm6, %v1839_v13, %v8424_v46  ;;  %v8445_v13 = vld [vmem:[#allocation127_spill] sm:$0xff] }
 0x280   : > { %v1967_v40 = vsel %vm1943_vm9, %v1934_v32, %v1664_v18  ;;  %v1968_v9 = vsel %vm1943_vm9, %v1935_v62, %v1666_v28  ;;  %v8425_v32 = vld [vmem:[#allocation41_spill] sm:$0xff]  ;;  %v1905_v56 = vsel %vm1877_vm7, %v1872_v53, %v8426_v16  ;;  %v8428_v62 = vld [vmem:[#allocation144_spill] sm:$0xff] }
 0x281   : > { %4808 = vmatmul.mubr.msk.f32.gmra.mrb[22].mxu0 %vm1981_vm10, %v1967_v40  ;;  %v1840_v18 = vsel %vm1811_vm5, %v1807_v10, %v8425_v32  ;;  %v8427_v40 = vld [vmem:[#allocation123_spill] sm:$0xff]  ;;  %v8446_v10 = vld [vmem:[#allocation148_spill] sm:$0xff] }
 0x282   : > { %4810 = vmatprep.mubr.msk.f32.mxu0 %vm1981_vm10, %v1968_v9  ;;  %v1873_v15 = vsel %vm1844_vm6, %v1840_v18, %v8427_v40  ;;  %v8429_v9 = vld [vmem:[#allocation60_spill] sm:$0xff]  ;;  %v6672_v18 = vld [vmem:[%s8053_s3] ss:$0 sm:$0xff] }
 0x283   : > { %v1540_v43 = vpop.permute.xlu1 %1539  ;;  %v1542_v5 = vpop.permute.xlu0 %1541  ;;  %v1906_v28 = vsel %vm1877_vm7, %v1873_v15, %v8428_v62  ;;  %v1742_v25 = vsel %vm279_vm0, %v4939_v7, %v8429_v9 }
 0x284   : > { %v1936_v26 = vsel %vm1910_vm8, %v1903_v61, %v1540_v43  ;;  %v1937_v31 = vsel %vm1910_vm8, %v1904_v55, %v1542_v5  ;;  %v1775_v1 = vsel %vm1745_vm3, %v1742_v25, %v8430_v47  ;;  %v8434_v5 = vld [vmem:[#allocation47_spill] sm:$0xff]  ;;  %v8436_v61 = vld [vmem:[#allocation126_spill] sm:$0xff]  ;;  %v8439_v55 = vld [vmem:[#allocation125_spill] sm:$0xff] }
 0x285   : > { %v1808_v3 = vsel %vm1778_vm4, %v1775_v1, %v8432_v51 }
 0x286   : > { %v1841_v38 = vsel %vm1811_vm5, %v1808_v3, %v8434_v5 }
 0x287   : > { %v1668_v20 = vpop.permute.xlu1 %1667  ;;  %v1670_v52 = vpop.permute.xlu0 %1669  ;;  %v1874_v4 = vsel %vm1844_vm6, %v1841_v38, %v8436_v61 }
 0x288   : > { %v1969_v44 = vsel %vm1943_vm9, %v1936_v26, %v1668_v20  ;;  %v1970_v14 = vsel %vm1943_vm9, %v1937_v31, %v1670_v52  ;;  %v8437_v26 = vld [vmem:[#allocation45_spill] sm:$0xff]  ;;  %v1907_v59 = vsel %vm1877_vm7, %v1874_v4, %v8438_v49  ;;  %v4941_v52 = vld [vmem:[#allocation2 + $0x170] sm:$0xff] }
 0x289   : > { %4811 = vmatmul.mubr.msk.f32.gmra.mrb[24].mxu0 %vm1981_vm10, %v1969_v44  ;;  %v1842_v20 = vsel %vm1811_vm5, %v1809_v60, %v8437_v26  ;;  %v1744_v48 = vsel %vm279_vm0, %v4941_v52, %v8441_v29 }
 0x28a   : > { %4813 = vmatprep.mubr.msk.f32.mxu0 %vm1981_vm10, %v1970_v14  ;;  %v1875_v44 = vsel %vm1844_vm6, %v1842_v20, %v8439_v55  ;;  %v1777_v54 = vsel %vm1745_vm3, %v1744_v48, %v8442_v57 }
 0x28b   : > { %v1544_v35 = vpop.permute.xlu1 %1543  ;;  %v1546_v6 = vpop.permute.xlu0 %1545  ;;  %v1908_v12 = vsel %vm1877_vm7, %v1875_v44, %v8440_v42 }
 0x28c   : > { %v1938_v30 = vsel %vm1910_vm8, %v1905_v56, %v1544_v35  ;;  %v1939_v8 = vsel %vm1910_vm8, %v1906_v28, %v1546_v6  ;;  %v1810_v35 = vsel %vm1778_vm4, %v1777_v54, %v8443_v58  ;;  %v6677_v56 = vld [vmem:[%s8054_s4] ss:$0 sm:$0xff] }
 0x28d   : > { %v1843_v63 = vsel %vm1811_vm5, %v1810_v35, %v8444_v50 }
 0x28e   : > { %v1876_v24 = vsel %vm1844_vm6, %v1843_v63, %v8445_v13 }
 0x28f   : > { %v1672_v11 = vpop.permute.xlu1 %1671  ;;  %v1674_v34 = vpop.permute.xlu0 %1673  ;;  %v1909_v46 = vsel %vm1877_vm7, %v1876_v24, %v8446_v10 }
 0x290   : > { %v1971_v21 = vsel %vm1943_vm9, %v1938_v30, %v1672_v11  ;;  %v1972_v43 = vsel %vm1943_vm9, %v1939_v8, %v1674_v34 }
 0x291   : > { %4814 = vmatmul.mubr.msk.f32.gmra.mrb[26].mxu0 %vm1981_vm10, %v1971_v21 }
 0x292   : > { %4816 = vmatprep.mubr.msk.f32.mxu0 %vm1981_vm10, %v1972_v43 }
 0x293   : > { %v1548_v36 = vpop.permute.xlu1 %1547  ;;  %v1550_v27 = vpop.permute.xlu0 %1549 }
 0x294   : > { %v1940_v2 = vsel %vm1910_vm8, %v1907_v59, %v1548_v36  ;;  %v1941_v14 = vsel %vm1910_vm8, %v1908_v12, %v1550_v27 }
 0x297   : > { %v1676_v23 = vpop.permute.xlu1 %1675  ;;  %v1678_v0 = vpop.permute.xlu0 %1677 }
 0x298   : > { %v1973_v31 = vsel %vm1943_vm9, %v1940_v2, %v1676_v23  ;;  %v1974_v22 = vsel %vm1943_vm9, %v1941_v14, %v1678_v0 }
 0x299   : > { %4817 = vmatmul.mubr.msk.f32.gmra.mrb[28].mxu0 %vm1981_vm10, %v1973_v31 }
 0x29a   : > { %4819 = vmatprep.mubr.msk.f32.mxu0 %vm1981_vm10, %v1974_v22 }
 0x29b   : > { %v1552_v39 = vpop.permute.xlu1 %1551 }
 0x29c   : > { %v1942_v53 = vsel %vm1910_vm8, %v1909_v46, %v1552_v39 }
 0x29f   : > { %v1680_v6 = vpop.permute.xlu1 %1679 }
 0x2a0   : > { %v1975_v32 = vsel %vm1943_vm9, %v1942_v53, %v1680_v6 }
 0x2a1   : > { %4820 = vmatmul.mubr.msk.f32.gmra.mrb[30].mxu0 %vm1981_vm10, %v1975_v32 }
 0x2fd   : > { %v4776_v16 = vpop.f32.mrb[0].mxu0 }
 0x2fe   : > { %v2315_v40 = vmul.f32 %v4776_v16, %v6672_v18  ;;  %v2148_v15 = vpop.f32.mrb[1].mxu0 }
 0x2ff   : > { %v2314_v30 = vmul.f32 %v6672_v18, %v2148_v15 }
 0x300   : > { %v2354_v11 = vadd.f32 %v6677_v56, %v2315_v40 }
 0x301   : > { %v2353_v62 = vadd.f32 %v6677_v56, %v2314_v30 }
 0x302   : > { %v2386_v28 = vmax.f32 %v2354_v11, 0.0 }
 0x303   : > { %v2385_v21 = vmax.f32 %v2353_v62, 0.0 }
 0x304   : > { %2418 = vst.msk [vmem:[#allocation2 + $0x21] sm:$0xff] %vm279_vm0, %v2386_v28  ;;  %v4779_v7 = vpop.f32.mrb[2].mxu0 }
 0x305   : > { %2417 = vst.msk [vmem:[#allocation2 + $0x19] sm:$0xff] %vm279_vm0, %v2385_v21  ;;  %v2317_v9 = vmul.f32 %v4779_v7, %v6672_v18  ;;  %v2158_v25 = vpop.f32.mrb[3].mxu0 }
 0x306   : > { %v2316_v8 = vmul.f32 %v6672_v18, %v2158_v25 }
 0x307   : > { %v2356_v34 = vadd.f32 %v6677_v56, %v2317_v9 }
 0x308   : > { %v2355_v47 = vadd.f32 %v6677_v56, %v2316_v8 }
 0x309   : > { %v2388_v1 = vmax.f32 %v2356_v34, 0.0 }
 0x30a   : > { %v2387_v43 = vmax.f32 %v2355_v47, 0.0 }
 0x30b   : > { %2420 = vst.msk [vmem:[#allocation2 + $0x39] sm:$0xff] %vm279_vm0, %v2388_v1  ;;  %v6690_v33 = vld [vmem:[#allocation2 + $0x21] sm:$0xff] }
 0x30c   : > { %2419 = vst.msk [vmem:[#allocation2 + $0x31] sm:$0xff] %vm279_vm0, %v2387_v43  ;;  %2775 = vrot.lane.b32.xlu1 %v6690_v33, %s4956_s8  ;;  %v4782_v41 = vpop.f32.mrb[4].mxu0  ;;  %v6695_v19 = vld [vmem:[#allocation2 + $0x19] sm:$0xff] }
 0x30d   : > { %v2319_v51 = vmul.f32 %v4782_v41, %v6672_v18  ;;  %2773 = vrot.lane.b32.xlu0 %v6695_v19, %s4956_s8  ;;  %v2168_v3 = vpop.f32.mrb[5].mxu0 }
 0x30e   : > { %v2318_v36 = vmul.f32 %v6672_v18, %v2168_v3 }
 0x30f   : > { %v2358_v45 = vadd.f32 %v6677_v56, %v2319_v51 }
 0x310   : > { %v2357_v17 = vadd.f32 %v6677_v56, %v2318_v36 }
 0x311   : > { %v2390_v5 = vmax.f32 %v2358_v45, 0.0 }
 0x312   : > { %v2389_v38 = vmax.f32 %v2357_v17, 0.0  ;;  %v6703_v37 = vld [vmem:[#allocation2 + $0x39] sm:$0xff] }
 0x313   : > { %2422 = vst.msk [vmem:[#allocation2 + $0x51] sm:$0xff] %vm279_vm0, %v2390_v5  ;;  %2779 = vrot.lane.b32.xlu1 %v6703_v37, %s4956_s8  ;;  %v6708_v60 = vld [vmem:[#allocation2 + $0x31] sm:$0xff] }
 0x314   : > { %2421 = vst.msk [vmem:[#allocation2 + $0x49] sm:$0xff] %vm279_vm0, %v2389_v38  ;;  %2777 = vrot.lane.b32.xlu0 %v6708_v60, %s4956_s8  ;;  %v4785_v61 = vpop.f32.mrb[6].mxu0 }
 0x315   : > { %v2321_v4 = vmul.f32 %v4785_v61, %v6672_v18  ;;  %v2178_v27 = vpop.f32.mrb[7].mxu0 }
 0x316   : > { %v2320_v26 = vmul.f32 %v6672_v18, %v2178_v27 }
 0x317   : > { %v2360_v20 = vadd.f32 %v6677_v56, %v2321_v4 }
 0x318   : > { %v2359_v49 = vadd.f32 %v6677_v56, %v2320_v26 }
 0x319   : > { %v2392_v59 = vmax.f32 %v2360_v20, 0.0 }
 0x31a   : > { %v2391_v55 = vmax.f32 %v2359_v49, 0.0  ;;  %v6717_v44 = vld [vmem:[#allocation2 + $0x51] sm:$0xff] }
 0x31b   : > { %2424 = vst.msk [vmem:[#allocation2 + $0x69] sm:$0xff] %vm279_vm0, %v2392_v59  ;;  %2783 = vrot.lane.b32.xlu1 %v6717_v44, %s4956_s8  ;;  %v6722_v2 = vld [vmem:[#allocation2 + $0x49] sm:$0xff] }
 0x31c   : > { %2423 = vst.msk [vmem:[#allocation2 + $0x61] sm:$0xff] %vm279_vm0, %v2391_v55  ;;  %2781 = vrot.lane.b32.xlu0 %v6722_v2, %s4956_s8  ;;  %v4788_v23 = vpop.f32.mrb[8].mxu0 }
 0x31d   : > { %v2323_v42 = vmul.f32 %v4788_v23, %v6672_v18  ;;  %v2188_v12 = vpop.f32.mrb[9].mxu0 }
 0x31e   : > { %v2322_v31 = vmul.f32 %v6672_v18, %v2188_v12 }
 0x31f   : > { %v2362_v52 = vadd.f32 %v6677_v56, %v2323_v42 }
 0x320   : > { %v2361_v29 = vadd.f32 %v6677_v56, %v2322_v31 }
 0x321   : > { %v2394_v48 = vmax.f32 %v2362_v52, 0.0 }
 0x322   : > { %v2393_v14 = vmax.f32 %v2361_v29, 0.0  ;;  %v6731_v0 = vld [vmem:[#allocation2 + $0x69] sm:$0xff] }
 0x323   : > { %2426 = vst.msk [vmem:[#allocation2 + $0x81] sm:$0xff] %vm279_vm0, %v2394_v48  ;;  %2787 = vrot.lane.b32.xlu1 %v6731_v0, %s4956_s8  ;;  %v6736_v57 = vld [vmem:[#allocation2 + $0x61] sm:$0xff] }
 0x324   : > { %2425 = vst.msk [vmem:[#allocation2 + $0x79] sm:$0xff] %vm279_vm0, %v2393_v14  ;;  %2785 = vrot.lane.b32.xlu0 %v6736_v57, %s4956_s8  ;;  %v4791_v54 = vpop.f32.mrb[10].mxu0 }
 0x325   : > { %v2325_v22 = vmul.f32 %v4791_v54, %v6672_v18  ;;  %v2198_v58 = vpop.f32.mrb[11].mxu0 }
 0x326   : > { %v2324_v35 = vmul.f32 %v6672_v18, %v2198_v58 }
 0x327   : > { %v2364_v39 = vadd.f32 %v6677_v56, %v2325_v22 }
 0x328   : > { %v2363_v50 = vadd.f32 %v6677_v56, %v2324_v35 }
 0x329   : > { %v2396_v63 = vmax.f32 %v2364_v39, 0.0 }
 0x32a   : > { %v2395_v13 = vmax.f32 %v2363_v50, 0.0  ;;  %v6745_v24 = vld [vmem:[#allocation2 + $0x81] sm:$0xff] }
 0x32b   : > { %2428 = vst.msk [vmem:[#allocation2 + $0x99] sm:$0xff] %vm279_vm0, %v2396_v63  ;;  %2791 = vrot.lane.b32.xlu1 %v6745_v24, %s4956_s8  ;;  %v6750_v10 = vld [vmem:[#allocation2 + $0x79] sm:$0xff] }
 0x32c   : > { %2427 = vst.msk [vmem:[#allocation2 + $0x91] sm:$0xff] %vm279_vm0, %v2395_v13  ;;  %2789 = vrot.lane.b32.xlu0 %v6750_v10, %s4956_s8  ;;  %v4794_v46 = vpop.f32.mrb[12].mxu0 }
 0x32d   : > { %v2327_v53 = vmul.f32 %v4794_v46, %v6672_v18  ;;  %v2208_v6 = vpop.f32.mrb[13].mxu0 }
 0x32e   : > { %v2326_v32 = vmul.f32 %v6672_v18, %v2208_v6 }
 0x32f   : > { %v2366_v16 = vadd.f32 %v6677_v56, %v2327_v53 }
 0x330   : > { %v2365_v40 = vadd.f32 %v6677_v56, %v2326_v32 }
 0x331   : > { %v2398_v15 = vmax.f32 %v2366_v16, 0.0 }
 0x332   : > { %v2397_v30 = vmax.f32 %v2365_v40, 0.0  ;;  %v2494_v11 = vld [vmem:[#allocation2 + $0x99] sm:$0xff] }
 0x333   : > { %2430 = vst.msk [vmem:[#allocation2 + $0xb1] sm:$0xff] %vm279_vm0, %v2398_v15  ;;  %2795 = vrot.lane.b32.xlu1 %v2494_v11, %s4956_s8  ;;  %v6761_v62 = vld [vmem:[#allocation2 + $0x91] sm:$0xff] }
 0x334   : > { %2429 = vst.msk [vmem:[#allocation2 + $0xa9] sm:$0xff] %vm279_vm0, %v2397_v30  ;;  %2793 = vrot.lane.b32.xlu0 %v6761_v62, %s4956_s8  ;;  %v4797_v28 = vpop.f32.mrb[14].mxu0 }
 0x335   : > { %v2329_v21 = vmul.f32 %v4797_v28, %v6672_v18  ;;  %v2218_v7 = vpop.f32.mrb[15].mxu0 }
 0x336   : > { %v2328_v9 = vmul.f32 %v6672_v18, %v2218_v7 }
 0x337   : > { %v2368_v25 = vadd.f32 %v6677_v56, %v2329_v21 }
 0x338   : > { %v2367_v8 = vadd.f32 %v6677_v56, %v2328_v9 }
 0x339   : > { %v2400_v34 = vmax.f32 %v2368_v25, 0.0 }
 0x33a   : > { %v2399_v47 = vmax.f32 %v2367_v8, 0.0  ;;  %v2496_v1 = vld [vmem:[#allocation2 + $0xb1] sm:$0xff] }
 0x33b   : > { %2432 = vst.msk [vmem:[#allocation2 + $0xc9] sm:$0xff] %vm279_vm0, %v2400_v34  ;;  %2799 = vrot.lane.b32.xlu1 %v2496_v1, %s4956_s8  ;;  %v2495_v43 = vld [vmem:[#allocation2 + $0xa9] sm:$0xff] }
 0x33c   : > { %2431 = vst.msk [vmem:[#allocation2 + $0xc1] sm:$0xff] %vm279_vm0, %v2399_v47  ;;  %2797 = vrot.lane.b32.xlu0 %v2495_v43, %s4956_s8  ;;  %v4800_v41 = vpop.f32.mrb[16].mxu0 }
 0x33d   : > { %v2331_v51 = vmul.f32 %v4800_v41, %v6672_v18  ;;  %v2228_v3 = vpop.f32.mrb[17].mxu0 }
 0x33e   : > { %v2330_v36 = vmul.f32 %v6672_v18, %v2228_v3 }
 0x33f   : > { %v2370_v45 = vadd.f32 %v6677_v56, %v2331_v51 }
 0x340   : > { %v2369_v17 = vadd.f32 %v6677_v56, %v2330_v36 }
 0x341   : > { %v2402_v5 = vmax.f32 %v2370_v45, 0.0 }
 0x342   : > { %v2401_v38 = vmax.f32 %v2369_v17, 0.0  ;;  %v2498_v61 = vld [vmem:[#allocation2 + $0xc9] sm:$0xff] }
 0x343   : > { %2434 = vst.msk [vmem:[#allocation2 + $0xe1] sm:$0xff] %vm279_vm0, %v2402_v5  ;;  %2803 = vrot.lane.b32.xlu1 %v2498_v61, %s4956_s8  ;;  %v2497_v4 = vld [vmem:[#allocation2 + $0xc1] sm:$0xff] }
 0x344   : > { %2433 = vst.msk [vmem:[#allocation2 + $0xd9] sm:$0xff] %vm279_vm0, %v2401_v38  ;;  %2801 = vrot.lane.b32.xlu0 %v2497_v4, %s4956_s8  ;;  %v4803_v27 = vpop.f32.mrb[18].mxu0 }
 0x345   : > { %v2333_v26 = vmul.f32 %v4803_v27, %v6672_v18  ;;  %v2238_v20 = vpop.f32.mrb[19].mxu0 }
 0x346   : > { %v2332_v49 = vmul.f32 %v6672_v18, %v2238_v20 }
 0x347   : > { %v2372_v59 = vadd.f32 %v6677_v56, %v2333_v26 }
 0x348   : > { %v2371_v55 = vadd.f32 %v6677_v56, %v2332_v49 }
 0x349   : > { %v2404_v23 = vmax.f32 %v2372_v59, 0.0 }
 0x34a   : > { %v2403_v42 = vmax.f32 %v2371_v55, 0.0  ;;  %v2500_v12 = vld [vmem:[#allocation2 + $0xe1] sm:$0xff] }
 0x34b   : > { %2436 = vst.msk [vmem:[#allocation2 + $0xf9] sm:$0xff] %vm279_vm0, %v2404_v23  ;;  %2807 = vrot.lane.b32.xlu1 %v2500_v12, %s4956_s8  ;;  %v2499_v31 = vld [vmem:[#allocation2 + $0xd9] sm:$0xff] }
 0x34c   : > { %2435 = vst.msk [vmem:[#allocation2 + $0xf1] sm:$0xff] %vm279_vm0, %v2403_v42  ;;  %2805 = vrot.lane.b32.xlu0 %v2499_v31, %s4956_s8  ;;  %v4806_v52 = vpop.f32.mrb[20].mxu0 }
 0x34d   : > { %v2335_v29 = vmul.f32 %v4806_v52, %v6672_v18  ;;  %v2248_v48 = vpop.f32.mrb[21].mxu0 }
 0x34e   : > { %v2334_v14 = vmul.f32 %v6672_v18, %v2248_v48 }
 0x34f   : > { %v2374_v54 = vadd.f32 %v6677_v56, %v2335_v29 }
 0x350   : > { %v2373_v22 = vadd.f32 %v6677_v56, %v2334_v14 }
 0x351   : > { %v2406_v58 = vmax.f32 %v2374_v54, 0.0 }
 0x352   : > { %v2405_v35 = vmax.f32 %v2373_v22, 0.0  ;;  %v2502_v39 = vld [vmem:[#allocation2 + $0xf9] sm:$0xff] }
 0x353   : > { %2438 = vst.msk [vmem:[#allocation2 + $0x111] sm:$0xff] %vm279_vm0, %v2406_v58  ;;  %2811 = vrot.lane.b32.xlu1 %v2502_v39, %s4956_s8  ;;  %v2501_v50 = vld [vmem:[#allocation2 + $0xf1] sm:$0xff] }
 0x354   : > { %2437 = vst.msk [vmem:[#allocation2 + $0x109] sm:$0xff] %vm279_vm0, %v2405_v35  ;;  %2809 = vrot.lane.b32.xlu0 %v2501_v50, %s4956_s8  ;;  %v4809_v63 = vpop.f32.mrb[22].mxu0  ;;  %v2514_v50 = vld [vmem:[#allocation2 + $0xa] sm:$0xff] }
 0x355   : > { %v2337_v13 = vmul.f32 %v4809_v63, %v6672_v18  ;;  %v2258_v46 = vpop.f32.mrb[23].mxu0  ;;  %v2513_v63 = vld [vmem:[#allocation2 + $0x2] sm:$0xff] }
 0x356   : > { %v2336_v53 = vmul.f32 %v6672_v18, %v2258_v46  ;;  %v6852_v46 = vld [vmem:[#allocation2 + $0x32] sm:$0xff] }
 0x357   : > { %v2376_v6 = vadd.f32 %v6677_v56, %v2337_v13  ;;  %v6848_v13 = vld [vmem:[#allocation2 + $0x3a] sm:$0xff] }
 0x358   : > { %v2375_v32 = vadd.f32 %v6677_v56, %v2336_v53  ;;  %v6856_v53 = vld [vmem:[#allocation2 + $0x52] sm:$0xff] }
 0x359   : > { %v2408_v16 = vmax.f32 %v2376_v6, 0.0  ;;  %v6860_v6 = vld [vmem:[#allocation2 + $0x4a] sm:$0xff] }
 0x35a   : > { %v2407_v40 = vmax.f32 %v2375_v32, 0.0  ;;  %v2504_v15 = vld [vmem:[#allocation2 + $0x111] sm:$0xff] }
 0x35b   : > { %2440 = vst.msk [vmem:[#allocation2 + $0x129] sm:$0xff] %vm279_vm0, %v2408_v16  ;;  %2815 = vrot.lane.b32.xlu1 %v2504_v15, %s4956_s8  ;;  %v2503_v30 = vld [vmem:[#allocation2 + $0x109] sm:$0xff]  ;;  %v6876_v15 = vld [vmem:[#allocation2 + $0x7a] sm:$0xff] }
 0x35c   : > { %2439 = vst.msk [vmem:[#allocation2 + $0x121] sm:$0xff] %vm279_vm0, %v2407_v40  ;;  %2813 = vrot.lane.b32.xlu0 %v2503_v30, %s4956_s8  ;;  %v4812_v11 = vpop.f32.mrb[24].mxu0  ;;  %v6864_v32 = vld [vmem:[#allocation2 + $0x6a] sm:$0xff]  ;;  %v6868_v16 = vld [vmem:[#allocation2 + $0x62] sm:$0xff]  ;;  %v6880_v30 = vld [vmem:[#allocation2 + $0x9a] sm:$0xff] }
 0x35d   : > { %v2339_v28 = vmul.f32 %v4812_v11, %v6672_v18  ;;  %v2268_v21 = vpop.f32.mrb[25].mxu0  ;;  %v6872_v40 = vld [vmem:[#allocation2 + $0x82] sm:$0xff]  ;;  %v6884_v11 = vld [vmem:[#allocation2 + $0x92] sm:$0xff] }
 0x35e   : > { %v2338_v7 = vmul.f32 %v6672_v18, %v2268_v21  ;;  %v6892_v21 = vld [vmem:[#allocation2 + $0xaa] sm:$0xff] }
 0x35f   : > { %v2378_v9 = vadd.f32 %v6677_v56, %v2339_v28  ;;  %v6888_v28 = vld [vmem:[#allocation2 + $0xb2] sm:$0xff] }
 0x360   : > { %v2377_v25 = vadd.f32 %v6677_v56, %v2338_v7  ;;  %v6896_v7 = vld [vmem:[#allocation2 + $0xca] sm:$0xff] }
 0x361   : > { %v2410_v8 = vmax.f32 %v2378_v9, 0.0  ;;  %v6900_v9 = vld [vmem:[#allocation2 + $0xc2] sm:$0xff] }
 0x362   : > { %v2409_v34 = vmax.f32 %v2377_v25, 0.0  ;;  %v2506_v47 = vld [vmem:[#allocation2 + $0x129] sm:$0xff] }
 0x363   : > { %2442 = vst.msk [vmem:[#allocation2 + $0x141] sm:$0xff] %vm279_vm0, %v2410_v8  ;;  %2819 = vrot.lane.b32.xlu1 %v2506_v47, %s4956_s8  ;;  %v2505_v1 = vld [vmem:[#allocation2 + $0x121] sm:$0xff]  ;;  %v6916_v47 = vld [vmem:[#allocation2 + $0xf2] sm:$0xff] }
 0x364   : > { %2441 = vst.msk [vmem:[#allocation2 + $0x139] sm:$0xff] %vm279_vm0, %v2409_v34  ;;  %2817 = vrot.lane.b32.xlu0 %v2505_v1, %s4956_s8  ;;  %v4815_v43 = vpop.f32.mrb[26].mxu0  ;;  %v6904_v25 = vld [vmem:[#allocation2 + $0xe2] sm:$0xff]  ;;  %v6908_v8 = vld [vmem:[#allocation2 + $0xda] sm:$0xff]  ;;  %v2536_v1 = vld [vmem:[#allocation2 + $0x112] sm:$0xff] }
 0x365   : > { %v2341_v41 = vmul.f32 %v4815_v43, %v6672_v18  ;;  %v2278_v51 = vpop.f32.mrb[27].mxu0  ;;  %v6912_v34 = vld [vmem:[#allocation2 + $0xfa] sm:$0xff]  ;;  %v2535_v43 = vld [vmem:[#allocation2 + $0x10a] sm:$0xff] }
 0x366   : > { %v2340_v3 = vmul.f32 %v6672_v18, %v2278_v51  ;;  %v6922_v51 = vpop.permute.xlu1 %2771 }
 0x367   : > { %v2380_v36 = vadd.f32 %v6677_v56, %v2341_v41  ;;  %v2538_v41 = vld [vmem:[#allocation2 + $0x12a] sm:$0xff] }
 0x368   : > { %v2379_v45 = vadd.f32 %v6677_v56, %v2340_v3  ;;  %v2537_v3 = vld [vmem:[#allocation2 + $0x122] sm:$0xff] }
 0x369   : > { %v2412_v17 = vmax.f32 %v2380_v36, 0.0  ;;  %v6925_v36 = vpop.permute.xlu0 %2769 }
 0x36a   : > { %v2411_v5 = vmax.f32 %v2379_v45, 0.0  ;;  %v2508_v38 = vld [vmem:[#allocation2 + $0x141] sm:$0xff] }
 0x36b   : > { %2444 = vst.msk [vmem:[#allocation2 + $0x159] sm:$0xff] %vm279_vm0, %v2412_v17  ;;  %2823 = vrot.lane.b32.xlu1 %v2508_v38, %s4956_s8  ;;  %v2507_v61 = vld [vmem:[#allocation2 + $0x139] sm:$0xff]  ;;  %v2540_v45 = vld [vmem:[#allocation2 + $0x142] sm:$0xff] }
 0x36c   : > { %2443 = vst.msk [vmem:[#allocation2 + $0x151] sm:$0xff] %vm279_vm0, %v2411_v5  ;;  %2821 = vrot.lane.b32.xlu0 %v2507_v61, %s4956_s8  ;;  %v4818_v4 = vpop.f32.mrb[28].mxu0  ;;  %v2539_v17 = vld [vmem:[#allocation2 + $0x13a] sm:$0xff] }
 0x36d   : > { %v2343_v27 = vmul.f32 %v4818_v4, %v6672_v18  ;;  %v2288_v26 = vpop.f32.mrb[29].mxu0 }
 0x36e   : > { %v2342_v20 = vmul.f32 %v6672_v18, %v2288_v26 }
 0x36f   : > { %v2382_v49 = vadd.f32 %v6677_v56, %v2343_v27 }
 0x370   : > { %v2381_v59 = vadd.f32 %v6677_v56, %v2342_v20 }
 0x371   : > { %v2414_v55 = vmax.f32 %v2382_v49, 0.0 }
 0x372   : > { %v2413_v23 = vmax.f32 %v2381_v59, 0.0  ;;  %v2510_v42 = vld [vmem:[#allocation2 + $0x159] sm:$0xff] }
 0x373   : > { %2446 = vst.msk [vmem:[#allocation2 + $0x171] sm:$0xff] %vm279_vm0, %v2414_v55  ;;  %2827 = vrot.lane.b32.xlu1 %v2510_v42, %s4956_s8  ;;  %v2509_v12 = vld [vmem:[#allocation2 + $0x151] sm:$0xff]  ;;  %v2542_v61 = vld [vmem:[#allocation2 + $0x15a] sm:$0xff] }
 0x374   : > { %2445 = vst.msk [vmem:[#allocation2 + $0x169] sm:$0xff] %vm279_vm0, %v2413_v23  ;;  %2825 = vrot.lane.b32.xlu0 %v2509_v12, %s4956_s8  ;;  %v4821_v31 = vpop.f32.mrb[30].mxu0  ;;  %v2541_v4 = vld [vmem:[#allocation2 + $0x152] sm:$0xff]  ;;  %v6944_v55 = vld [vmem:[#allocation2 + $0x20] sm:$0xff] }
 0x375   : > { %v2345_v52 = vmul.f32 %v4821_v31, %v6672_v18  ;;  %v2298_v29 = vpop.f32.mrb[31].mxu0  ;;  %v6948_v42 = vld [vmem:[#allocation2 + $0x18] sm:$0xff] }
 0x376   : > { %v2344_v48 = vmul.f32 %v6672_v18, %v2298_v29  ;;  %v6840_v18 = vld [vmem:[#allocation2 + $0x22] sm:$0xff]  ;;  %v6956_v31 = vld [vmem:[#allocation2 + $0x38] sm:$0xff]  ;;  %v6960_v29 = vld [vmem:[#allocation2 + $0x30] sm:$0xff] }
 0x377   : > { %v2384_v14 = vadd.f32 %v6677_v56, %v2345_v52 }
 0x378   : > { %v2383_v54 = vadd.f32 %v6677_v56, %v2344_v48  ;;  %v6844_v56 = vld [vmem:[#allocation2 + $0x1a] sm:$0xff] }
 0x379   : > { %v2416_v22 = vmax.f32 %v2384_v14, 0.0  ;;  %v6968_v14 = vld [vmem:[#allocation2 + $0x50] sm:$0xff] }
 0x37a   : > { %v2415_v58 = vmax.f32 %v2383_v54, 0.0  ;;  %v2512_v35 = vld [vmem:[#allocation2 + $0x171] sm:$0xff] }
 0x37b   : > { %2448 = vst.msk [vmem:[#allocation2 + $0x189] sm:$0xff] %vm279_vm0, %v2416_v22  ;;  %2831 = vrot.lane.b32.xlu1 %v2512_v35, %s4956_s8  ;;  %v2511_v39 = vld [vmem:[#allocation2 + $0x169] sm:$0xff]  ;;  %v2544_v20 = vld [vmem:[#allocation2 + $0x172] sm:$0xff] }
 0x37c   : > { %2447 = vst.msk [vmem:[#allocation2 + $0x181] sm:$0xff] %vm279_vm0, %v2415_v58  ;;  %2829 = vrot.lane.b32.xlu0 %v2511_v39, %s4956_s8  ;;  %v2543_v49 = vld [vmem:[#allocation2 + $0x16a] sm:$0xff] }
 0x37d   : > { %v6972_v22 = vld [vmem:[#allocation2 + $0x48] sm:$0xff] }
 0x37e   : > { %v6930_v5 = vpop.permute.xlu1 %2775  ;;  %v6980_v35 = vld [vmem:[#allocation2 + $0x68] sm:$0xff] }
 0x37f   : > { %2899 = vrot.lane.b32.xlu1 %v2514_v50, %s4957_s9  ;;  %v6932_v38 = vpop.permute.xlu0 %2773  ;;  %v6984_v50 = vld [vmem:[#allocation2 + $0x60] sm:$0xff] }
 0x380   : > { %2897 = vrot.lane.b32.xlu0 %v2513_v63, %s4957_s9 }
 0x383   : > { %2903 = vrot.lane.b32.xlu1 %v6840_v18, %s4957_s9 }
 0x384   : > { %2901 = vrot.lane.b32.xlu0 %v6844_v56, %s4957_s9 }
 0x385   : > { %v6936_v27 = vpop.permute.xlu1 %2779 }
 0x386   : > { %v6938_v26 = vpop.permute.xlu0 %2777 }
 0x387   : > { %2907 = vrot.lane.b32.xlu1 %v6848_v13, %s4957_s9 }
 0x388   : > { %2905 = vrot.lane.b32.xlu0 %v6852_v46, %s4957_s9 }
 0x38b   : > { %2911 = vrot.lane.b32.xlu1 %v6856_v53, %s4957_s9 }
 0x38c   : > { %2909 = vrot.lane.b32.xlu0 %v6860_v6, %s4957_s9 }
 0x38d   : > { %v6942_v59 = vpop.permute.xlu1 %2783 }
 0x38e   : > { %8447 = vst [vmem:[#allocation4_spill] sm:$0xff] %v6942_v59  ;;  %v6946_v23 = vpop.permute.xlu0 %2781 }
 0x38f   : > { %2915 = vrot.lane.b32.xlu1 %v6864_v32, %s4957_s9 }
 0x390   : > { %2913 = vrot.lane.b32.xlu0 %v6868_v16, %s4957_s9 }
 0x393   : > { %2919 = vrot.lane.b32.xlu1 %v6872_v40, %s4957_s9 }
 0x394   : > { %2917 = vrot.lane.b32.xlu0 %v6876_v15, %s4957_s9 }
 0x395   : > { %v6954_v12 = vpop.permute.xlu1 %2787 }
 0x396   : > { %8448 = vst [vmem:[#allocation3_spill] sm:$0xff] %v6954_v12  ;;  %v6958_v52 = vpop.permute.xlu0 %2785  ;;  %v7056_v12 = vld [vmem:[#allocation2 + $0xf0] sm:$0xff] }
 0x397   : > { %2923 = vrot.lane.b32.xlu1 %v6880_v30, %s4957_s9  ;;  %8449 = vst [vmem:[#allocation67_spill] sm:$0xff] %v6958_v52 }
 0x398   : > { %2921 = vrot.lane.b32.xlu0 %v6884_v11, %s4957_s9 }
 0x39b   : > { %2927 = vrot.lane.b32.xlu1 %v6888_v28, %s4957_s9 }
 0x39c   : > { %2925 = vrot.lane.b32.xlu0 %v6892_v21, %s4957_s9 }
 0x39d   : > { %v6966_v48 = vpop.permute.xlu1 %2791 }
 0x39e   : > { %8450 = vst [vmem:[#allocation6_spill] sm:$0xff] %v6966_v48  ;;  %v6970_v54 = vpop.permute.xlu0 %2789  ;;  %v7044_v48 = vld [vmem:[#allocation2 + $0xd8] sm:$0xff] }
 0x39f   : > { %2931 = vrot.lane.b32.xlu1 %v6896_v7, %s4957_s9  ;;  %8451 = vst [vmem:[#allocation12_spill] sm:$0xff] %v6970_v54 }
 0x3a0   : > { %2929 = vrot.lane.b32.xlu0 %v6900_v9, %s4957_s9 }
 0x3a3   : > { %2935 = vrot.lane.b32.xlu1 %v6904_v25, %s4957_s9 }
 0x3a4   : > { %2933 = vrot.lane.b32.xlu0 %v6908_v8, %s4957_s9 }
 0x3a5   : > { %v6978_v58 = vpop.permute.xlu1 %2795 }
 0x3a6   : > { %8452 = vst [vmem:[#allocation62_spill] sm:$0xff] %v6978_v58  ;;  %v6982_v39 = vpop.permute.xlu0 %2793  ;;  %v7032_v58 = vld [vmem:[#allocation2 + $0xc0] sm:$0xff] }
 0x3a7   : > { %2939 = vrot.lane.b32.xlu1 %v6912_v34, %s4957_s9  ;;  %8453 = vst [vmem:[#allocation66_spill] sm:$0xff] %v6982_v39 }
 0x3a8   : > { %2937 = vrot.lane.b32.xlu0 %v6916_v47, %s4957_s9 }
 0x3ab   : > { %2943 = vrot.lane.b32.xlu1 %v2536_v1, %s4957_s9  ;;  %v6992_v1 = vld [vmem:[#allocation2 + $0x80] sm:$0xff] }
 0x3ac   : > { %2941 = vrot.lane.b32.xlu0 %v2535_v43, %s4957_s9  ;;  %8455 = vst [vmem:[#allocation70_spill] sm:$0xff] %v6992_v1 }
 0x3ad   : > { %v6990_v63 = vpop.permute.xlu1 %2799 }
 0x3ae   : > { %8454 = vst [vmem:[#allocation10_spill] sm:$0xff] %v6990_v63  ;;  %v6994_v43 = vpop.permute.xlu0 %2797  ;;  %v7020_v63 = vld [vmem:[#allocation2 + $0xa8] sm:$0xff] }
 0x3af   : > { %2947 = vrot.lane.b32.xlu1 %v2538_v41, %s4957_s9  ;;  %8456 = vst [vmem:[#allocation8_spill] sm:$0xff] %v6994_v43  ;;  %v6996_v41 = vld [vmem:[#allocation2 + $0x78] sm:$0xff]  ;;  %8464 = vst [vmem:[#allocation73_spill] sm:$0xff] %v7020_v63 }
 0x3b0   : > { %2945 = vrot.lane.b32.xlu0 %v2537_v3, %s4957_s9 }
 0x3b3   : > { %2951 = vrot.lane.b32.xlu1 %v2540_v45, %s4957_s9  ;;  %v7004_v45 = vld [vmem:[#allocation2 + $0x98] sm:$0xff] }
 0x3b4   : > { %2949 = vrot.lane.b32.xlu0 %v2539_v17, %s4957_s9  ;;  %8458 = vst [vmem:[#allocation14_spill] sm:$0xff] %v7004_v45 }
 0x3b5   : > { %v7002_v3 = vpop.permute.xlu1 %2803 }
 0x3b6   : > { %8457 = vst [vmem:[#allocation69_spill] sm:$0xff] %v7002_v3  ;;  %v7006_v17 = vpop.permute.xlu0 %2801 }
 0x3b7   : > { %2955 = vrot.lane.b32.xlu1 %v2542_v61, %s4957_s9  ;;  %8459 = vst [vmem:[#allocation72_spill] sm:$0xff] %v7006_v17  ;;  %v7008_v61 = vld [vmem:[#allocation2 + $0x90] sm:$0xff]  ;;  %v7028_v17 = vld [vmem:[#allocation2 + $0xc8] sm:$0xff] }
 0x3b8   : > { %2953 = vrot.lane.b32.xlu0 %v2541_v4, %s4957_s9  ;;  %8460 = vst [vmem:[#allocation11_spill] sm:$0xff] %v7008_v61 }
 0x3bb   : > { %2959 = vrot.lane.b32.xlu1 %v2544_v20, %s4957_s9  ;;  %v7016_v20 = vld [vmem:[#allocation2 + $0xb0] sm:$0xff] }
 0x3bc   : > { %2957 = vrot.lane.b32.xlu0 %v2543_v49, %s4957_s9  ;;  %8462 = vst [vmem:[#allocation17_spill] sm:$0xff] %v7016_v20 }
 0x3bd   : > { %v7014_v4 = vpop.permute.xlu1 %2807 }
 0x3be   : > { %8461 = vst [vmem:[#allocation71_spill] sm:$0xff] %v7014_v4  ;;  %v7018_v49 = vpop.permute.xlu0 %2805 }
 0x3bf   : > { %3027 = vrot.lane.b32.xlu1 %v6944_v55, %s4958_s10  ;;  %8463 = vst [vmem:[#allocation15_spill] sm:$0xff] %v7018_v49  ;;  %v7040_v49 = vld [vmem:[#allocation2 + $0xe0] sm:$0xff] }
 0x3c0   : > { %3025 = vrot.lane.b32.xlu0 %v6948_v42, %s4958_s10 }
 0x3c3   : > { %3031 = vrot.lane.b32.xlu1 %v6956_v31, %s4958_s10 }
 0x3c4   : > { %3029 = vrot.lane.b32.xlu0 %v6960_v29, %s4958_s10 }
 0x3c5   : > { %v7026_v3 = vpop.permute.xlu1 %2811 }
 0x3c6   : > { %8465 = vst [vmem:[#allocation20_spill] sm:$0xff] %v7026_v3  ;;  %v7030_v43 = vpop.permute.xlu0 %2809 }
 0x3c7   : > { %3035 = vrot.lane.b32.xlu1 %v6968_v14, %s4958_s10  ;;  %8466 = vst [vmem:[#allocation18_spill] sm:$0xff] %v7030_v43  ;;  %v7052_v43 = vld [vmem:[#allocation2 + $0xf8] sm:$0xff] }
 0x3c8   : > { %3033 = vrot.lane.b32.xlu0 %v6972_v22, %s4958_s10 }
 0x3cb   : > { %3039 = vrot.lane.b32.xlu1 %v6980_v35, %s4958_s10 }
 0x3cc   : > { %3037 = vrot.lane.b32.xlu0 %v6984_v50, %s4958_s10 }
 0x3cd   : > { %v7038_v4 = vpop.permute.xlu1 %2815 }
 0x3ce   : > { %8467 = vst [vmem:[#allocation24_spill] sm:$0xff] %v7038_v4  ;;  %v7042_v39 = vpop.permute.xlu0 %2813 }
 0x3cf   : > { %3043 = vrot.lane.b32.xlu1 %v6992_v1, %s4958_s10  ;;  %8468 = vst [vmem:[#allocation75_spill] sm:$0xff] %v7042_v39 }
 0x3d0   : > { %3041 = vrot.lane.b32.xlu0 %v6996_v41, %s4958_s10 }
 0x3d3   : > { %3047 = vrot.lane.b32.xlu1 %v7004_v45, %s4958_s10 }
 0x3d4   : > { %3045 = vrot.lane.b32.xlu0 %v7008_v61, %s4958_s10 }
 0x3d5   : > { %v7050_v3 = vpop.permute.xlu1 %2819 }
 0x3d6   : > { %8469 = vst [vmem:[#allocation22_spill] sm:$0xff] %v7050_v3  ;;  %v7054_v54 = vpop.permute.xlu0 %2817  ;;  %v4017_v3 = vld [vmem:[%s8052_s2] sm:$0xff] }
 0x3d7   : > { %3051 = vrot.lane.b32.xlu1 %v7016_v20, %s4958_s10  ;;  %8470 = vst [vmem:[#allocation96_spill] sm:$0xff] %v7054_v54  ;;  %v4018_v54 = vld [vmem:[%s8052_s2 + $0x8] sm:$0xff] }
 0x3d8   : > { %3049 = vrot.lane.b32.xlu0 %v7020_v63, %s4958_s10  ;;  %v4888_v59 = vpack.c.bf16 %v4018_v54, %v4017_v3 }
 0x3da   : > { %4889 = vmatprep.subr.bf16.mxu1 %v4888_v59 }
 0x3db   : > { %3055 = vrot.lane.b32.xlu1 %v7028_v17, %s4958_s10  ;;  %4891 = vmatpush3.bf16.msra.mxu1 %v4888_v59  ;;  %v4021_v59 = vld [vmem:[%s8052_s2 + $0x20] sm:$0xf] }
 0x3dc   : > { %3053 = vrot.lane.b32.xlu0 %v7032_v58, %s4958_s10 }
 0x3dd   : > { %v7062_v4 = vpop.permute.xlu1 %2823 }
 0x3de   : > { %8471 = vst [vmem:[#allocation74_spill] sm:$0xff] %v7062_v4  ;;  %v7064_v39 = vpop.permute.xlu0 %2821 }
 0x3df   : > { %3059 = vrot.lane.b32.xlu1 %v7040_v49, %s4958_s10  ;;  %8472 = vst [vmem:[#allocation7_spill] sm:$0xff] %v7064_v39 }
 0x3e0   : > { %3057 = vrot.lane.b32.xlu0 %v7044_v48, %s4958_s10 }
 0x3e3   : > { %3063 = vrot.lane.b32.xlu1 %v7052_v43, %s4958_s10 }
 0x3e4   : > { %3061 = vrot.lane.b32.xlu0 %v7056_v12, %s4958_s10 }
 0x3e5   : > { %v7076_v52 = vpop.permute.xlu1 %2827 }
 0x3e6   : > { %8473 = vst [vmem:[#allocation95_spill] sm:$0xff] %v7076_v52  ;;  %v7078_v4 = vpop.permute.xlu0 %2825 }
 0x3e7   : > { %3155 = vrot.lane.b32.xlu1 %v6690_v33, %s4959_s11  ;;  %8474 = vst [vmem:[#allocation53_spill] sm:$0xff] %v7078_v4  ;;  %v4019_v33 = vld [vmem:[%s8052_s2 + $0x10] sm:$0xff] }
 0x3e8   : > { %3153 = vrot.lane.b32.xlu0 %v6695_v19, %s4959_s11  ;;  %v4020_v19 = vld [vmem:[%s8052_s2 + $0x18] sm:$0xff] }
 0x3e9   : > { %v4892_v54 = vpack.c.bf16 %v4020_v19, %v4019_v33 }
 0x3eb   : > { %3283 = vrot.lane.b32.xlu1 %v6840_v18, %s4960_s12  ;;  %4893 = vmatprep.subr.bf16.mxu1 %v4892_v54 }
 0x3ec   : > { %3281 = vrot.lane.b32.xlu0 %v6844_v56, %s4960_s12  ;;  %4895 = vmatpush3.bf16.msra.mxu1 %v4892_v54 }
 0x3ed   : > { %v7090_v52 = vpop.permute.xlu1 %2831  ;;  %4830 = vmatprep.subr.msk.mxu1 %vm2078_vm2, %v4021_v59 }
 0x3ee   : > { %8475 = vst [vmem:[#allocation5_spill] sm:$0xff] %v7090_v52  ;;  %v7092_v3 = vpop.permute.xlu0 %2829 }
 0x3ef   : > { %8476 = vst [vmem:[#allocation129_spill] sm:$0xff] %v7092_v3  ;;  %3411 = vrot.lane.b32.xlu1 %v6956_v31, %s4961_s13 }
 0x3f0   : > { %3409 = vrot.lane.b32.xlu0 %v6960_v29, %s4961_s13  ;;  %4831 = vmatpush3.msk.msra.mxu1 %vm2078_vm2, %v4021_v59 }
 0x3f1   : > { %v7098_v18 = vpop.permute.xlu1 %2899 }
 0x3f2   : > { %v7100_v56 = vpop.permute.xlu0 %2897 }
 0x3f3   : > { %3157 = vrot.lane.b32.xlu1 %v6708_v60, %s4959_s11 }
 0x3f4   : > { %3537 = vrot.lane.b32.xlu0 %v6708_v60, %s4962_s26 }
 0x3f5   : > { %v7111_v33 = vpop.permute.xlu1 %2903 }
 0x3f6   : > { %v7113_v19 = vpop.permute.xlu0 %2901 }
 0x3f7   : > { %3665 = vrot.lane.b32.xlu1 %v6852_v46, %s4963_s28 }
 0x3f8   : > { %3539 = vrot.lane.b32.xlu0 %v6703_v37, %s4962_s26 }
 0x3f9   : > { %v7119_v54 = vpop.permute.xlu1 %2907 }
 0x3fa   : > { %v7121_v52 = vpop.permute.xlu0 %2905 }
 0x3fb   : > { %3285 = vrot.lane.b32.xlu1 %v6852_v46, %s4960_s12 }
 0x3fc   : > { %3159 = vrot.lane.b32.xlu0 %v6703_v37, %s4959_s11 }
 0x3fd   : > { %v7127_v60 = vpop.permute.xlu1 %2911 }
 0x3fe   : > { %v7129_v59 = vpop.permute.xlu0 %2909 }
 0x3ff   : > { %3287 = vrot.lane.b32.xlu1 %v6848_v13, %s4960_s12 }
 0x400   : > { %3667 = vrot.lane.b32.xlu0 %v6848_v13, %s4963_s28 }
 0x401   : > { %v7135_v3 = vpop.permute.xlu1 %2915 }
 0x402   : > { %8477 = vst [vmem:[#allocation51_spill] sm:$0xff] %v7135_v3  ;;  %v7137_v4 = vpop.permute.xlu0 %2913 }
 0x403   : > { %3415 = vrot.lane.b32.xlu1 %v6968_v14, %s4961_s13 }
 0x404   : > { %3413 = vrot.lane.b32.xlu0 %v6972_v22, %s4961_s13 }
 0x405   : > { %v7143_v37 = vpop.permute.xlu1 %2919 }
 0x406   : > { %8478 = vst [vmem:[#allocation128_spill] sm:$0xff] %v7143_v37  ;;  %v7145_v46 = vpop.permute.xlu0 %2917 }
 0x407   : > { %3161 = vrot.lane.b32.xlu1 %v6722_v2, %s4959_s11 }
 0x408   : > { %3541 = vrot.lane.b32.xlu0 %v6722_v2, %s4962_s26 }
 0x409   : > { %v7151_v13 = vpop.permute.xlu1 %2923 }
 0x40a   : > { %8479 = vst [vmem:[#allocation28_spill] sm:$0xff] %v7151_v13  ;;  %v7153_v39 = vpop.permute.xlu0 %2921 }
 0x40b   : > { %8480 = vst [vmem:[#allocation77_spill] sm:$0xff] %v7153_v39  ;;  %3669 = vrot.lane.b32.xlu1 %v6860_v6, %s4963_s28 }
 0x40c   : > { %3543 = vrot.lane.b32.xlu0 %v6717_v44, %s4962_s26 }
 0x40d   : > { %v7159_v3 = vpop.permute.xlu1 %2927 }
 0x40e   : > { %8481 = vst [vmem:[#allocation26_spill] sm:$0xff] %v7159_v3  ;;  %v7161_v37 = vpop.permute.xlu0 %2925 }
 0x40f   : > { %8482 = vst [vmem:[#allocation98_spill] sm:$0xff] %v7161_v37  ;;  %3289 = vrot.lane.b32.xlu1 %v6860_v6, %s4960_s12 }
 0x410   : > { %3163 = vrot.lane.b32.xlu0 %v6717_v44, %s4959_s11 }
 0x411   : > { %v7167_v2 = vpop.permute.xlu1 %2931 }
 0x412   : > { %8483 = vst [vmem:[#allocation76_spill] sm:$0xff] %v7167_v2  ;;  %v7169_v13 = vpop.permute.xlu0 %2929 }
 0x413   : > { %8484 = vst [vmem:[#allocation13_spill] sm:$0xff] %v7169_v13  ;;  %3291 = vrot.lane.b32.xlu1 %v6856_v53, %s4960_s12 }
 0x414   : > { %3671 = vrot.lane.b32.xlu0 %v6856_v53, %s4963_s28 }
 0x415   : > { %v7175_v39 = vpop.permute.xlu1 %2935 }
 0x416   : > { %8485 = vst [vmem:[#allocation97_spill] sm:$0xff] %v7175_v39  ;;  %v7177_v3 = vpop.permute.xlu0 %2933 }
 0x417   : > { %8486 = vst [vmem:[#allocation57_spill] sm:$0xff] %v7177_v3  ;;  %3419 = vrot.lane.b32.xlu1 %v6980_v35, %s4961_s13 }
 0x418   : > { %3417 = vrot.lane.b32.xlu0 %v6984_v50, %s4961_s13 }
 0x419   : > { %v7183_v44 = vpop.permute.xlu1 %2939 }
 0x41a   : > { %8487 = vst [vmem:[#allocation9_spill] sm:$0xff] %v7183_v44  ;;  %v7185_v6 = vpop.permute.xlu0 %2937 }
 0x41b   : > { %8488 = vst [vmem:[#allocation131_spill] sm:$0xff] %v7185_v6  ;;  %3165 = vrot.lane.b32.xlu1 %v6736_v57, %s4959_s11  ;;  %v2682_v6 = vld [vmem:[#allocation2 + $0x99] sm:$0xff] }
 0x41c   : > { %3545 = vrot.lane.b32.xlu0 %v6736_v57, %s4962_s26 }
 0x41d   : > { %v7191_v53 = vpop.permute.xlu1 %2943 }
 0x41e   : > { %8489 = vst [vmem:[#allocation55_spill] sm:$0xff] %v7191_v53  ;;  %v7193_v39 = vpop.permute.xlu0 %2941 }
 0x41f   : > { %8490 = vst [vmem:[#allocation130_spill] sm:$0xff] %v7193_v39  ;;  %3673 = vrot.lane.b32.xlu1 %v6868_v16, %s4963_s28 }
 0x420   : > { %3547 = vrot.lane.b32.xlu0 %v6731_v0, %s4962_s26 }
 0x421   : > { %v7199_v3 = vpop.permute.xlu1 %2947 }
 0x422   : > { %8491 = vst [vmem:[#allocation32_spill] sm:$0xff] %v7199_v3  ;;  %v7201_v44 = vpop.permute.xlu0 %2945 }
 0x423   : > { %8492 = vst [vmem:[#allocation79_spill] sm:$0xff] %v7201_v44  ;;  %3293 = vrot.lane.b32.xlu1 %v6868_v16, %s4960_s12 }
 0x424   : > { %3167 = vrot.lane.b32.xlu0 %v6731_v0, %s4959_s11 }
 0x425   : > { %v7207_v57 = vpop.permute.xlu1 %2951 }
 0x426   : > { %8493 = vst [vmem:[#allocation30_spill] sm:$0xff] %v7207_v57  ;;  %v7209_v53 = vpop.permute.xlu0 %2949 }
 0x427   : > { %8494 = vst [vmem:[#allocation100_spill] sm:$0xff] %v7209_v53  ;;  %3295 = vrot.lane.b32.xlu1 %v6864_v32, %s4960_s12 }
 0x428   : > { %3675 = vrot.lane.b32.xlu0 %v6864_v32, %s4963_s28 }
 0x429   : > { %v7215_v39 = vpop.permute.xlu1 %2955 }
 0x42a   : > { %8495 = vst [vmem:[#allocation78_spill] sm:$0xff] %v7215_v39  ;;  %v7217_v3 = vpop.permute.xlu0 %2953 }
 0x42b   : > { %8496 = vst [vmem:[#allocation19_spill] sm:$0xff] %v7217_v3  ;;  %3423 = vrot.lane.b32.xlu1 %v6992_v1, %s4961_s13 }
 0x42c   : > { %3421 = vrot.lane.b32.xlu0 %v6996_v41, %s4961_s13 }
 0x42d   : > { %v7223_v0 = vpop.permute.xlu1 %2959 }
 0x42e   : > { %8497 = vst [vmem:[#allocation99_spill] sm:$0xff] %v7223_v0  ;;  %v7225_v16 = vpop.permute.xlu0 %2957 }
 0x42f   : > { %8498 = vst [vmem:[#allocation61_spill] sm:$0xff] %v7225_v16  ;;  %3169 = vrot.lane.b32.xlu1 %v6750_v10, %s4959_s11 }
 0x430   : > { %3549 = vrot.lane.b32.xlu0 %v6750_v10, %s4962_s26 }
 0x431   : > { %v7231_v32 = vpop.permute.xlu1 %3027 }
 0x432   : > { %v3026_v39 = vpop.permute.xlu0 %3025 }
 0x433   : > { %3677 = vrot.lane.b32.xlu1 %v6876_v15, %s4963_s28 }
 0x434   : > { %3551 = vrot.lane.b32.xlu0 %v6745_v24, %s4962_s26 }
 0x435   : > { %v7237_v3 = vpop.permute.xlu1 %3031 }
 0x436   : > { %v7239_v0 = vpop.permute.xlu0 %3029 }
 0x437   : > { %3297 = vrot.lane.b32.xlu1 %v6876_v15, %s4960_s12 }
 0x438   : > { %3171 = vrot.lane.b32.xlu0 %v6745_v24, %s4959_s11 }
 0x439   : > { %v7245_v10 = vpop.permute.xlu1 %3035 }
 0x43a   : > { %v7247_v16 = vpop.permute.xlu0 %3033 }
 0x43b   : > { %3299 = vrot.lane.b32.xlu1 %v6872_v40, %s4960_s12 }
 0x43c   : > { %3679 = vrot.lane.b32.xlu0 %v6872_v40, %s4963_s28 }
 0x43d   : > { %v7253_v57 = vpop.permute.xlu1 %3039 }
 0x43e   : > { %v7255_v53 = vpop.permute.xlu0 %3037 }
 0x43f   : > { %3427 = vrot.lane.b32.xlu1 %v7004_v45, %s4961_s13 }
 0x440   : > { %3425 = vrot.lane.b32.xlu0 %v7008_v61, %s4961_s13 }
 0x441   : > { %v7261_v24 = vpop.permute.xlu1 %3043 }
 0x442   : > { %v7263_v15 = vpop.permute.xlu0 %3041 }
 0x443   : > { %3173 = vrot.lane.b32.xlu1 %v6761_v62, %s4959_s11 }
 0x444   : > { %3553 = vrot.lane.b32.xlu0 %v6761_v62, %s4962_s26 }
 0x445   : > { %v7269_v40 = vpop.permute.xlu1 %3047 }
 0x446   : > { %8499 = vst [vmem:[#allocation16_spill] sm:$0xff] %v7269_v40  ;;  %v7271_v44 = vpop.permute.xlu0 %3045 }
 0x447   : > { %3681 = vrot.lane.b32.xlu1 %v6884_v11, %s4963_s28 }
 0x448   : > { %3555 = vrot.lane.b32.xlu0 %v2682_v6, %s4962_s26 }
 0x449   : > { %v7276_v2 = vpop.permute.xlu1 %3051 }
 0x44a   : > { %8500 = vst [vmem:[#allocation133_spill] sm:$0xff] %v7276_v2  ;;  %v7278_v13 = vpop.permute.xlu0 %3049 }
 0x44b   : > { %8501 = vst [vmem:[#allocation59_spill] sm:$0xff] %v7278_v13  ;;  %3301 = vrot.lane.b32.xlu1 %v6884_v11, %s4960_s12 }
 0x44c   : > { %3175 = vrot.lane.b32.xlu0 %v2682_v6, %s4959_s11 }
 0x44d   : > { %v7283_v62 = vpop.permute.xlu1 %3055 }
 0x44e   : > { %8502 = vst [vmem:[#allocation132_spill] sm:$0xff] %v7283_v62  ;;  %v7285_v37 = vpop.permute.xlu0 %3053  ;;  %v2589_v62 = vld [vmem:[#allocation2 + $0xa9] sm:$0xff] }
 0x44f   : > { %8503 = vst [vmem:[#allocation36_spill] sm:$0xff] %v7285_v37  ;;  %3303 = vrot.lane.b32.xlu1 %v6880_v30, %s4960_s12 }
 0x450   : > { %3683 = vrot.lane.b32.xlu0 %v6880_v30, %s4963_s28 }
 0x451   : > { %v7291_v45 = vpop.permute.xlu1 %3059 }
 0x452   : > { %8504 = vst [vmem:[#allocation81_spill] sm:$0xff] %v7291_v45  ;;  %v7293_v2 = vpop.permute.xlu0 %3057  ;;  %v2684_v45 = vld [vmem:[#allocation2 + $0xb1] sm:$0xff] }
 0x453   : > { %8505 = vst [vmem:[#allocation34_spill] sm:$0xff] %v7293_v2  ;;  %3431 = vrot.lane.b32.xlu1 %v7016_v20, %s4961_s13 }
 0x454   : > { %3429 = vrot.lane.b32.xlu0 %v7020_v63, %s4961_s13 }
 0x455   : > { %v7299_v11 = vpop.permute.xlu1 %3063 }
 0x456   : > { %8506 = vst [vmem:[#allocation102_spill] sm:$0xff] %v7299_v11  ;;  %v7301_v6 = vpop.permute.xlu0 %3061  ;;  %v2449_v11 = vld [vmem:[#allocation2] sm:$0xff] }
 0x457   : > { %8507 = vst [vmem:[#allocation80_spill] sm:$0xff] %v7301_v6  ;;  %3177 = vrot.lane.b32.xlu1 %v2589_v62, %s4959_s11 }
 0x458   : > { %3557 = vrot.lane.b32.xlu0 %v2589_v62, %s4962_s26  ;;  %v3761_v62 = vsel %vm279_vm0, %v2449_v11, %v6925_v36 }
 0x459   : > { %v3156_v30 = vpop.permute.xlu1 %3155  ;;  %v3793_v13 = vsel %vm1745_vm3, %v3761_v62, %v7100_v56  ;;  %v2450_v56 = vld [vmem:[#allocation2 + $0x8] sm:$0xff] }
 0x45a   : > { %v3154_v37 = vpop.permute.xlu0 %3153  ;;  %v3825_v61 = vsel %vm1778_vm4, %v3793_v13, %v3026_v39  ;;  %v2591_v39 = vld [vmem:[#allocation2 + $0xc1] sm:$0xff] }
 0x45b   : > { %3685 = vrot.lane.b32.xlu1 %v6892_v21, %s4963_s28  ;;  %v3857_v40 = vsel %vm1811_vm5, %v3825_v61, %v3154_v37 }
 0x45c   : > { %3559 = vrot.lane.b32.xlu0 %v2684_v45, %s4962_s26 }
 0x45d   : > { %v3284_v2 = vpop.permute.xlu1 %3283 }
 0x45e   : > { %v3282_v20 = vpop.permute.xlu0 %3281 }
 0x45f   : > { %3305 = vrot.lane.b32.xlu1 %v6892_v21, %s4960_s12  ;;  %v3889_v1 = vsel %vm1844_vm6, %v3857_v40, %v3282_v20  ;;  %v2686_v40 = vld [vmem:[#allocation2 + $0xc9] sm:$0xff] }
 0x460   : > { %3179 = vrot.lane.b32.xlu0 %v2684_v45, %s4959_s11 }
 0x461   : > { %v3412_v6 = vpop.permute.xlu1 %3411 }
 0x462   : > { %v3410_v63 = vpop.permute.xlu0 %3409 }
 0x463   : > { %3307 = vrot.lane.b32.xlu1 %v6888_v28, %s4960_s12  ;;  %v3921_v36 = vsel %vm1877_vm7, %v3889_v1, %v3410_v63 }
 0x464   : > { %3687 = vrot.lane.b32.xlu0 %v6888_v28, %s4963_s28 }
 0x465   : > { %v3158_v21 = vpop.permute.xlu1 %3157 }
 0x466   : > { %v3538_v45 = vpop.permute.xlu0 %3537 }
 0x467   : > { %3435 = vrot.lane.b32.xlu1 %v7028_v17, %s4961_s13  ;;  %v3953_v11 = vsel %vm1910_vm8, %v3921_v36, %v3538_v45  ;;  %v3762_v17 = vsel %vm279_vm0, %v2450_v56, %v6922_v51 }
 0x468   : > { %3433 = vrot.lane.b32.xlu0 %v7032_v58, %s4961_s13  ;;  %v3794_v63 = vsel %vm1745_vm3, %v3762_v17, %v7098_v18  ;;  %v2593_v17 = vld [vmem:[#allocation2 + $0xd9] sm:$0xff] }
 0x469   : > { %v3666_v28 = vpop.permute.xlu1 %3665  ;;  %v3826_v61 = vsel %vm1778_vm4, %v3794_v63, %v7231_v32 }
 0x46a   : > { %v3540_v62 = vpop.permute.xlu0 %3539  ;;  %v3985_v13 = vsel %vm1943_vm9, %v3953_v11, %v3666_v28  ;;  %v3858_v37 = vsel %vm1811_vm5, %v3826_v61, %v3156_v30 }
 0x46b   : > { %3181 = vrot.lane.b32.xlu1 %v2591_v39, %s4959_s11  ;;  %4832 = vmatprep.mubr.msk.f32.mxu1 %vm1981_vm10, %v3985_v13  ;;  %v3890_v45 = vsel %vm1844_vm6, %v3858_v37, %v3284_v2  ;;  %v3763_v2 = vsel %vm279_vm0, %v6948_v42, %v6932_v38  ;;  %v2688_v37 = vld [vmem:[#allocation2 + $0xe1] sm:$0xff] }
 0x46c   : > { %3561 = vrot.lane.b32.xlu0 %v2591_v39, %s4962_s26  ;;  %v3922_v51 = vsel %vm1877_vm7, %v3890_v45, %v3412_v6  ;;  %v3795_v6 = vsel %vm1745_vm3, %v3763_v2, %v7113_v19  ;;  %v2595_v2 = vld [vmem:[#allocation2 + $0xf1] sm:$0xff] }
 0x46d   : > { %v3286_v1 = vpop.permute.xlu1 %3285  ;;  %v3954_v18 = vsel %vm1910_vm8, %v3922_v51, %v3540_v62 }
 0x46e   : > { %v3160_v20 = vpop.permute.xlu0 %3159 }
 0x46f   : > { %3689 = vrot.lane.b32.xlu1 %v6900_v9, %s4963_s28 }
 0x470   : > { %3563 = vrot.lane.b32.xlu0 %v2686_v40, %s4962_s26 }
 0x471   : > { %v3288_v36 = vpop.permute.xlu1 %3287 }
 0x472   : > { %v3668_v56 = vpop.permute.xlu0 %3667 }
 0x473   : > { %v3986_v11 = vsel %vm1943_vm9, %v3954_v18, %v3668_v56  ;;  %3309 = vrot.lane.b32.xlu1 %v6900_v9, %s4960_s12  ;;  %v3827_v9 = vsel %vm1778_vm4, %v3795_v6, %v7239_v0 }
 0x474   : > { %3183 = vrot.lane.b32.xlu0 %v2686_v40, %s4959_s11  ;;  %4833 = vmatmul.mubr.msk.f32.vlgmr.msra.gmra.mrb[0].mxu1 %vm1981_vm10, %v3986_v11  ;;  %v3859_v62 = vsel %vm1811_vm5, %v3827_v9, %v3158_v21 }
 0x475   : > { %v3416_v32 = vpop.permute.xlu1 %3415  ;;  %v3891_v13 = vsel %vm1844_vm6, %v3859_v62, %v3286_v1 }
 0x476   : > { %v3414_v30 = vpop.permute.xlu0 %3413 }
 0x477   : > { %3311 = vrot.lane.b32.xlu1 %v6896_v7, %s4960_s12  ;;  %v3923_v38 = vsel %vm1877_vm7, %v3891_v13, %v3414_v30 }
 0x478   : > { %3691 = vrot.lane.b32.xlu0 %v6896_v7, %s4963_s28 }
 0x479   : > { %v3162_v28 = vpop.permute.xlu1 %3161 }
 0x47a   : > { %v3542_v39 = vpop.permute.xlu0 %3541 }
 0x47b   : > { %3439 = vrot.lane.b32.xlu1 %v7040_v49, %s4961_s13  ;;  %v3955_v42 = vsel %vm1910_vm8, %v3923_v38, %v3542_v39  ;;  %v3764_v49 = vsel %vm279_vm0, %v6944_v55, %v6930_v5  ;;  %v2690_v39 = vld [vmem:[#allocation2 + $0xf9] sm:$0xff] }
 0x47c   : > { %3437 = vrot.lane.b32.xlu0 %v7044_v48, %s4961_s13  ;;  %v3796_v48 = vsel %vm1745_vm3, %v3764_v49, %v7111_v33  ;;  %v7445_v49 = vld [vmem:[#allocation2 + $0x108] sm:$0xff] }
 0x47d   : > { %v3670_v7 = vpop.permute.xlu1 %3669  ;;  %v3828_v63 = vsel %vm1778_vm4, %v3796_v48, %v7237_v3 }
 0x47e   : > { %v3987_v19 = vsel %vm1943_vm9, %v3955_v42, %v3670_v7  ;;  %v3544_v0 = vpop.permute.xlu0 %3543  ;;  %v3860_v61 = vsel %vm1811_vm5, %v3828_v63, %v3160_v20 }
 0x47f   : > { %3185 = vrot.lane.b32.xlu1 %v2593_v17, %s4959_s11  ;;  %4835 = vmatprep.mubr.msk.f32.mxu1 %vm1981_vm10, %v3987_v19  ;;  %v3892_v40 = vsel %vm1844_vm6, %v3860_v61, %v3288_v36  ;;  %v3765_v36 = vsel %vm279_vm0, %v6960_v29, %v6938_v26  ;;  %v3767_v19 = vsel %vm279_vm0, %v6972_v22, %v6946_v23  ;;  %v7456_v61 = vld [vmem:[#allocation2 + $0x110] sm:$0xff] }
 0x480   : > { %3565 = vrot.lane.b32.xlu0 %v2593_v17, %s4962_s26  ;;  %v3924_v5 = vsel %vm1877_vm7, %v3892_v40, %v3416_v32  ;;  %v3797_v18 = vsel %vm1745_vm3, %v3765_v36, %v7121_v52 }
 0x481   : > { %v3290_v21 = vpop.permute.xlu1 %3289  ;;  %v3956_v33 = vsel %vm1910_vm8, %v3924_v5, %v3544_v0  ;;  %v3799_v0 = vsel %vm1745_vm3, %v3767_v19, %v7129_v59 }
 0x482   : > { %v3164_v1 = vpop.permute.xlu0 %3163 }
 0x483   : > { %3693 = vrot.lane.b32.xlu1 %v6908_v8, %s4963_s28 }
 0x484   : > { %3567 = vrot.lane.b32.xlu0 %v2688_v37, %s4962_s26 }
 0x485   : > { %v3292_v55 = vpop.permute.xlu1 %3291 }
 0x486   : > { %v3672_v45 = vpop.permute.xlu0 %3671 }
 0x487   : > { %v3988_v51 = vsel %vm1943_vm9, %v3956_v33, %v3672_v45  ;;  %3313 = vrot.lane.b32.xlu1 %v6908_v8, %s4960_s12  ;;  %v3829_v8 = vsel %vm1778_vm4, %v3797_v18, %v7247_v16  ;;  %v2723_v18 = vld [vmem:[#allocation2 + $0x10a] sm:$0xff] }
 0x488   : > { %3187 = vrot.lane.b32.xlu0 %v2688_v37, %s4959_s11  ;;  %4836 = vmatmul.mubr.msk.f32.gmra.mrb[2].mxu1 %vm1981_vm10, %v3988_v51  ;;  %v3861_v11 = vsel %vm1811_vm5, %v3829_v8, %v3162_v28  ;;  %v8508_v37 = vld [vmem:[#allocation4_spill] sm:$0xff] }
 0x489   : > { %v3420_v3 = vpop.permute.xlu1 %3419  ;;  %v3893_v30 = vsel %vm1844_vm6, %v3861_v11, %v3290_v21  ;;  %v3768_v40 = vsel %vm279_vm0, %v6968_v14, %v8508_v37 }
 0x48a   : > { %v3418_v20 = vpop.permute.xlu0 %3417  ;;  %v3800_v5 = vsel %vm1745_vm3, %v3768_v40, %v7127_v60 }
 0x48b   : > { %3315 = vrot.lane.b32.xlu1 %v6904_v25, %s4960_s12  ;;  %v3925_v26 = vsel %vm1877_vm7, %v3893_v30, %v3418_v20  ;;  %v3832_v33 = vsel %vm1778_vm4, %v3800_v5, %v7253_v57  ;;  %v2692_v57 = vld [vmem:[#allocation2 + $0x111] sm:$0xff] }
 0x48c   : > { %3695 = vrot.lane.b32.xlu0 %v6904_v25, %s4963_s28 }
 0x48d   : > { %v3166_v56 = vpop.permute.xlu1 %3165 }
 0x48e   : > { %v3546_v32 = vpop.permute.xlu0 %3545 }
 0x48f   : > { %3443 = vrot.lane.b32.xlu1 %v7052_v43, %s4961_s13  ;;  %v3957_v52 = vsel %vm1910_vm8, %v3925_v26, %v3546_v32  ;;  %v3766_v43 = vsel %vm279_vm0, %v6956_v31, %v6936_v27  ;;  %v8509_v32 = vld [vmem:[#allocation67_spill] sm:$0xff] }
 0x490   : > { %3441 = vrot.lane.b32.xlu0 %v7056_v12, %s4961_s13  ;;  %v3798_v12 = vsel %vm1745_vm3, %v3766_v43, %v7119_v54  ;;  %v3769_v30 = vsel %vm279_vm0, %v6984_v50, %v8509_v32 }
 0x491   : > { %v3674_v25 = vpop.permute.xlu1 %3673  ;;  %v3830_v9 = vsel %vm1778_vm4, %v3798_v12, %v7245_v10  ;;  %v3801_v26 = vsel %vm1745_vm3, %v3769_v30, %v7137_v4 }
 0x492   : > { %v3989_v29 = vsel %vm1943_vm9, %v3957_v52, %v3674_v25  ;;  %v3548_v16 = vpop.permute.xlu0 %3547  ;;  %v3862_v62 = vsel %vm1811_vm5, %v3830_v9, %v3164_v1  ;;  %v2691_v1 = vld [vmem:[#allocation2 + $0x109] sm:$0xff]  ;;  %v3833_v52 = vsel %vm1778_vm4, %v3801_v26, %v7263_v15 }
 0x493   : > { %3189 = vrot.lane.b32.xlu1 %v2595_v2, %s4959_s11  ;;  %4838 = vmatprep.mubr.msk.f32.mxu1 %vm1981_vm10, %v3989_v29  ;;  %v3894_v13 = vsel %vm1844_vm6, %v3862_v62, %v3292_v55 }
 0x494   : > { %3569 = vrot.lane.b32.xlu0 %v2595_v2, %s4962_s26  ;;  %v3926_v27 = vsel %vm1877_vm7, %v3894_v13, %v3420_v3  ;;  %v2630_v2 = vld [vmem:[#allocation2 + $0x112] sm:$0xff] }
 0x495   : > { %v3294_v6 = vpop.permute.xlu1 %3293  ;;  %v3958_v54 = vsel %vm1910_vm8, %v3926_v27, %v3548_v16 }
 0x496   : > { %v3168_v28 = vpop.permute.xlu0 %3167 }
 0x497   : > { %3697 = vrot.lane.b32.xlu1 %v6916_v47, %s4963_s28  ;;  %v3864_v51 = vsel %vm1811_vm5, %v3832_v33, %v3168_v28  ;;  %v8510_v28 = vld [vmem:[#allocation3_spill] sm:$0xff] }
 0x498   : > { %3571 = vrot.lane.b32.xlu0 %v2690_v39, %s4962_s26  ;;  %v3770_v62 = vsel %vm279_vm0, %v6980_v35, %v8510_v28  ;;  %v8520_v28 = vld [vmem:[#allocation59_spill] sm:$0xff] }
 0x499   : > { %v3296_v31 = vpop.permute.xlu1 %3295 }
 0x49a   : > { %v3676_v38 = vpop.permute.xlu0 %3675  ;;  %v3896_v3 = vsel %vm1844_vm6, %v3864_v51, %v3296_v31  ;;  %v8514_v51 = vld [vmem:[#allocation70_spill] sm:$0xff] }
 0x49b   : > { %v3990_v42 = vsel %vm1943_vm9, %v3958_v54, %v3676_v38  ;;  %3317 = vrot.lane.b32.xlu1 %v6916_v47, %s4960_s12  ;;  %v3831_v47 = vsel %vm1778_vm4, %v3799_v0, %v7255_v53  ;;  %v2693_v38 = vld [vmem:[#allocation2 + $0x121] sm:$0xff] }
 0x49c   : > { %3191 = vrot.lane.b32.xlu0 %v2690_v39, %s4959_s11  ;;  %4839 = vmatmul.mubr.msk.f32.gmra.mrb[4].mxu1 %vm1981_vm10, %v3990_v42  ;;  %v3863_v48 = vsel %vm1811_vm5, %v3831_v47, %v3166_v56  ;;  %v8511_v39 = vld [vmem:[#allocation51_spill] sm:$0xff]  ;;  %v7510_v42 = vld [vmem:[#allocation2 + $0x128] sm:$0xff] }
 0x49d   : > { %v3424_v10 = vpop.permute.xlu1 %3423  ;;  %v3895_v23 = vsel %vm1844_vm6, %v3863_v48, %v3294_v6  ;;  %v7495_v6 = vld [vmem:[#allocation2 + $0x120] sm:$0xff]  ;;  %v3802_v13 = vsel %vm1745_vm3, %v3770_v62, %v8511_v39 }
 0x49e   : > { %v3422_v7 = vpop.permute.xlu0 %3421  ;;  %v3928_v14 = vsel %vm1877_vm7, %v3896_v3, %v3424_v10  ;;  %v3834_v31 = vsel %vm1778_vm4, %v3802_v13, %v7261_v24 }
 0x49f   : > { %3319 = vrot.lane.b32.xlu1 %v6912_v34, %s4960_s12  ;;  %v3927_v22 = vsel %vm1877_vm7, %v3895_v23, %v3422_v7  ;;  %v8512_v23 = vld [vmem:[#allocation12_spill] sm:$0xff] }
 0x4a0   : > { %3699 = vrot.lane.b32.xlu0 %v6912_v34, %s4963_s28 }
 0x4a1   : > { %v3170_v17 = vpop.permute.xlu1 %3169 }
 0x4a2   : > { %v3550_v21 = vpop.permute.xlu0 %3549  ;;  %v3865_v29 = vsel %vm1811_vm5, %v3833_v52, %v3170_v17 }
 0x4a3   : > { %3065 = vrot.lane.b32.xlu1 %v7445_v49, %s4958_s10  ;;  %v3959_v34 = vsel %vm1910_vm8, %v3927_v22, %v3550_v21  ;;  %v2725_v21 = vld [vmem:[#allocation2 + $0x122] sm:$0xff]  ;;  %v3771_v22 = vsel %vm279_vm0, %v6996_v41, %v8512_v23 }
 0x4a4   : > { %3445 = vrot.lane.b32.xlu0 %v7445_v49, %s4961_s13 }
 0x4a5   : > { %v3678_v59 = vpop.permute.xlu1 %3677 }
 0x4a6   : > { %v3991_v53 = vsel %vm1943_vm9, %v3959_v34, %v3678_v59  ;;  %v3552_v63 = vpop.permute.xlu0 %3551  ;;  %v2694_v34 = vld [vmem:[#allocation2 + $0x129] sm:$0xff]  ;;  %v3803_v59 = vsel %vm1745_vm3, %v3771_v22, %v7145_v46  ;;  %v8524_v22 = vld [vmem:[#allocation133_spill] sm:$0xff] }
 0x4a7   : > { %3573 = vrot.lane.b32.xlu1 %v2691_v1, %s4962_s26  ;;  %4841 = vmatprep.mubr.msk.f32.mxu1 %vm1981_vm10, %v3991_v53  ;;  %v3960_v36 = vsel %vm1910_vm8, %v3928_v14, %v3552_v63  ;;  %v3835_v53 = vsel %vm1778_vm4, %v3803_v59, %v7271_v44  ;;  %v8513_v44 = vld [vmem:[#allocation6_spill] sm:$0xff]  ;;  %v8515_v14 = vld [vmem:[#allocation128_spill] sm:$0xff] }
 0x4a8   : > { %3447 = vrot.lane.b32.xlu0 %v7456_v61, %s4961_s13  ;;  %v3772_v3 = vsel %vm279_vm0, %v8514_v51, %v8513_v44  ;;  %v2697_v44 = vld [vmem:[#allocation2 + $0x151] sm:$0xff] }
 0x4a9   : > { %v3298_v55 = vpop.permute.xlu1 %3297  ;;  %v8525_v51 = vld [vmem:[#allocation8_spill] sm:$0xff] }
 0x4aa   : > { %v3172_v45 = vpop.permute.xlu0 %3171  ;;  %v3897_v43 = vsel %vm1844_vm6, %v3865_v29, %v3298_v55 }
 0x4ab   : > { %3193 = vrot.lane.b32.xlu1 %v2691_v1, %s4959_s11  ;;  %v3866_v10 = vsel %vm1811_vm5, %v3834_v31, %v3172_v45  ;;  %v2632_v45 = vld [vmem:[#allocation2 + $0x12a] sm:$0xff]  ;;  %v2727_v31 = vld [vmem:[#allocation2 + $0x13a] sm:$0xff] }
 0x4ac   : > { %3067 = vrot.lane.b32.xlu0 %v7456_v61, %s4958_s10 }
 0x4ad   : > { %v3300_v20 = vpop.permute.xlu1 %3299 }
 0x4ae   : > { %v3680_v60 = vpop.permute.xlu0 %3679  ;;  %v3898_v35 = vsel %vm1844_vm6, %v3866_v10, %v3300_v20  ;;  %v3804_v20 = vsel %vm1745_vm3, %v3772_v3, %v8515_v14  ;;  %v8526_v3 = vld [vmem:[#allocation73_spill] sm:$0xff] }
 0x4af   : > { %v3992_v8 = vsel %vm1943_vm9, %v3960_v36, %v3680_v60  ;;  %3701 = vrot.lane.b32.xlu1 %v2723_v18, %s4963_s28  ;;  %v7548_v60 = vld [vmem:[#allocation2 + $0x138] sm:$0xff]  ;;  %v3775_v14 = vsel %vm279_vm0, %v8526_v3, %v8525_v51 }
 0x4b0   : > { %3575 = vrot.lane.b32.xlu0 %v2692_v57, %s4962_s26  ;;  %4842 = vmatmul.mubr.msk.f32.gmra.mrb[6].mxu1 %vm1981_vm10, %v3992_v8  ;;  %v8537_v51 = vld [vmem:[#allocation76_spill] sm:$0xff] }
 0x4b1   : > { %v3428_v56 = vpop.permute.xlu1 %3427 }
 0x4b2   : > { %v3426_v11 = vpop.permute.xlu0 %3425  ;;  %v3930_v7 = vsel %vm1877_vm7, %v3898_v35, %v3428_v56 }
 0x4b3   : > { %3321 = vrot.lane.b32.xlu1 %v2723_v18, %s4960_s12  ;;  %v3929_v50 = vsel %vm1877_vm7, %v3897_v43, %v3426_v11  ;;  %v8516_v18 = vld [vmem:[#allocation16_spill] sm:$0xff] }
 0x4b4   : > { %3195 = vrot.lane.b32.xlu0 %v2692_v57, %s4959_s11  ;;  %v3836_v8 = vsel %vm1778_vm4, %v3804_v20, %v8516_v18  ;;  %v2666_v20 = vld [vmem:[#allocation2 + $0x158] sm:$0xff] }
 0x4b5   : > { %v3174_v25 = vpop.permute.xlu1 %3173 }
 0x4b6   : > { %v3554_v16 = vpop.permute.xlu0 %3553  ;;  %v3867_v1 = vsel %vm1811_vm5, %v3835_v53, %v3174_v25  ;;  %v2695_v25 = vld [vmem:[#allocation2 + $0x139] sm:$0xff]  ;;  %v2634_v53 = vld [vmem:[#allocation2 + $0x142] sm:$0xff] }
 0x4b7   : > { %3323 = vrot.lane.b32.xlu1 %v2630_v2, %s4960_s12  ;;  %v3961_v4 = vsel %vm1910_vm8, %v3929_v50, %v3554_v16  ;;  %v2664_v16 = vld [vmem:[#allocation2 + $0x140] sm:$0xff]  ;;  %v8517_v50 = vld [vmem:[#allocation66_spill] sm:$0xff] }
 0x4b8   : > { %3703 = vrot.lane.b32.xlu0 %v2630_v2, %s4963_s28 }
 0x4b9   : > { %v3682_v12 = vpop.permute.xlu1 %3681 }
 0x4ba   : > { %v3993_v15 = vsel %vm1943_vm9, %v3961_v4, %v3682_v12  ;;  %v3556_v9 = vpop.permute.xlu0 %3555  ;;  %v8518_v4 = vld [vmem:[#allocation11_spill] sm:$0xff] }
 0x4bb   : > { %3069 = vrot.lane.b32.xlu1 %v7495_v6, %s4958_s10  ;;  %4844 = vmatprep.mubr.msk.f32.mxu1 %vm1981_vm10, %v3993_v15  ;;  %v3962_v0 = vsel %vm1910_vm8, %v3930_v7, %v3556_v9  ;;  %v3773_v12 = vsel %vm279_vm0, %v8518_v4, %v8517_v50  ;;  %v8519_v15 = vld [vmem:[#allocation77_spill] sm:$0xff]  ;;  %v8529_v50 = vld [vmem:[#allocation10_spill] sm:$0xff] }
 0x4bc   : > { %3449 = vrot.lane.b32.xlu0 %v7495_v6, %s4961_s13  ;;  %v3805_v9 = vsel %vm1745_vm3, %v3773_v12, %v8519_v15  ;;  %v8530_v4 = vld [vmem:[#allocation17_spill] sm:$0xff]  ;;  %v8531_v15 = vld [vmem:[#allocation26_spill] sm:$0xff] }
 0x4bd   : > { %v3302_v27 = vpop.permute.xlu1 %3301  ;;  %v3837_v62 = vsel %vm1778_vm4, %v3805_v9, %v8520_v28  ;;  %v3776_v12 = vsel %vm279_vm0, %v8530_v4, %v8529_v50  ;;  %v2575_v4 = vld [vmem:[#allocation2 + $0x180] sm:$0xff] }
 0x4be   : > { %v3176_v54 = vpop.permute.xlu0 %3175  ;;  %v3899_v40 = vsel %vm1844_vm6, %v3867_v1, %v3302_v27  ;;  %v3808_v9 = vsel %vm1745_vm3, %v3776_v12, %v8531_v15  ;;  %v4943_v12 = vld [vmem:[#allocation2 + $0xd8] sm:$0xff]  ;;  %v8539_v15 = vld [vmem:[#allocation15_spill] sm:$0xff] }
 0x4bf   : > { %3577 = vrot.lane.b32.xlu1 %v2693_v38, %s4962_s26  ;;  %v3868_v56 = vsel %vm1811_vm5, %v3836_v8, %v3176_v54  ;;  %v8528_v8 = vld [vmem:[#allocation36_spill] sm:$0xff] }
 0x4c0   : > { %3451 = vrot.lane.b32.xlu0 %v7510_v42, %s4961_s13 }
 0x4c1   : > { %v3304_v19 = vpop.permute.xlu1 %3303 }
 0x4c2   : > { %v3684_v47 = vpop.permute.xlu0 %3683  ;;  %v3900_v11 = vsel %vm1844_vm6, %v3868_v56, %v3304_v19 }
 0x4c3   : > { %v3994_v24 = vsel %vm1943_vm9, %v3962_v0, %v3684_v47  ;;  %3197 = vrot.lane.b32.xlu1 %v2693_v38, %s4959_s11  ;;  %v2696_v38 = vld [vmem:[#allocation2 + $0x141] sm:$0xff] }
 0x4c4   : > { %3071 = vrot.lane.b32.xlu0 %v7510_v42, %s4958_s10  ;;  %4845 = vmatmul.mubr.msk.f32.gmra.mrb[8].mxu1 %vm1981_vm10, %v3994_v24  ;;  %v8521_v47 = vld [vmem:[#allocation62_spill] sm:$0xff] }
 0x4c5   : > { %v3432_v17 = vpop.permute.xlu1 %3431  ;;  %v8522_v24 = vld [vmem:[#allocation14_spill] sm:$0xff] }
 0x4c6   : > { %v3430_v48 = vpop.permute.xlu0 %3429  ;;  %v3932_v32 = vsel %vm1877_vm7, %v3900_v11, %v3432_v17  ;;  %v3774_v17 = vsel %vm279_vm0, %v8522_v24, %v8521_v47  ;;  %v2573_v24 = vld [vmem:[#allocation2 + $0x168] sm:$0xff] }
 0x4c7   : > { %3705 = vrot.lane.b32.xlu1 %v2725_v21, %s4963_s28  ;;  %v3931_v41 = vsel %vm1877_vm7, %v3899_v40, %v3430_v48  ;;  %v8523_v48 = vld [vmem:[#allocation28_spill] sm:$0xff] }
 0x4c8   : > { %3579 = vrot.lane.b32.xlu0 %v2694_v34, %s4962_s26 }
 0x4c9   : > { %v3178_v63 = vpop.permute.xlu1 %3177 }
 0x4ca   : > { %v3558_v37 = vpop.permute.xlu0 %3557  ;;  %v3869_v13 = vsel %vm1811_vm5, %v3837_v62, %v3178_v63  ;;  %v8532_v62 = vld [vmem:[#allocation132_spill] sm:$0xff] }
 0x4cb   : > { %3325 = vrot.lane.b32.xlu1 %v2725_v21, %s4960_s12  ;;  %v3963_v5 = vsel %vm1910_vm8, %v3931_v41, %v3558_v37  ;;  %v3806_v21 = vsel %vm1745_vm3, %v3774_v17, %v8523_v48  ;;  %v8533_v17 = vld [vmem:[#allocation72_spill] sm:$0xff] }
 0x4cc   : > { %3199 = vrot.lane.b32.xlu0 %v2694_v34, %s4959_s11  ;;  %v3838_v34 = vsel %vm1778_vm4, %v3806_v21, %v8524_v22  ;;  %v3777_v48 = vsel %vm279_vm0, %v7032_v58, %v8533_v17  ;;  %v8534_v21 = vld [vmem:[#allocation13_spill] sm:$0xff]  ;;  %v8535_v22 = vld [vmem:[#allocation34_spill] sm:$0xff]  ;;  %v2668_v58 = vld [vmem:[#allocation2 + $0x170] sm:$0xff] }
 0x4cd   : > { %v3686_v46 = vpop.permute.xlu1 %3685  ;;  %v4944_v17 = vld [vmem:[#allocation2 + $0xe0] sm:$0xff] }
 0x4ce   : > { %v3995_v55 = vsel %vm1943_vm9, %v3963_v5, %v3686_v46  ;;  %v3560_v33 = vpop.permute.xlu0 %3559  ;;  %v2571_v46 = vld [vmem:[#allocation2 + $0x150] sm:$0xff] }
 0x4cf   : > { %3327 = vrot.lane.b32.xlu1 %v2632_v45, %s4960_s12  ;;  %4847 = vmatprep.mubr.msk.f32.mxu1 %vm1981_vm10, %v3995_v55  ;;  %v3964_v26 = vsel %vm1910_vm8, %v3932_v32, %v3560_v33 }
 0x4d0   : > { %3707 = vrot.lane.b32.xlu0 %v2632_v45, %s4963_s28 }
 0x4d1   : > { %v3306_v36 = vpop.permute.xlu1 %3305 }
 0x4d2   : > { %v3180_v57 = vpop.permute.xlu0 %3179  ;;  %v3901_v54 = vsel %vm1844_vm6, %v3869_v13, %v3306_v36  ;;  %v8527_v36 = vld [vmem:[#allocation98_spill] sm:$0xff] }
 0x4d3   : > { %3073 = vrot.lane.b32.xlu1 %v7548_v60, %s4958_s10  ;;  %v3870_v63 = vsel %vm1811_vm5, %v3838_v34, %v3180_v57  ;;  %v3807_v18 = vsel %vm1745_vm3, %v3775_v14, %v8527_v36 }
 0x4d4   : > { %3453 = vrot.lane.b32.xlu0 %v7548_v60, %s4961_s13  ;;  %v3839_v57 = vsel %vm1778_vm4, %v3807_v18, %v8528_v8  ;;  %v2731_v8 = vld [vmem:[#allocation2 + $0x16a] sm:$0xff] }
 0x4d5   : > { %v3308_v30 = vpop.permute.xlu1 %3307 }
 0x4d6   : > { %v3688_v52 = vpop.permute.xlu0 %3687  ;;  %v3902_v1 = vsel %vm1844_vm6, %v3870_v63, %v3308_v30 }
 0x4d7   : > { %v3996_v29 = vsel %vm1943_vm9, %v3964_v26, %v3688_v52  ;;  %3581 = vrot.lane.b32.xlu1 %v2695_v25, %s4962_s26 }
 0x4d8   : > { %3455 = vrot.lane.b32.xlu0 %v2664_v16, %s4961_s13  ;;  %4848 = vmatmul.mubr.msk.f32.gmra.mrb[10].mxu1 %vm1981_vm10, %v3996_v29 }
 0x4d9   : > { %v3436_v2 = vpop.permute.xlu1 %3435 }
 0x4da   : > { %v3434_v43 = vpop.permute.xlu0 %3433  ;;  %v3934_v37 = vsel %vm1877_vm7, %v3902_v1, %v3436_v2  ;;  %v2729_v2 = vld [vmem:[#allocation2 + $0x152] sm:$0xff]  ;;  %v2699_v1 = vld [vmem:[#allocation2 + $0x169] sm:$0xff] }
 0x4db   : > { %3201 = vrot.lane.b32.xlu1 %v2695_v25, %s4959_s11  ;;  %v3933_v10 = vsel %vm1877_vm7, %v3901_v54, %v3434_v43  ;;  %v2698_v43 = vld [vmem:[#allocation2 + $0x159] sm:$0xff] }
 0x4dc   : > { %3075 = vrot.lane.b32.xlu0 %v2664_v16, %s4958_s10 }
 0x4dd   : > { %v3182_v39 = vpop.permute.xlu1 %3181 }
 0x4de   : > { %v3562_v27 = vpop.permute.xlu0 %3561  ;;  %v3871_v11 = vsel %vm1811_vm5, %v3839_v57, %v3182_v39  ;;  %v3840_v39 = vsel %vm1778_vm4, %v3808_v9, %v8532_v62  ;;  %v3779_v9 = vsel %vm279_vm0, %v4943_v12, %v8539_v15  ;;  %v2735_v15 = vld [vmem:[#allocation2 + $0x19a] sm:$0xff] }
 0x4df   : > { %3709 = vrot.lane.b32.xlu1 %v2727_v31, %s4963_s28  ;;  %v3965_v35 = vsel %vm1910_vm8, %v3933_v10, %v3562_v27 }
 0x4e0   : > { %3583 = vrot.lane.b32.xlu0 %v2696_v38, %s4962_s26 }
 0x4e1   : > { %v3690_v7 = vpop.permute.xlu1 %3689 }
 0x4e2   : > { %v3997_v19 = vsel %vm1943_vm9, %v3965_v35, %v3690_v7  ;;  %v3564_v0 = vpop.permute.xlu0 %3563  ;;  %v2636_v7 = vld [vmem:[#allocation2 + $0x15a] sm:$0xff] }
 0x4e3   : > { %3329 = vrot.lane.b32.xlu1 %v2727_v31, %s4960_s12  ;;  %4850 = vmatprep.mubr.msk.f32.mxu1 %vm1981_vm10, %v3997_v19  ;;  %v3966_v41 = vsel %vm1910_vm8, %v3934_v37, %v3564_v0 }
 0x4e4   : > { %3203 = vrot.lane.b32.xlu0 %v2696_v38, %s4959_s11 }
 0x4e5   : > { %v3310_v23 = vpop.permute.xlu1 %3309 }
 0x4e6   : > { %v3184_v59 = vpop.permute.xlu0 %3183  ;;  %v3903_v30 = vsel %vm1844_vm6, %v3871_v11, %v3310_v23  ;;  %v3809_v23 = vsel %vm1745_vm3, %v3777_v48, %v8534_v21  ;;  %v8542_v48 = vld [vmem:[#allocation71_spill] sm:$0xff] }
 0x4e7   : > { %3331 = vrot.lane.b32.xlu1 %v2634_v53, %s4960_s12  ;;  %v3872_v27 = vsel %vm1811_vm5, %v3840_v39, %v3184_v59  ;;  %v3841_v34 = vsel %vm1778_vm4, %v3809_v23, %v8535_v22  ;;  %v8541_v39 = vld [vmem:[#allocation80_spill] sm:$0xff]  ;;  %v3780_v21 = vsel %vm279_vm0, %v4944_v17, %v8542_v48  ;;  %v8543_v23 = vld [vmem:[#allocation97_spill] sm:$0xff] }
 0x4e8   : > { %3711 = vrot.lane.b32.xlu0 %v2634_v53, %s4963_s28  ;;  %v3812_v22 = vsel %vm1745_vm3, %v3780_v21, %v8543_v23 }
 0x4e9   : > { %v3312_v40 = vpop.permute.xlu1 %3311 }
 0x4ea   : > { %v3692_v5 = vpop.permute.xlu0 %3691  ;;  %v3904_v31 = vsel %vm1844_vm6, %v3872_v27, %v3312_v40 }
 0x4eb   : > { %v3998_v55 = vsel %vm1943_vm9, %v3966_v41, %v3692_v5  ;;  %3077 = vrot.lane.b32.xlu1 %v2571_v46, %s4958_s10 }
 0x4ec   : > { %3457 = vrot.lane.b32.xlu0 %v2571_v46, %s4961_s13  ;;  %4851 = vmatmul.mubr.msk.f32.gmra.mrb[12].mxu1 %vm1981_vm10, %v3998_v55 }
 0x4ed   : > { %v3440_v33 = vpop.permute.xlu1 %3439 }
 0x4ee   : > { %v3438_v45 = vpop.permute.xlu0 %3437  ;;  %v3936_v54 = vsel %vm1877_vm7, %v3904_v31, %v3440_v33  ;;  %v4942_v33 = vld [vmem:[#allocation2 + $0xc8] sm:$0xff] }
 0x4ef   : > { %3585 = vrot.lane.b32.xlu1 %v2697_v44, %s4962_s26  ;;  %v3935_v26 = vsel %vm1877_vm7, %v3903_v30, %v3438_v45  ;;  %v8536_v45 = vld [vmem:[#allocation69_spill] sm:$0xff] }
 0x4f0   : > { %3459 = vrot.lane.b32.xlu0 %v2666_v20, %s4961_s13 }
 0x4f1   : > { %v3186_v56 = vpop.permute.xlu1 %3185 }
 0x4f2   : > { %v3566_v32 = vpop.permute.xlu0 %3565  ;;  %v3873_v53 = vsel %vm1811_vm5, %v3841_v34, %v3186_v56  ;;  %v2700_v56 = vld [vmem:[#allocation2 + $0x171] sm:$0xff] }
 0x4f3   : > { %3205 = vrot.lane.b32.xlu1 %v2697_v44, %s4959_s11  ;;  %v3967_v52 = vsel %vm1910_vm8, %v3935_v26, %v3566_v32  ;;  %v3778_v44 = vsel %vm279_vm0, %v4942_v33, %v8536_v45 }
 0x4f4   : > { %3079 = vrot.lane.b32.xlu0 %v2666_v20, %s4958_s10  ;;  %v3810_v3 = vsel %vm1745_vm3, %v3778_v44, %v8537_v51  ;;  %v8538_v20 = vld [vmem:[#allocation81_spill] sm:$0xff]  ;;  %v2640_v51 = vld [vmem:[#allocation2 + $0x18a] sm:$0xff] }
 0x4f5   : > { %v3694_v25 = vpop.permute.xlu1 %3693  ;;  %v3842_v36 = vsel %vm1778_vm4, %v3810_v3, %v8538_v20  ;;  %v2672_v3 = vld [vmem:[#allocation2 + $0x1a0] sm:$0xff]  ;;  %v2671_v20 = vld [vmem:[#allocation2 + $0x198] sm:$0xff] }
 0x4f6   : > { %v3999_v29 = vsel %vm1943_vm9, %v3967_v52, %v3694_v25  ;;  %v3568_v16 = vpop.permute.xlu0 %3567 }
 0x4f7   : > { %3713 = vrot.lane.b32.xlu1 %v2729_v2, %s4963_s28  ;;  %4853 = vmatprep.mubr.msk.f32.mxu1 %vm1981_vm10, %v3999_v29  ;;  %v3968_v10 = vsel %vm1910_vm8, %v3936_v54, %v3568_v16 }
 0x4f8   : > { %3587 = vrot.lane.b32.xlu0 %v2698_v43, %s4962_s26 }
 0x4f9   : > { %v3314_v28 = vpop.permute.xlu1 %3313 }
 0x4fa   : > { %v3188_v13 = vpop.permute.xlu0 %3187  ;;  %v3905_v37 = vsel %vm1844_vm6, %v3873_v53, %v3314_v28  ;;  %v8540_v28 = vld [vmem:[#allocation57_spill] sm:$0xff] }
 0x4fb   : > { %3333 = vrot.lane.b32.xlu1 %v2729_v2, %s4960_s12  ;;  %v3874_v57 = vsel %vm1811_vm5, %v3842_v36, %v3188_v13  ;;  %v2638_v2 = vld [vmem:[#allocation2 + $0x172] sm:$0xff]  ;;  %v3811_v62 = vsel %vm1745_vm3, %v3779_v9, %v8540_v28 }
 0x4fc   : > { %3207 = vrot.lane.b32.xlu0 %v2698_v43, %s4959_s11  ;;  %v3843_v13 = vsel %vm1778_vm4, %v3811_v62, %v8541_v39  ;;  %v4946_v28 = vld [vmem:[#allocation2 + $0xf8] sm:$0xff] }
 0x4fd   : > { %v3316_v38 = vpop.permute.xlu1 %3315  ;;  %v8547_v62 = vld [vmem:[#allocation20_spill] sm:$0xff] }
 0x4fe   : > { %v3696_v35 = vpop.permute.xlu0 %3695  ;;  %v3906_v11 = vsel %vm1844_vm6, %v3874_v57, %v3316_v38  ;;  %v2701_v38 = vld [vmem:[#allocation2 + $0x181] sm:$0xff]  ;;  %v3782_v39 = vsel %vm279_vm0, %v4946_v28, %v8547_v62 }
 0x4ff   : > { %v4000_v19 = vsel %vm1943_vm9, %v3968_v10, %v3696_v35  ;;  %3335 = vrot.lane.b32.xlu1 %v2636_v7, %s4960_s12  ;;  %v2670_v35 = vld [vmem:[#allocation2 + $0x188] sm:$0xff] }
 0x500   : > { %3715 = vrot.lane.b32.xlu0 %v2636_v7, %s4963_s28  ;;  %4854 = vmatmul.mubr.msk.f32.gmra.mrb[14].mxu1 %vm1981_vm10, %v4000_v19 }
 0x501   : > { %v3444_v0 = vpop.permute.xlu1 %3443 }
 0x502   : > { %v3442_v47 = vpop.permute.xlu0 %3441  ;;  %v3938_v32 = vsel %vm1877_vm7, %v3906_v11, %v3444_v0 }
 0x503   : > { %3081 = vrot.lane.b32.xlu1 %v2573_v24, %s4958_s10  ;;  %v3937_v40 = vsel %vm1877_vm7, %v3905_v37, %v3442_v47 }
 0x504   : > { %3461 = vrot.lane.b32.xlu0 %v2573_v24, %s4961_s13 }
 0x505   : > { %v3190_v59 = vpop.permute.xlu1 %3189 }
 0x506   : > { %v3570_v63 = vpop.permute.xlu0 %3569  ;;  %v3875_v31 = vsel %vm1811_vm5, %v3843_v13, %v3190_v59  ;;  %v8544_v59 = vld [vmem:[#allocation102_spill] sm:$0xff]  ;;  %v8548_v13 = vld [vmem:[#allocation9_spill] sm:$0xff] }
 0x507   : > { %3589 = vrot.lane.b32.xlu1 %v2699_v1, %s4962_s26  ;;  %v3969_v41 = vsel %vm1910_vm8, %v3937_v40, %v3570_v63  ;;  %v3844_v53 = vsel %vm1778_vm4, %v3812_v22, %v8544_v59  ;;  %v7757_v22 = vld [vmem:[%s8056_s6] ss:$0 sm:$0xff] }
 0x508   : > { %3463 = vrot.lane.b32.xlu0 %v2668_v58, %s4961_s13 }
 0x509   : > { %v3698_v5 = vpop.permute.xlu1 %3697 }
 0x50a   : > { %v4001_v46 = vsel %vm1943_vm9, %v3969_v41, %v3698_v5  ;;  %v3572_v55 = vpop.permute.xlu0 %3571 }
 0x50b   : > { %3209 = vrot.lane.b32.xlu1 %v2699_v1, %s4959_s11  ;;  %4856 = vmatprep.mubr.msk.f32.mxu1 %vm1981_vm10, %v4001_v46  ;;  %v3970_v26 = vsel %vm1910_vm8, %v3938_v32, %v3572_v55  ;;  %v2733_v1 = vld [vmem:[#allocation2 + $0x182] sm:$0xff] }
 0x50c   : > { %3083 = vrot.lane.b32.xlu0 %v2668_v58, %s4958_s10  ;;  %v2702_v58 = vld [vmem:[#allocation2 + $0x189] sm:$0xff]  ;;  %v2704_v32 = vld [vmem:[#allocation2 + $0x1a1] sm:$0xff] }
 0x50d   : > { %v3318_v14 = vpop.permute.xlu1 %3317 }
 0x50e   : > { %v3192_v18 = vpop.permute.xlu0 %3191  ;;  %v3907_v10 = vsel %vm1844_vm6, %v3875_v31, %v3318_v14 }
 0x50f   : > { %3717 = vrot.lane.b32.xlu1 %v2731_v8, %s4963_s28  ;;  %v3876_v37 = vsel %vm1811_vm5, %v3844_v53, %v3192_v18  ;;  %v4945_v18 = vld [vmem:[#allocation2 + $0xf0] sm:$0xff]  ;;  %v4425_v53 = vld [vmem:[%s5084_s30 + $0x8] sm:$0xff] }
 0x510   : > { %3591 = vrot.lane.b32.xlu0 %v2700_v56, %s4962_s26 }
 0x511   : > { %v3320_v30 = vpop.permute.xlu1 %3319 }
 0x512   : > { %v3700_v52 = vpop.permute.xlu0 %3699  ;;  %v3908_v40 = vsel %vm1844_vm6, %v3876_v37, %v3320_v30 }
 0x513   : > { %v4002_v25 = vsel %vm1943_vm9, %v3970_v26, %v3700_v52  ;;  %3337 = vrot.lane.b32.xlu1 %v2731_v8, %s4960_s12  ;;  %v8545_v8 = vld [vmem:[#allocation18_spill] sm:$0xff]  ;;  %v2703_v52 = vld [vmem:[#allocation2 + $0x199] sm:$0xff] }
 0x514   : > { %3211 = vrot.lane.b32.xlu0 %v2700_v56, %s4959_s11  ;;  %4857 = vmatmul.mubr.msk.f32.gmra.mrb[16].mxu1 %vm1981_vm10, %v4002_v25  ;;  %v3781_v57 = vsel %vm279_vm0, %v4945_v18, %v8545_v8  ;;  %v8546_v56 = vld [vmem:[#allocation131_spill] sm:$0xff] }
 0x515   : > { %v7671_v29 = vpop.permute.xlu1 %3065  ;;  %v3813_v11 = vsel %vm1745_vm3, %v3781_v57, %v8546_v56 }
 0x516   : > { %v3446_v16 = vpop.permute.xlu0 %3445  ;;  %v3845_v30 = vsel %vm1778_vm4, %v3813_v11, %v7671_v29 }
 0x517   : > { %3339 = vrot.lane.b32.xlu1 %v2638_v2, %s4960_s12  ;;  %v3939_v7 = vsel %vm1877_vm7, %v3907_v10, %v3446_v16 }
 0x518   : > { %3719 = vrot.lane.b32.xlu0 %v2638_v2, %s4963_s28 }
 0x519   : > { %v3574_v43 = vpop.permute.xlu1 %3573 }
 0x51a   : > { %v3448_v50 = vpop.permute.xlu0 %3447  ;;  %v3971_v19 = vsel %vm1910_vm8, %v3939_v7, %v3574_v43 }
 0x51b   : > { %3085 = vrot.lane.b32.xlu1 %v2575_v4, %s4958_s10  ;;  %v3940_v41 = vsel %vm1877_vm7, %v3908_v40, %v3448_v50  ;;  %v2736_v50 = vld [vmem:[#allocation2 + $0x1a2] sm:$0xff] }
 0x51c   : > { %3465 = vrot.lane.b32.xlu0 %v2575_v4, %s4961_s13 }
 0x51d   : > { %v3194_v27 = vpop.permute.xlu1 %3193 }
 0x51e   : > { %v7684_v54 = vpop.permute.xlu0 %3067  ;;  %v3877_v25 = vsel %vm1811_vm5, %v3845_v30, %v3194_v27  ;;  %v3814_v27 = vsel %vm1745_vm3, %v3782_v39, %v8548_v13  ;;  %v8551_v30 = vld [vmem:[#allocation24_spill] sm:$0xff] }
 0x51f   : > { %3593 = vrot.lane.b32.xlu1 %v2701_v38, %s4962_s26 }
 0x520   : > { %3467 = vrot.lane.b32.xlu0 %v2670_v35, %s4961_s13 }
 0x521   : > { %v3702_v0 = vpop.permute.xlu1 %3701 }
 0x522   : > { %v4003_v47 = vsel %vm1943_vm9, %v3971_v19, %v3702_v0  ;;  %v3576_v24 = vpop.permute.xlu0 %3575 }
 0x523   : > { %4859 = vmatprep.mubr.msk.f32.mxu1 %vm1981_vm10, %v4003_v47  ;;  %3213 = vrot.lane.b32.xlu1 %v2701_v38, %s4959_s11  ;;  %v3972_v46 = vsel %vm1910_vm8, %v3940_v41, %v3576_v24  ;;  %v3846_v38 = vsel %vm1778_vm4, %v3814_v27, %v7684_v54  ;;  %v7752_v54 = vld [vmem:[%s8055_s5] ss:$0 sm:$0xff]  ;;  %v8549_v41 = vld [vmem:[#allocation75_spill] sm:$0xff] }
 0x524   : > { %3087 = vrot.lane.b32.xlu0 %v2670_v35, %s4958_s10 }
 0x525   : > { %v3322_v34 = vpop.permute.xlu1 %3321 }
 0x526   : > { %v3196_v63 = vpop.permute.xlu0 %3195  ;;  %v3909_v2 = vsel %vm1844_vm6, %v3877_v25, %v3322_v34 }
 0x527   : > { %3721 = vrot.lane.b32.xlu1 %v2733_v1, %s4963_s28  ;;  %v3878_v35 = vsel %vm1811_vm5, %v3846_v38, %v3196_v63 }
 0x528   : > { %3595 = vrot.lane.b32.xlu0 %v2702_v58, %s4962_s26 }
 0x529   : > { %v3324_v5 = vpop.permute.xlu1 %3323 }
 0x52a   : > { %v3704_v55 = vpop.permute.xlu0 %3703  ;;  %v3910_v7 = vsel %vm1844_vm6, %v3878_v35, %v3324_v5  ;;  %v3783_v5 = vsel %vm279_vm0, %v7445_v49, %v8549_v41 }
 0x52b   : > { %v4004_v33 = vsel %vm1943_vm9, %v3972_v46, %v3704_v55  ;;  %3341 = vrot.lane.b32.xlu1 %v2733_v1, %s4960_s12  ;;  %v8550_v55 = vld [vmem:[#allocation130_spill] sm:$0xff] }
 0x52c   : > { %4860 = vmatmul.mubr.msk.f32.gmra.mrb[18].mxu1 %vm1981_vm10, %v4004_v33  ;;  %3215 = vrot.lane.b32.xlu0 %v2702_v58, %s4959_s11  ;;  %v4424_v58 = vld [vmem:[%s5084_s30] sm:$0xff]  ;;  %v3815_v33 = vsel %vm1745_vm3, %v3783_v5, %v8550_v55 }
 0x52d   : > { %v7711_v45 = vpop.permute.xlu1 %3069 }
 0x52e   : > { %v3450_v44 = vpop.permute.xlu0 %3449 }
 0x52f   : > { %3343 = vrot.lane.b32.xlu1 %v2640_v51, %s4960_s12  ;;  %v3941_v43 = vsel %vm1877_vm7, %v3909_v2, %v3450_v44 }
 0x530   : > { %3723 = vrot.lane.b32.xlu0 %v2640_v51, %s4963_s28  ;;  %v3847_v51 = vsel %vm1778_vm4, %v3815_v33, %v7711_v45 }
 0x531   : > { %v3578_v14 = vpop.permute.xlu1 %3577 }
 0x532   : > { %v3452_v36 = vpop.permute.xlu0 %3451  ;;  %v3973_v4 = vsel %vm1910_vm8, %v3941_v43, %v3578_v14 }
 0x533   : > { %3471 = vrot.lane.b32.xlu1 %v2672_v3, %s4961_s13  ;;  %v3942_v19 = vsel %vm1877_vm7, %v3910_v7, %v3452_v36 }
 0x534   : > { %3469 = vrot.lane.b32.xlu0 %v2671_v20, %s4961_s13 }
 0x535   : > { %v3198_v26 = vpop.permute.xlu1 %3197 }
 0x536   : > { %v7724_v16 = vpop.permute.xlu0 %3071  ;;  %v3879_v49 = vsel %vm1811_vm5, %v3847_v51, %v3198_v26  ;;  %v3784_v26 = vsel %vm279_vm0, %v7456_v61, %v8551_v30 }
 0x537   : > { %3599 = vrot.lane.b32.xlu1 %v2704_v32, %s4962_s26 }
 0x538   : > { %3597 = vrot.lane.b32.xlu0 %v2703_v52, %s4962_s26  ;;  %v8552_v52 = vld [vmem:[#allocation55_spill] sm:$0xff] }
 0x539   : > { %v3706_v12 = vpop.permute.xlu1 %3705  ;;  %v3816_v25 = vsel %vm1745_vm3, %v3784_v26, %v8552_v52  ;;  %v4428_v26 = vld [vmem:[%s5084_s30 + $0x20] sm:$0xff] }
 0x53a   : > { %v4005_v29 = vsel %vm1943_vm9, %v3973_v4, %v3706_v12  ;;  %v3580_v9 = vpop.permute.xlu0 %3579  ;;  %v3848_v43 = vsel %vm1778_vm4, %v3816_v25, %v7724_v16  ;;  %v4427_v16 = vld [vmem:[%s5084_s30 + $0x18] sm:$0xff] }
 0x53b   : > { %4862 = vmatprep.mubr.msk.f32.mxu1 %vm1981_vm10, %v4005_v29  ;;  %3727 = vrot.lane.b32.xlu1 %v2736_v50, %s4963_s28  ;;  %v3974_v47 = vsel %vm1910_vm8, %v3942_v19, %v3580_v9 }
 0x53c   : > { %3725 = vrot.lane.b32.xlu0 %v2735_v15, %s4963_s28 }
 0x53d   : > { %v3326_v31 = vpop.permute.xlu1 %3325 }
 0x53e   : > { %v3200_v10 = vpop.permute.xlu0 %3199  ;;  %v3911_v18 = vsel %vm1844_vm6, %v3879_v49, %v3326_v31 }
 0x53f   : > { %v3880_v4 = vsel %vm1811_vm5, %v3848_v43, %v3200_v10  ;;  %v4426_v10 = vld [vmem:[%s5084_s30 + $0x10] sm:$0xff] }
 0x541   : > { %v3328_v0 = vpop.permute.xlu1 %3327 }
 0x542   : > { %v3708_v24 = vpop.permute.xlu0 %3707  ;;  %v3912_v12 = vsel %vm1844_vm6, %v3880_v4, %v3328_v0 }
 0x543   : > { %v4006_v17 = vsel %vm1943_vm9, %v3974_v47, %v3708_v24 }
 0x544   : > { %4863 = vmatmul.mubr.msk.f32.gmra.mrb[20].mxu1 %vm1981_vm10, %v4006_v17 }
 0x545   : > { %v7747_v48 = vpop.permute.xlu1 %3073 }
 0x546   : > { %v3454_v21 = vpop.permute.xlu0 %3453 }
 0x547   : > { %v4834_v23 = vpop.f32.mrb[0].mxu1  ;;  %v3943_v57 = vsel %vm1877_vm7, %v3911_v18, %v3454_v21  ;;  %v8553_v21 = vld [vmem:[#allocation96_spill] sm:$0xff] }
 0x548   : > { %v4354_v34 = vmul.f32 %v4834_v23, %v7752_v54  ;;  %v4187_v59 = vpop.f32.mrb[1].mxu1  ;;  %v3785_v23 = vsel %vm279_vm0, %v7495_v6, %v8553_v21 }
 0x549   : > { %v4353_v63 = vmul.f32 %v7752_v54, %v4187_v59  ;;  %v3582_v1 = vpop.permute.xlu1 %3581  ;;  %v8554_v59 = vld [vmem:[#allocation79_spill] sm:$0xff] }
 0x54a   : > { %v4393_v37 = vadd.f32 %v7757_v22, %v4354_v34  ;;  %v3456_v40 = vpop.permute.xlu0 %3455  ;;  %v3975_v45 = vsel %vm1910_vm8, %v3943_v57, %v3582_v1 }
 0x54b   : > { %v4392_v46 = vadd.f32 %v7757_v22, %v4353_v63  ;;  %v3944_v15 = vsel %vm1877_vm7, %v3912_v12, %v3456_v40 }
 0x54c   : > { %v4457_v44 = vadd.f32 %v4425_v53, %v4393_v37  ;;  %v3817_v53 = vsel %vm1745_vm3, %v3785_v23, %v8554_v59  ;;  %v8560_v59 = vld [vmem:[#allocation30_spill] sm:$0xff] }
 0x54d   : > { %v4456_v3 = vadd.f32 %v4424_v58, %v4392_v46  ;;  %v3202_v14 = vpop.permute.xlu1 %3201  ;;  %v3849_v63 = vsel %vm1778_vm4, %v3817_v53, %v7747_v48  ;;  %v8555_v48 = vld [vmem:[#allocation22_spill] sm:$0xff] }
 0x54e   : > { %v4489_v20 = vmax.f32 %v4457_v44, 0.0  ;;  %v3076_v36 = vpop.permute.xlu0 %3075  ;;  %v3881_v37 = vsel %vm1811_vm5, %v3849_v63, %v3202_v14  ;;  %v3786_v33 = vsel %vm279_vm0, %v7510_v42, %v8555_v48  ;;  %v8556_v44 = vld [vmem:[#allocation32_spill] sm:$0xff] }
 0x54f   : > { %v4488_v8 = vmax.f32 %v4456_v3, 0.0  ;;  %v3818_v51 = vsel %vm1745_vm3, %v3786_v33, %v8556_v44  ;;  %v4431_v63 = vld [vmem:[%s5084_s30 + $0x38] sm:$0xff] }
 0x550   : > { %4521 = vst.msk [vmem:[%s7777_s14 + $0x8] sm:$0xff] %vm279_vm0, %v4489_v20  ;;  %v3850_v14 = vsel %vm1778_vm4, %v3818_v51, %v3076_v36 }
 0x551   : > { %4520 = vst.msk [vmem:[%s7777_s14] sm:$0xff] %vm279_vm0, %v4488_v8  ;;  %v3710_v56 = vpop.permute.xlu1 %3709 }
 0x552   : > { %v4007_v11 = vsel %vm1943_vm9, %v3975_v45, %v3710_v56  ;;  %v3584_v32 = vpop.permute.xlu0 %3583 }
 0x553   : > { %4865 = vmatprep.mubr.msk.f32.mxu1 %vm1981_vm10, %v4007_v11  ;;  %v3976_v9 = vsel %vm1910_vm8, %v3944_v15, %v3584_v32  ;;  %v4429_v11 = vld [vmem:[%s5084_s30 + $0x28] sm:$0xff] }
 0x555   : > { %v3330_v2 = vpop.permute.xlu1 %3329 }
 0x556   : > { %v3204_v50 = vpop.permute.xlu0 %3203  ;;  %v3913_v40 = vsel %vm1844_vm6, %v3881_v37, %v3330_v2 }
 0x557   : > { %v3882_v20 = vsel %vm1811_vm5, %v3850_v14, %v3204_v50 }
 0x559   : > { %v3332_v29 = vpop.permute.xlu1 %3331 }
 0x55a   : > { %v3712_v61 = vpop.permute.xlu0 %3711  ;;  %v3914_v8 = vsel %vm1844_vm6, %v3882_v20, %v3332_v29 }
 0x55b   : > { %v4008_v28 = vsel %vm1943_vm9, %v3976_v9, %v3712_v61  ;;  %v4837_v62 = vpop.f32.mrb[2].mxu1 }
 0x55c   : > { %v4356_v39 = vmul.f32 %v4837_v62, %v7752_v54  ;;  %v4197_v13 = vpop.f32.mrb[3].mxu1  ;;  %4866 = vmatmul.mubr.msk.f32.gmra.mrb[22].mxu1 %vm1981_vm10, %v4008_v28  ;;  %v8557_v28 = vld [vmem:[#allocation7_spill] sm:$0xff] }
 0x55d   : > { %v4355_v27 = vmul.f32 %v7752_v54, %v4197_v13  ;;  %v3078_v31 = vpop.permute.xlu1 %3077  ;;  %v3787_v62 = vsel %vm279_vm0, %v7548_v60, %v8557_v28 }
 0x55e   : > { %v4395_v38 = vadd.f32 %v7757_v22, %v4356_v39  ;;  %v3458_v35 = vpop.permute.xlu0 %3457  ;;  %v8558_v39 = vld [vmem:[#allocation100_spill] sm:$0xff] }
 0x55f   : > { %v4394_v7 = vadd.f32 %v7757_v22, %v4355_v27  ;;  %v3945_v41 = vsel %vm1877_vm7, %v3913_v40, %v3458_v35  ;;  %v3819_v13 = vsel %vm1745_vm3, %v3787_v62, %v8558_v39  ;;  %v4432_v39 = vld [vmem:[%s5084_s30 + $0x40] sm:$0xff] }
 0x560   : > { %v4459_v19 = vadd.f32 %v4427_v16, %v4395_v38  ;;  %v3851_v16 = vsel %vm1778_vm4, %v3819_v13, %v3078_v31  ;;  %v8559_v31 = vld [vmem:[#allocation74_spill] sm:$0xff] }
 0x561   : > { %v4458_v0 = vadd.f32 %v4426_v10, %v4394_v7  ;;  %v3586_v47 = vpop.permute.xlu1 %3585 }
 0x562   : > { %v4491_v24 = vmax.f32 %v4459_v19, 0.0  ;;  %v3460_v17 = vpop.permute.xlu0 %3459  ;;  %v3977_v6 = vsel %vm1910_vm8, %v3945_v41, %v3586_v47 }
 0x563   : > { %v4490_v34 = vmax.f32 %v4458_v0, 0.0  ;;  %v3946_v56 = vsel %vm1877_vm7, %v3914_v8, %v3460_v17 }
 0x564   : > { %4523 = vst.msk [vmem:[%s7777_s14 + $0x18] sm:$0xff] %vm279_vm0, %v4491_v24  ;;  %v2476_v24 = vld [vmem:[#allocation2 + $0x140] sm:$0xff] }
 0x565   : > { %4522 = vst.msk [vmem:[%s7777_s14 + $0x10] sm:$0xff] %vm279_vm0, %v4490_v34  ;;  %v3206_v1 = vpop.permute.xlu1 %3205  ;;  %v3788_v21 = vsel %vm279_vm0, %v2476_v24, %v8559_v31 }
 0x566   : > { %v3080_v58 = vpop.permute.xlu0 %3079  ;;  %v3883_v38 = vsel %vm1811_vm5, %v3851_v16, %v3206_v1  ;;  %v3820_v53 = vsel %vm1745_vm3, %v3788_v21, %v8560_v59 }
 0x567   : > { %v3852_v40 = vsel %vm1778_vm4, %v3820_v53, %v3080_v58 }
 0x569   : > { %v3714_v5 = vpop.permute.xlu1 %3713 }
 0x56a   : > { %v4009_v46 = vsel %vm1943_vm9, %v3977_v6, %v3714_v5  ;;  %v3588_v55 = vpop.permute.xlu0 %3587  ;;  %v4430_v6 = vld [vmem:[%s5084_s30 + $0x30] sm:$0xff] }
 0x56b   : > { %4868 = vmatprep.mubr.msk.f32.mxu1 %vm1981_vm10, %v4009_v46  ;;  %v3978_v30 = vsel %vm1910_vm8, %v3946_v56, %v3588_v55  ;;  %v2477_v56 = vld [vmem:[#allocation2 + $0x150] sm:$0xff] }
 0x56d   : > { %v3334_v3 = vpop.permute.xlu1 %3333 }
 0x56e   : > { %v3208_v49 = vpop.permute.xlu0 %3207  ;;  %v3915_v35 = vsel %vm1844_vm6, %v3883_v38, %v3334_v3 }
 0x56f   : > { %v4840_v18 = vpop.f32.mrb[4].mxu1  ;;  %v3884_v46 = vsel %vm1811_vm5, %v3852_v40, %v3208_v49 }
 0x570   : > { %v4358_v57 = vmul.f32 %v4840_v18, %v7752_v54  ;;  %v4207_v45 = vpop.f32.mrb[5].mxu1 }
 0x571   : > { %v4357_v42 = vmul.f32 %v7752_v54, %v4207_v45  ;;  %v3336_v32 = vpop.permute.xlu1 %3335 }
 0x572   : > { %v4397_v36 = vadd.f32 %v7757_v22, %v4358_v57  ;;  %v3716_v52 = vpop.permute.xlu0 %3715  ;;  %v3916_v48 = vsel %vm1844_vm6, %v3884_v46, %v3336_v32  ;;  %v8565_v46 = vld [vmem:[#allocation129_spill] sm:$0xff] }
 0x573   : > { %v4396_v25 = vadd.f32 %v7757_v22, %v4357_v42  ;;  %v4010_v2 = vsel %vm1943_vm9, %v3978_v30, %v3716_v52  ;;  %v8561_v42 = vld [vmem:[#allocation53_spill] sm:$0xff]  ;;  %v8562_v30 = vld [vmem:[#allocation19_spill] sm:$0xff] }
 0x574   : > { %v4461_v43 = vadd.f32 %v4429_v11, %v4397_v36  ;;  %4869 = vmatmul.mubr.msk.f32.gmra.mrb[24].mxu1 %vm1981_vm10, %v4010_v2  ;;  %v3789_v32 = vsel %vm279_vm0, %v2477_v56, %v8561_v42 }
 0x575   : > { %v4460_v50 = vadd.f32 %v4428_v26, %v4396_v25  ;;  %v3082_v4 = vpop.permute.xlu1 %3081  ;;  %v3821_v36 = vsel %vm1745_vm3, %v3789_v32, %v8562_v30 }
 0x576   : > { %v4493_v12 = vmax.f32 %v4461_v43, 0.0  ;;  %v3462_v15 = vpop.permute.xlu0 %3461  ;;  %v3853_v26 = vsel %vm1778_vm4, %v3821_v36, %v3082_v4 }
 0x577   : > { %v4492_v29 = vmax.f32 %v4460_v50, 0.0  ;;  %v3947_v7 = vsel %vm1877_vm7, %v3915_v35, %v3462_v15  ;;  %v8563_v35 = vld [vmem:[#allocation95_spill] sm:$0xff] }
 0x578   : > { %4525 = vst.msk [vmem:[%s7777_s14 + $0x28] sm:$0xff] %vm279_vm0, %v4493_v12 }
 0x579   : > { %4524 = vst.msk [vmem:[%s7777_s14 + $0x20] sm:$0xff] %vm279_vm0, %v4492_v29  ;;  %v3590_v9 = vpop.permute.xlu1 %3589 }
 0x57a   : > { %v3464_v61 = vpop.permute.xlu0 %3463  ;;  %v3979_v19 = vsel %vm1910_vm8, %v3947_v7, %v3590_v9 }
 0x57b   : > { %v3948_v44 = vsel %vm1877_vm7, %v3916_v48, %v3464_v61  ;;  %v4433_v61 = vld [vmem:[%s5084_s30 + $0x48] sm:$0xff]  ;;  %v8566_v48 = vld [vmem:[#allocation5_spill] sm:$0xff] }
 0x57d   : > { %v3210_v27 = vpop.permute.xlu1 %3209 }
 0x57e   : > { %v7854_v10 = vpop.permute.xlu0 %3083  ;;  %v3885_v25 = vsel %vm1811_vm5, %v3853_v26, %v3210_v27  ;;  %v2478_v27 = vld [vmem:[#allocation2 + $0x158] sm:$0xff] }
 0x57f   : > { %v3790_v7 = vsel %vm279_vm0, %v2478_v27, %v8563_v35  ;;  %v4435_v26 = vld [vmem:[%s5084_s30 + $0x58] sm:$0xff] }
 0x581   : > { %v3718_v0 = vpop.permute.xlu1 %3717 }
 0x582   : > { %v4011_v60 = vsel %vm1943_vm9, %v3979_v19, %v3718_v0  ;;  %v3592_v47 = vpop.permute.xlu0 %3591  ;;  %v8564_v0 = vld [vmem:[#allocation78_spill] sm:$0xff] }
 0x583   : > { %v4843_v17 = vpop.f32.mrb[6].mxu1  ;;  %4871 = vmatprep.mubr.msk.f32.mxu1 %vm1981_vm10, %v4011_v60  ;;  %v3980_v14 = vsel %vm1910_vm8, %v3948_v44, %v3592_v47  ;;  %v3822_v60 = vsel %vm1745_vm3, %v3790_v7, %v8564_v0  ;;  %v8567_v44 = vld [vmem:[#allocation61_spill] sm:$0xff] }
 0x584   : > { %v4360_v23 = vmul.f32 %v4843_v17, %v7752_v54  ;;  %v4217_v34 = vpop.f32.mrb[7].mxu1  ;;  %v3854_v17 = vsel %vm1778_vm4, %v3822_v60, %v7854_v10 }
 0x585   : > { %v4359_v1 = vmul.f32 %v7752_v54, %v4217_v34  ;;  %v3338_v37 = vpop.permute.xlu1 %3337 }
 0x586   : > { %v4399_v41 = vadd.f32 %v7757_v22, %v4360_v23  ;;  %v3212_v5 = vpop.permute.xlu0 %3211  ;;  %v3917_v43 = vsel %vm1844_vm6, %v3885_v25, %v3338_v37 }
 0x587   : > { %v4398_v55 = vadd.f32 %v7757_v22, %v4359_v1  ;;  %v3886_v23 = vsel %vm1811_vm5, %v3854_v17, %v3212_v5  ;;  %v2480_v5 = vld [vmem:[#allocation2 + $0x170] sm:$0xff] }
 0x588   : > { %v4463_v33 = vadd.f32 %v4431_v63, %v4399_v41 }
 0x589   : > { %v4462_v51 = vadd.f32 %v4430_v6, %v4398_v55  ;;  %v3340_v3 = vpop.permute.xlu1 %3339  ;;  %v2479_v6 = vld [vmem:[#allocation2 + $0x168] sm:$0xff] }
 0x58a   : > { %v4495_v58 = vmax.f32 %v4463_v33, 0.0  ;;  %v3720_v20 = vpop.permute.xlu0 %3719  ;;  %v3918_v59 = vsel %vm1844_vm6, %v3886_v23, %v3340_v3  ;;  %v3791_v55 = vsel %vm279_vm0, %v2479_v6, %v8565_v46  ;;  %v3792_v33 = vsel %vm279_vm0, %v2480_v5, %v8566_v48 }
 0x58b   : > { %v4494_v18 = vmax.f32 %v4462_v51, 0.0  ;;  %v4012_v8 = vsel %vm1943_vm9, %v3980_v14, %v3720_v20  ;;  %v3823_v51 = vsel %vm1745_vm3, %v3791_v55, %v8567_v44  ;;  %v8568_v14 = vld [vmem:[#allocation99_spill] sm:$0xff]  ;;  %v4441_v55 = vld [vmem:[%s5084_s30 + $0x88] sm:$0xff]  ;;  %v4440_v44 = vld [vmem:[%s5084_s30 + $0x80] sm:$0xff] }
 0x58c   : > { %4527 = vst.msk [vmem:[%s7777_s14 + $0x38] sm:$0xff] %vm279_vm0, %v4495_v58  ;;  %4872 = vmatmul.mubr.msk.f32.gmra.mrb[26].mxu1 %vm1981_vm10, %v4012_v8  ;;  %v3824_v58 = vsel %vm1745_vm3, %v3792_v33, %v8568_v14 }
 0x58d   : > { %4526 = vst.msk [vmem:[%s7777_s14 + $0x30] sm:$0xff] %vm279_vm0, %v4494_v18  ;;  %v3086_v49 = vpop.permute.xlu1 %3085 }
 0x58e   : > { %v3466_v57 = vpop.permute.xlu0 %3465  ;;  %v3855_v20 = vsel %vm1778_vm4, %v3823_v51, %v3086_v49 }
 0x58f   : > { %v3949_v12 = vsel %vm1877_vm7, %v3917_v43, %v3466_v57 }
 0x591   : > { %v3594_v45 = vpop.permute.xlu1 %3593 }
 0x592   : > { %v3468_v11 = vpop.permute.xlu0 %3467  ;;  %v3981_v9 = vsel %vm1910_vm8, %v3949_v12, %v3594_v45 }
 0x593   : > { %v3950_v53 = vsel %vm1877_vm7, %v3918_v59, %v3468_v11 }
 0x595   : > { %v3214_v52 = vpop.permute.xlu1 %3213 }
 0x596   : > { %v3088_v2 = vpop.permute.xlu0 %3087  ;;  %v3887_v8 = vsel %vm1811_vm5, %v3855_v20, %v3214_v52 }
 0x597   : > { %v4846_v50 = vpop.f32.mrb[8].mxu1  ;;  %v3856_v57 = vsel %vm1778_vm4, %v3824_v58, %v3088_v2 }
 0x598   : > { %v4362_v15 = vmul.f32 %v4846_v50, %v7752_v54  ;;  %v4227_v29 = vpop.f32.mrb[9].mxu1  ;;  %v4434_v50 = vld [vmem:[%s5084_s30 + $0x50] sm:$0xff] }
 0x599   : > { %v4361_v28 = vmul.f32 %v7752_v54, %v4227_v29  ;;  %v3722_v62 = vpop.permute.xlu1 %3721 }
 0x59a   : > { %v4401_v4 = vadd.f32 %v7757_v22, %v4362_v15  ;;  %v4013_v13 = vsel %vm1943_vm9, %v3981_v9, %v3722_v62  ;;  %v3596_v16 = vpop.permute.xlu0 %3595 }
 0x59b   : > { %v4400_v38 = vadd.f32 %v7757_v22, %v4361_v28  ;;  %4874 = vmatprep.mubr.msk.f32.mxu1 %vm1981_vm10, %v4013_v13  ;;  %v3982_v1 = vsel %vm1910_vm8, %v3950_v53, %v3596_v16 }
 0x59c   : > { %v4465_v19 = vadd.f32 %v4433_v61, %v4401_v4 }
 0x59d   : > { %v4464_v47 = vadd.f32 %v4432_v39, %v4400_v38  ;;  %v3342_v24 = vpop.permute.xlu1 %3341  ;;  %v4437_v38 = vld [vmem:[%s5084_s30 + $0x68] sm:$0xff] }
 0x59e   : > { %v4497_v31 = vmax.f32 %v4465_v19, 0.0  ;;  %v3216_v21 = vpop.permute.xlu0 %3215  ;;  %v3919_v56 = vsel %vm1844_vm6, %v3887_v8, %v3342_v24  ;;  %v4436_v19 = vld [vmem:[%s5084_s30 + $0x60] sm:$0xff] }
 0x59f   : > { %v4496_v34 = vmax.f32 %v4464_v47, 0.0  ;;  %v3888_v11 = vsel %vm1811_vm5, %v3856_v57, %v3216_v21 }
 0x5a0   : > { %4529 = vst.msk [vmem:[%s7777_s14 + $0x48] sm:$0xff] %vm279_vm0, %v4497_v31 }
 0x5a1   : > { %4528 = vst.msk [vmem:[%s7777_s14 + $0x40] sm:$0xff] %vm279_vm0, %v4496_v34  ;;  %v3344_v63 = vpop.permute.xlu1 %3343  ;;  %v4439_v34 = vld [vmem:[%s5084_s30 + $0x78] sm:$0xff] }
 0x5a2   : > { %v3724_v37 = vpop.permute.xlu0 %3723  ;;  %v3920_v30 = vsel %vm1844_vm6, %v3888_v11, %v3344_v63  ;;  %v4438_v63 = vld [vmem:[%s5084_s30 + $0x70] sm:$0xff] }
 0x5a3   : > { %v4014_v40 = vsel %vm1943_vm9, %v3982_v1, %v3724_v37 }
 0x5a4   : > { %4875 = vmatmul.mubr.msk.f32.gmra.mrb[28].mxu1 %vm1981_vm10, %v4014_v40 }
 0x5a5   : > { %v3472_v10 = vpop.permute.xlu1 %3471 }
 0x5a6   : > { %v3470_v41 = vpop.permute.xlu0 %3469  ;;  %v3952_v52 = vsel %vm1877_vm7, %v3920_v30, %v3472_v10 }
 0x5a7   : > { %v3951_v36 = vsel %vm1877_vm7, %v3919_v56, %v3470_v41 }
 0x5a9   : > { %v3600_v3 = vpop.permute.xlu1 %3599 }
 0x5aa   : > { %v3598_v18 = vpop.permute.xlu0 %3597  ;;  %v3984_v15 = vsel %vm1910_vm8, %v3952_v52, %v3600_v3 }
 0x5ab   : > { %v4849_v45 = vpop.f32.mrb[10].mxu1  ;;  %v3983_v2 = vsel %vm1910_vm8, %v3951_v36, %v3598_v18 }
 0x5ac   : > { %v4364_v42 = vmul.f32 %v4849_v45, %v7752_v54  ;;  %v4237_v32 = vpop.f32.mrb[11].mxu1  ;;  %v4443_v45 = vld [vmem:[%s5084_s30 + $0x98] sm:$0xff] }
 0x5ad   : > { %v4363_v49 = vmul.f32 %v7752_v54, %v4237_v32  ;;  %v3728_v25 = vpop.permute.xlu1 %3727 }
 0x5ae   : > { %v4403_v43 = vadd.f32 %v7757_v22, %v4364_v42  ;;  %v3726_v12 = vpop.permute.xlu0 %3725  ;;  %v4016_v28 = vsel %vm1943_vm9, %v3984_v15, %v3728_v25  ;;  %v4442_v42 = vld [vmem:[%s5084_s30 + $0x90] sm:$0xff]  ;;  %v4444_v15 = vld [vmem:[%s5084_s30 + $0xa0] sm:$0xff] }
 0x5af   : > { %v4402_v29 = vadd.f32 %v7757_v22, %v4363_v49  ;;  %v4015_v9 = vsel %vm1943_vm9, %v3983_v2, %v3726_v12 }
 0x5b0   : > { %v4467_v61 = vadd.f32 %v4435_v26, %v4403_v43  ;;  %4877 = vmatprep.mubr.msk.f32.mxu1 %vm1981_vm10, %v4015_v9  ;;  %v4445_v43 = vld [vmem:[%s5084_s30 + $0xa8] sm:$0xff] }
 0x5b1   : > { %v4466_v62 = vadd.f32 %v4434_v50, %v4402_v29  ;;  %4878 = vmatmul.mubr.msk.f32.gmra.mrb[30].mxu1 %vm1981_vm10, %v4016_v28 }
 0x5b2   : > { %v4499_v4 = vmax.f32 %v4467_v61, 0.0 }
 0x5b3   : > { %v4498_v39 = vmax.f32 %v4466_v62, 0.0 }
 0x5b4   : > { %4531 = vst.msk [vmem:[%s7777_s14 + $0x58] sm:$0xff] %vm279_vm0, %v4499_v4 }
 0x5b5   : > { %4530 = vst.msk [vmem:[%s7777_s14 + $0x50] sm:$0xff] %vm279_vm0, %v4498_v39 }
 0x5bf   : > { %v4852_v13 = vpop.f32.mrb[12].mxu1 }
 0x5c0   : > { %v4366_v16 = vmul.f32 %v4852_v13, %v7752_v54  ;;  %v4247_v27 = vpop.f32.mrb[13].mxu1 }
 0x5c1   : > { %v4365_v35 = vmul.f32 %v7752_v54, %v4247_v27 }
 0x5c2   : > { %v4405_v7 = vadd.f32 %v7757_v22, %v4366_v16  ;;  %v4447_v16 = vld [vmem:[%s5084_s30 + $0xb8] sm:$0xff] }
 0x5c3   : > { %v4404_v0 = vadd.f32 %v7757_v22, %v4365_v35  ;;  %v4446_v35 = vld [vmem:[%s5084_s30 + $0xb0] sm:$0xff] }
 0x5c4   : > { %v4469_v60 = vadd.f32 %v4437_v38, %v4405_v7 }
 0x5c5   : > { %v4468_v47 = vadd.f32 %v4436_v19, %v4404_v0 }
 0x5c6   : > { %v4501_v24 = vmax.f32 %v4469_v60, 0.0 }
 0x5c7   : > { %v4500_v17 = vmax.f32 %v4468_v47, 0.0 }
 0x5c8   : > { %4533 = vst.msk [vmem:[%s7777_s14 + $0x68] sm:$0xff] %vm279_vm0, %v4501_v24 }
 0x5c9   : > { %4532 = vst.msk [vmem:[%s7777_s14 + $0x60] sm:$0xff] %vm279_vm0, %v4500_v17 }
 0x5d3   : > { %v4855_v31 = vpop.f32.mrb[14].mxu1 }
 0x5d4   : > { %v4368_v21 = vmul.f32 %v4855_v31, %v7752_v54  ;;  %v4257_v23 = vpop.f32.mrb[15].mxu1 }
 0x5d5   : > { %v4367_v59 = vmul.f32 %v7752_v54, %v4257_v23 }
 0x5d6   : > { %v4407_v53 = vadd.f32 %v7757_v22, %v4368_v21  ;;  %v4449_v21 = vld [vmem:[%s5084_s30 + $0xc8] sm:$0xff] }
 0x5d7   : > { %v4406_v1 = vadd.f32 %v7757_v22, %v4367_v59  ;;  %v4448_v59 = vld [vmem:[%s5084_s30 + $0xc0] sm:$0xff] }
 0x5d8   : > { %v4471_v37 = vadd.f32 %v4439_v34, %v4407_v53 }
 0x5d9   : > { %v4470_v40 = vadd.f32 %v4438_v63, %v4406_v1 }
 0x5da   : > { %v4503_v10 = vmax.f32 %v4471_v37, 0.0 }
 0x5db   : > { %v4502_v41 = vmax.f32 %v4470_v40, 0.0 }
 0x5dc   : > { %4535 = vst.msk [vmem:[%s7777_s14 + $0x78] sm:$0xff] %vm279_vm0, %v4503_v10 }
 0x5dd   : > { %4534 = vst.msk [vmem:[%s7777_s14 + $0x70] sm:$0xff] %vm279_vm0, %v4502_v41 }
 0x5e7   : > { %v4858_v6 = vpop.f32.mrb[16].mxu1 }
 0x5e8   : > { %v4370_v5 = vmul.f32 %v4858_v6, %v7752_v54  ;;  %v4267_v46 = vpop.f32.mrb[17].mxu1 }
 0x5e9   : > { %v4369_v48 = vmul.f32 %v7752_v54, %v4267_v46 }
 0x5ea   : > { %v4409_v33 = vadd.f32 %v7757_v22, %v4370_v5  ;;  %v4451_v5 = vld [vmem:[%s5084_s30 + $0xd8] sm:$0xff] }
 0x5eb   : > { %v4408_v51 = vadd.f32 %v7757_v22, %v4369_v48  ;;  %v4450_v48 = vld [vmem:[%s5084_s30 + $0xd0] sm:$0xff] }
 0x5ec   : > { %v4473_v3 = vadd.f32 %v4441_v55, %v4409_v33 }
 0x5ed   : > { %v4472_v14 = vadd.f32 %v4440_v44, %v4408_v51 }
 0x5ee   : > { %v4505_v58 = vmax.f32 %v4473_v3, 0.0 }
 0x5ef   : > { %v4504_v20 = vmax.f32 %v4472_v14, 0.0 }
 0x5f0   : > { %4537 = vst.msk [vmem:[%s7777_s14 + $0x88] sm:$0xff] %vm279_vm0, %v4505_v58 }
 0x5f1   : > { %4536 = vst.msk [vmem:[%s7777_s14 + $0x80] sm:$0xff] %vm279_vm0, %v4504_v20 }
 0x5ff   : > { %v4861_v18 = vpop.f32.mrb[18].mxu1 }
 0x600   : > { %v4372_v8 = vmul.f32 %v4861_v18, %v7752_v54  ;;  %v4277_v57 = vpop.f32.mrb[19].mxu1 }
 0x601   : > { %v4371_v56 = vmul.f32 %v7752_v54, %v4277_v57 }
 0x602   : > { %v4411_v11 = vadd.f32 %v7757_v22, %v4372_v8  ;;  %v4453_v8 = vld [vmem:[%s5084_s30 + $0xe8] sm:$0xff] }
 0x603   : > { %v4410_v32 = vadd.f32 %v7757_v22, %v4371_v56  ;;  %v4452_v56 = vld [vmem:[%s5084_s30 + $0xe0] sm:$0xff] }
 0x604   : > { %v4475_v30 = vadd.f32 %v4443_v45, %v4411_v11 }
 0x605   : > { %v4474_v36 = vadd.f32 %v4442_v42, %v4410_v32 }
 0x606   : > { %v4507_v26 = vmax.f32 %v4475_v30, 0.0 }
 0x607   : > { %v4506_v49 = vmax.f32 %v4474_v36, 0.0 }
 0x608   : > { %4539 = vst.msk [vmem:[%s7777_s14 + $0x98] sm:$0xff] %vm279_vm0, %v4507_v26 }
 0x609   : > { %4538 = vst.msk [vmem:[%s7777_s14 + $0x90] sm:$0xff] %vm279_vm0, %v4506_v49 }
 0x617   : > { %v4864_v25 = vpop.f32.mrb[20].mxu1 }
 0x618   : > { %v4374_v52 = vmul.f32 %v4864_v25, %v7752_v54  ;;  %v4287_v2 = vpop.f32.mrb[21].mxu1 }
 0x619   : > { %v4373_v50 = vmul.f32 %v7752_v54, %v4287_v2 }
 0x61a   : > { %v4413_v12 = vadd.f32 %v7757_v22, %v4374_v52  ;;  %v4455_v52 = vld [vmem:[%s5084_s30 + $0xf8] sm:$0xff] }
 0x61b   : > { %v4412_v29 = vadd.f32 %v7757_v22, %v4373_v50  ;;  %v4454_v50 = vld [vmem:[%s5084_s30 + $0xf0] sm:$0xff] }
 0x61c   : > { %v4477_v9 = vadd.f32 %v4445_v43, %v4413_v12 }
 0x61d   : > { %v4476_v61 = vadd.f32 %v4444_v15, %v4412_v29 }
 0x61e   : > { %v4509_v28 = vmax.f32 %v4477_v9, 0.0 }
 0x61f   : > { %v4508_v62 = vmax.f32 %v4476_v61, 0.0 }
 0x620   : > { %4541 = vst.msk [vmem:[%s7777_s14 + $0xa8] sm:$0xff] %vm279_vm0, %v4509_v28 }
 0x621   : > { %4540 = vst.msk [vmem:[%s7777_s14 + $0xa0] sm:$0xff] %vm279_vm0, %v4508_v62 }
 0x62f   : > { %v4867_v4 = vpop.f32.mrb[22].mxu1 }
 0x630   : > { %v4376_v39 = vmul.f32 %v4867_v4, %v7752_v54  ;;  %v4297_v13 = vpop.f32.mrb[23].mxu1 }
 0x631   : > { %v4375_v27 = vmul.f32 %v7752_v54, %v4297_v13 }
 0x632   : > { %v4415_v38 = vadd.f32 %v7757_v22, %v4376_v39 }
 0x633   : > { %v4414_v7 = vadd.f32 %v7757_v22, %v4375_v27 }
 0x634   : > { %v4479_v19 = vadd.f32 %v4447_v16, %v4415_v38 }
 0x635   : > { %v4478_v0 = vadd.f32 %v4446_v35, %v4414_v7 }
 0x636   : > { %v4511_v60 = vmax.f32 %v4479_v19, 0.0 }
 0x637   : > { %v4510_v47 = vmax.f32 %v4478_v0, 0.0 }
 0x638   : > { %4543 = vst.msk [vmem:[%s7777_s14 + $0xb8] sm:$0xff] %vm279_vm0, %v4511_v60 }
 0x639   : > { %4542 = vst.msk [vmem:[%s7777_s14 + $0xb0] sm:$0xff] %vm279_vm0, %v4510_v47 }
 0x647   : > { %v4870_v24 = vpop.f32.mrb[24].mxu1 }
 0x648   : > { %v4378_v17 = vmul.f32 %v4870_v24, %v7752_v54  ;;  %v4307_v31 = vpop.f32.mrb[25].mxu1 }
 0x649   : > { %v4377_v23 = vmul.f32 %v7752_v54, %v4307_v31 }
 0x64a   : > { %v4417_v34 = vadd.f32 %v7757_v22, %v4378_v17 }
 0x64b   : > { %v4416_v53 = vadd.f32 %v7757_v22, %v4377_v23 }
 0x64c   : > { %v4481_v63 = vadd.f32 %v4449_v21, %v4417_v34 }
 0x64d   : > { %v4480_v1 = vadd.f32 %v4448_v59, %v4416_v53 }
 0x64e   : > { %v4513_v37 = vmax.f32 %v4481_v63, 0.0 }
 0x64f   : > { %v4512_v40 = vmax.f32 %v4480_v1, 0.0 }
 0x650   : > { %4545 = vst.msk [vmem:[%s7777_s14 + $0xc8] sm:$0xff] %vm279_vm0, %v4513_v37 }
 0x651   : > { %4544 = vst.msk [vmem:[%s7777_s14 + $0xc0] sm:$0xff] %vm279_vm0, %v4512_v40 }
 0x65f   : > { %v4873_v10 = vpop.f32.mrb[26].mxu1 }
 0x660   : > { %v4380_v41 = vmul.f32 %v4873_v10, %v7752_v54  ;;  %v4317_v6 = vpop.f32.mrb[27].mxu1 }
 0x661   : > { %v4379_v46 = vmul.f32 %v7752_v54, %v4317_v6 }
 0x662   : > { %v4419_v55 = vadd.f32 %v7757_v22, %v4380_v41 }
 0x663   : > { %v4418_v33 = vadd.f32 %v7757_v22, %v4379_v46 }
 0x664   : > { %v4483_v44 = vadd.f32 %v4451_v5, %v4419_v55 }
 0x665   : > { %v4482_v51 = vadd.f32 %v4450_v48, %v4418_v33 }
 0x666   : > { %v4515_v3 = vmax.f32 %v4483_v44, 0.0 }
 0x667   : > { %v4514_v14 = vmax.f32 %v4482_v51, 0.0 }
 0x668   : > { %4547 = vst.msk [vmem:[%s7777_s14 + $0xd8] sm:$0xff] %vm279_vm0, %v4515_v3 }
 0x669   : > { %4546 = vst.msk [vmem:[%s7777_s14 + $0xd0] sm:$0xff] %vm279_vm0, %v4514_v14 }
 0x677   : > { %v4876_v58 = vpop.f32.mrb[28].mxu1 }
 0x678   : > { %v4382_v20 = vmul.f32 %v4876_v58, %v7752_v54  ;;  %v4327_v18 = vpop.f32.mrb[29].mxu1 }
 0x679   : > { %v4381_v57 = vmul.f32 %v7752_v54, %v4327_v18 }
 0x67a   : > { %v4421_v45 = vadd.f32 %v7757_v22, %v4382_v20 }
 0x67b   : > { %v4420_v11 = vadd.f32 %v7757_v22, %v4381_v57 }
 0x67c   : > { %v4485_v42 = vadd.f32 %v4453_v8, %v4421_v45 }
 0x67d   : > { %v4484_v32 = vadd.f32 %v4452_v56, %v4420_v11 }
 0x67e   : > { %v4517_v30 = vmax.f32 %v4485_v42, 0.0 }
 0x67f   : > { %v4516_v36 = vmax.f32 %v4484_v32, 0.0 }
 0x680   : > { %4549 = vst.msk [vmem:[%s7777_s14 + $0xe8] sm:$0xff] %vm279_vm0, %v4517_v30 }
 0x681   : > { %4548 = vst.msk [vmem:[%s7777_s14 + $0xe0] sm:$0xff] %vm279_vm0, %v4516_v36 }
 0x684   : > { %v4879_v26 = vpop.f32.mrb[30].mxu1 }
 0x685   : > { %v4384_v49 = vmul.f32 %v4879_v26, %v7752_v54  ;;  %v4337_v25 = vpop.f32.mrb[31].mxu1 }
 0x686   : > { %v4383_v2 = vmul.f32 %v7752_v54, %v4337_v25 }
 0x687   : > { %v4423_v43 = vadd.f32 %v7757_v22, %v4384_v49 }
 0x688   : > { %v4422_v12 = vadd.f32 %v7757_v22, %v4383_v2 }
 0x689   : > { %v4487_v15 = vadd.f32 %v4455_v52, %v4423_v43 }
 0x68a   : > { %v4486_v29 = vadd.f32 %v4454_v50, %v4422_v12 }
 0x68b   : > { %v4519_v9 = vmax.f32 %v4487_v15, 0.0 }
 0x68c   : > { %v4518_v61 = vmax.f32 %v4486_v29, 0.0 }
 0x68d   : > { %4551 = vst.msk [vmem:[%s7777_s14 + $0xf8] sm:$0xff] %vm279_vm0, %v4519_v9 }
 0x68e   : > { %4550 = vst.msk [vmem:[%s7777_s14 + $0xf0] sm:$0xff] %vm279_vm0, %v4518_v61 }
 0x68f PF: > { %s17_s24 = sadd.s32 1, %s4953_s24  }
 0x690   : > { %p14_p4 = scmp.ge.s32.totalorder %s17_s24, 4  }
 0x692   :  { %16 = sbr.rel (!%p14_p4) target bundleno = 1 (0x1), region = 80 }

</bundles_post_ra>
